<compile_context>
chip_gen: v6e
topology: v6e:2x2x1
jax: 0.10.0
libtpu: 0.0.40
codegen_flags: <defaults>
</compile_context>

<pallas_src>
import math

import jax
import jax.numpy as jnp
from jax.experimental import pallas as pl
from jax.experimental.pallas import tpu as pltpu

# ---------------- small BART-like config ----------------
VOCAB = 128
D_MODEL = 32
N_HEADS = 2
HEAD_DIM = D_MODEL // N_HEADS
FFN = 64
ENC_LAYERS = 2
DEC_LAYERS = 2
MAX_POS = 64
POS_OFFSET = 2            # BartLearnedPositionalEmbedding offset
LN_EPS = 1e-5
NEG_INF = -1e9
ATTN_SCALE = HEAD_DIM ** -0.5


# ---------------- in-kernel helpers (traced inside the fused kernels) --------
def _mm(x, w):
    """bf16 MXU matmul with f32 accumulation."""
    return jnp.dot(x.astype(jnp.bfloat16), w.astype(jnp.bfloat16),
                   preferred_element_type=jnp.float32)


def _ln(x, g, b):
    mu = jnp.mean(x, axis=-1, keepdims=True)
    var = jnp.mean(jnp.square(x - mu), axis=-1, keepdims=True)
    return (x - mu) * jax.lax.rsqrt(var + LN_EPS) * g + b


def _gelu(x):
    # TODO(synk): BART uses exact erf-GELU; erf has no guaranteed Mosaic lowering,
    #             so the tanh approximation (max abs err ~3e-4) is used in-kernel.
    c = math.sqrt(2.0 / math.pi)
    return 0.5 * x * (1.0 + jnp.tanh(c * (x + 0.044715 * x * x * x)))


def _attn_out(q, k, v, add_mask, o_w, o_b):
    """Per-head attention + output projection for one batch element.

    q: [Sq, D], k/v: [Sk, D], add_mask broadcastable to [Sq, Sk],
    o_w: [D, D], o_b: [1, D].  Heads are static column slices; the output
    projection is folded into the per-head accumulation (no concat/transpose).
    """
    sq = q.shape[0]
    out = jnp.zeros((sq, D_MODEL), jnp.float32)
    for h in range(N_HEADS):
        sl = slice(h * HEAD_DIM, (h + 1) * HEAD_DIM)
        qh = q[:, sl].astype(jnp.bfloat16)
        kh = k[:, sl].astype(jnp.bfloat16)
        vh = v[:, sl].astype(jnp.bfloat16)
        s = jax.lax.dot_general(qh, kh, (((1,), (1,)), ((), ())),
                                preferred_element_type=jnp.float32) * ATTN_SCALE
        s = s + add_mask
        s = s - jnp.max(s, axis=-1, keepdims=True)
        p = jnp.exp(s)
        p = p * pl.reciprocal(jnp.sum(p, axis=-1, keepdims=True), approx=True)
        ah = jnp.dot(p.astype(jnp.bfloat16), vh, preferred_element_type=jnp.float32)
        out = out + jnp.dot(ah.astype(jnp.bfloat16),
                            o_w[sl, :].astype(jnp.bfloat16),
                            preferred_element_type=jnp.float32)
    return out + o_b


# ---------------- fused Pallas kernels ----------------
def _encoder_kernel(h_ref, pad_ref,
                    ln0g_ref, ln0b_ref,
                    qkvw_ref, qkvb_ref, ow_ref, ob_ref, slng_ref, slnb_ref,
                    f1w_ref, f1b_ref, f2w_ref, f2b_ref, flng_ref, flnb_ref,
                    out_ref):
    h = h_ref[0].astype(jnp.float32)        # [S_enc, D]
    pad = pad_ref[0].astype(jnp.float32)    # [1, S_enc] additive key-padding mask

    h = _ln(h, ln0g_ref[...], ln0b_ref[...])     # layernorm_embedding
    for l in range(ENC_LAYERS):                  # static unroll, post-LN BART
        resid = h
        qkv = _mm(h, qkvw_ref[l]) + qkvb_ref[l]  # fused QKV: [S, 3D]
        attn = _attn_out(qkv[:, :D_MODEL],
                         qkv[:, D_MODEL:2 * D_MODEL],
                         qkv[:, 2 * D_MODEL:],
                         pad, ow_ref[l], ob_ref[l])
        h = _ln(resid + attn, slng_ref[l], slnb_ref[l])
        resid = h
        f = _gelu(_mm(h, f1w_ref[l]) + f1b_ref[l])
        f = _mm(f, f2w_ref[l]) + f2b_ref[l]
        h = _ln(resid + f, flng_ref[l], flnb_ref[l])
    out_ref[0] = h.astype(out_ref.dtype)


def _decoder_kernel(d_ref, e_ref, pad_ref,
                    ln0g_ref, ln0b_ref,
                    sqkvw_ref, sqkvb_ref, sow_ref, sob_ref, slng_ref, slnb_ref,
                    cqw_ref, cqb_ref, ckvw_ref, ckvb_ref, cow_ref, cob_ref,
                    clng_ref, clnb_ref,
                    f1w_ref, f1b_ref, f2w_ref, f2b_ref, flng_ref, flnb_ref,
                    lmw_ref, lmb_ref,
                    out_ref):
    d = d_ref[0].astype(jnp.float32)        # [S_dec, D]
    e = e_ref[0].astype(jnp.float32)        # [S_enc, D] encoder output
    pad = pad_ref[0].astype(jnp.float32)    # [1, S_enc]

    sd = d.shape[0]
    row = jax.lax.broadcasted_iota(jnp.int32, (sd, sd), 0)
    col = jax.lax.broadcasted_iota(jnp.int32, (sd, sd), 1)
    causal = jnp.where(row >= col, 0.0, NEG_INF).astype(jnp.float32)

    d = _ln(d, ln0g_ref[...], ln0b_ref[...])     # layernorm_embedding
    for l in range(DEC_LAYERS):
        # ---- masked self-attention ----
        resid = d
        qkv = _mm(d, sqkvw_ref[l]) + sqkvb_ref[l]
        attn = _attn_out(qkv[:, :D_MODEL],
                         qkv[:, D_MODEL:2 * D_MODEL],
                         qkv[:, 2 * D_MODEL:],
                         causal, sow_ref[l], sob_ref[l])
        d = _ln(resid + attn, slng_ref[l], slnb_ref[l])
        # ---- cross-attention ----
        resid = d
        q = _mm(d, cqw_ref[l]) + cqb_ref[l]           # [S_dec, D]
        kv = _mm(e, ckvw_ref[l]) + ckvb_ref[l]        # fused KV: [S_enc, 2D]
        attn = _attn_out(q, kv[:, :D_MODEL], kv[:, D_MODEL:],
                         pad, cow_ref[l], cob_ref[l])
        d = _ln(resid + attn, clng_ref[l], clnb_ref[l])
        # ---- FFN ----
        resid = d
        f = _gelu(_mm(d, f1w_ref[l]) + f1b_ref[l])
        f = _mm(f, f2w_ref[l]) + f2b_ref[l]
        d = _ln(resid + f, flng_ref[l], flnb_ref[l])

    # tied lm_head (pre-transposed at init) -> lane-dense [S_dec, VOCAB=128]
    logits = _mm(d, lmw_ref[...]) + lmb_ref[...]
    out_ref[0] = logits.astype(out_ref.dtype)


# ---------------- spec helpers / wrappers ----------------
def _full_spec(arr):
    """Whole-array VMEM block, same block for every grid step (no re-DMA)."""
    n = arr.ndim
    return pl.BlockSpec(arr.shape, lambda b, _n=n: (0,) * _n)


def encode(params, input_ids, attention_mask):
    B, s_enc = input_ids.shape
    pos = jnp.arange(s_enc) + POS_OFFSET
    h = params["embed_tokens"][input_ids] + params["enc_pos"][pos][None, :, :]
    pad = ((1.0 - attention_mask.astype(jnp.float32)) * NEG_INF)[:, None, :]  # [B,1,S]

    weights = [
        params["enc_ln_emb_g"], params["enc_ln_emb_b"],
        params["enc_qkv_w"], params["enc_qkv_b"],
        params["enc_o_w"], params["enc_o_b"],
        params["enc_sln_g"], params["enc_sln_b"],
        params["enc_fc1_w"], params["enc_fc1_b"],
        params["enc_fc2_w"], params["enc_fc2_b"],
        params["enc_fln_g"], params["enc_fln_b"],
    ]
    enc_out = pl.pallas_call(
        _encoder_kernel,
        out_shape=jax.ShapeDtypeStruct((B, s_enc, D_MODEL), jnp.float32),
        grid=(B,),
        in_specs=[pl.BlockSpec((1, s_enc, D_MODEL), lambda b: (b, 0, 0)),
                  pl.BlockSpec((1, 1, s_enc), lambda b: (b, 0, 0))]
                 + [_full_spec(w) for w in weights],
        out_specs=pl.BlockSpec((1, s_enc, D_MODEL), lambda b: (b, 0, 0)),
        compiler_params=pltpu.CompilerParams(dimension_semantics=("parallel",)),
    )(h, pad, *weights)
    return enc_out, pad


def bart_forward(params, input_ids, attention_mask, decoder_input_ids):
    """Returns the LM logits, like BartForConditionalGeneration(...).logits."""
    enc_out, pad = encode(params, input_ids, attention_mask)

    B, s_dec = decoder_input_ids.shape
    s_enc = enc_out.shape[1]
    posd = jnp.arange(s_dec) + POS_OFFSET
    d = params["embed_tokens"][decoder_input_ids] + params["dec_pos"][posd][None, :, :]

    weights = [
        params["dec_ln_emb_g"], params["dec_ln_emb_b"],
        params["dec_sqkv_w"], params["dec_sqkv_b"],
        params["dec_so_w"], params["dec_so_b"],
        params["dec_sln_g"], params["dec_sln_b"],
        params["dec_cq_w"], params["dec_cq_b"],
        params["dec_ckv_w"], params["dec_ckv_b"],
        params["dec_co_w"], params["dec_co_b"],
        params["dec_cln_g"], params["dec_cln_b"],
        params["dec_fc1_w"], params["dec_fc1_b"],
        params["dec_fc2_w"], params["dec_fc2_b"],
        params["dec_fln_g"], params["dec_fln_b"],
        params["lm_head_w"], params["final_logits_bias"],
    ]
    logits = pl.pallas_call(
        _decoder_kernel,
        out_shape=jax.ShapeDtypeStruct((B, s_dec, VOCAB), jnp.float32),
        grid=(B,),
        in_specs=[pl.BlockSpec((1, s_dec, D_MODEL), lambda b: (b, 0, 0)),
                  pl.BlockSpec((1, s_enc, D_MODEL), lambda b: (b, 0, 0)),
                  pl.BlockSpec((1, 1, s_enc), lambda b: (b, 0, 0))]
                 + [_full_spec(w) for w in weights],
        out_specs=pl.BlockSpec((1, s_dec, VOCAB), lambda b: (b, 0, 0)),
        compiler_params=pltpu.CompilerParams(dimension_semantics=("parallel",)),
    )(d, enc_out, pad, *weights)
    return logits


def get_feature(params, input_ids, attention_mask):
    enc_out, _ = encode(params, input_ids, attention_mask)
    return jnp.mean(enc_out, axis=1)               # torch.mean(seq_output, dim=1)


# ---------------- parameter init (deterministic, synthetic) ----------------
# TODO(synk): tokenizer / pretrained-checkpoint loading has no Pallas equivalent;
#             weights here are synthetic deterministic initializations.
def init_params(key):
    keys = iter(jax.random.split(key, 64))

    def w(*shape):
        return jax.random.normal(next(keys), shape, jnp.float32) * 0.02

    def zeros(*shape):
        return jnp.zeros(shape, jnp.float32)

    def ones(*shape):
        return jnp.ones(shape, jnp.float32)

    embed = w(VOCAB, D_MODEL)
    return {
        "embed_tokens": embed,
        "lm_head_w": embed.T,                       # tied, pre-transposed once
        "final_logits_bias": zeros(1, VOCAB),
        "enc_pos": w(MAX_POS + POS_OFFSET, D_MODEL),
        "dec_pos": w(MAX_POS + POS_OFFSET, D_MODEL),
        "enc_ln_emb_g": ones(1, D_MODEL), "enc_ln_emb_b": zeros(1, D_MODEL),
        "dec_ln_emb_g": ones(1, D_MODEL), "dec_ln_emb_b": zeros(1, D_MODEL),
        # encoder layers (stacked on axis 0)
        "enc_qkv_w": w(ENC_LAYERS, D_MODEL, 3 * D_MODEL),
        "enc_qkv_b": zeros(ENC_LAYERS, 1, 3 * D_MODEL),
        "enc_o_w": w(ENC_LAYERS, D_MODEL, D_MODEL),
        "enc_o_b": zeros(ENC_LAYERS, 1, D_MODEL),
        "enc_sln_g": ones(ENC_LAYERS, 1, D_MODEL),
        "enc_sln_b": zeros(ENC_LAYERS, 1, D_MODEL),
        "enc_fc1_w": w(ENC_LAYERS, D_MODEL, FFN),
        "enc_fc1_b": zeros(ENC_LAYERS, 1, FFN),
        "enc_fc2_w": w(ENC_LAYERS, FFN, D_MODEL),
        "enc_fc2_b": zeros(ENC_LAYERS, 1, D_MODEL),
        "enc_fln_g": ones(ENC_LAYERS, 1, D_MODEL),
        "enc_fln_b": zeros(ENC_LAYERS, 1, D_MODEL),
        # decoder layers (stacked on axis 0)
        "dec_sqkv_w": w(DEC_LAYERS, D_MODEL, 3 * D_MODEL),
        "dec_sqkv_b": zeros(DEC_LAYERS, 1, 3 * D_MODEL),
        "dec_so_w": w(DEC_LAYERS, D_MODEL, D_MODEL),
        "dec_so_b": zeros(DEC_LAYERS, 1, D_MODEL),
        "dec_sln_g": ones(DEC_LAYERS, 1, D_MODEL),
        "dec_sln_b": zeros(DEC_LAYERS, 1, D_MODEL),
        "dec_cq_w": w(DEC_LAYERS, D_MODEL, D_MODEL),
        "dec_cq_b": zeros(DEC_LAYERS, 1, D_MODEL),
        "dec_ckv_w": w(DEC_LAYERS, D_MODEL, 2 * D_MODEL),
        "dec_ckv_b": zeros(DEC_LAYERS, 1, 2 * D_MODEL),
        "dec_co_w": w(DEC_LAYERS, D_MODEL, D_MODEL),
        "dec_co_b": zeros(DEC_LAYERS, 1, D_MODEL),
        "dec_cln_g": ones(DEC_LAYERS, 1, D_MODEL),
        "dec_cln_b": zeros(DEC_LAYERS, 1, D_MODEL),
        "dec_fc1_w": w(DEC_LAYERS, D_MODEL, FFN),
        "dec_fc1_b": zeros(DEC_LAYERS, 1, FFN),
        "dec_fc2_w": w(DEC_LAYERS, FFN, D_MODEL),
        "dec_fc2_b": zeros(DEC_LAYERS, 1, D_MODEL),
        "dec_fln_g": ones(DEC_LAYERS, 1, D_MODEL),
        "dec_fln_b": zeros(DEC_LAYERS, 1, D_MODEL),
    }


if __name__ == "__main__":
    key = jax.random.PRNGKey(0)
    pkey, k1, k2 = jax.random.split(key, 3)
    params = init_params(pkey)

    B, S_ENC, S_DEC = 2, 8, 8
    input_ids = jax.random.randint(k1, (B, S_ENC), 0, VOCAB, dtype=jnp.int32)
    decoder_input_ids = jax.random.randint(k2, (B, S_DEC), 0, VOCAB, dtype=jnp.int32)
    attention_mask = jnp.array(
        [[1] * S_ENC,
         [1] * (S_ENC - 2) + [0, 0]], dtype=jnp.int32)

    fwd = jax.jit(lambda i, a, d: bart_forward(params, i, a, d))
    logits = jax.block_until_ready(fwd(input_ids, attention_mask, decoder_input_ids))

    feat = jax.block_until_ready(
        jax.jit(lambda i, a: get_feature(params, i, a))(input_ids, attention_mask))

    assert logits.shape == (B, S_DEC, VOCAB)
    assert feat.shape == (B, D_MODEL)
    assert bool(jnp.all(jnp.isfinite(logits)))
    assert bool(jnp.all(jnp.isfinite(feat)))
    print("KERNEL_OK")
</pallas_src>

<mosaic_0001>
module attributes {stable_mosaic.version = 11 : i64} {
  func.func @_encoder_kernel(%arg0: i32, %arg1: memref<1x8x32xf32, #tpu.memory_space<vmem>>, %arg2: memref<1x1x8xf32, #tpu.memory_space<vmem>>, %arg3: memref<1x32xf32, #tpu.memory_space<vmem>>, %arg4: memref<1x32xf32, #tpu.memory_space<vmem>>, %arg5: memref<2x32x96xf32, #tpu.memory_space<vmem>>, %arg6: memref<2x1x96xf32, #tpu.memory_space<vmem>>, %arg7: memref<2x32x32xf32, #tpu.memory_space<vmem>>, %arg8: memref<2x1x32xf32, #tpu.memory_space<vmem>>, %arg9: memref<2x1x32xf32, #tpu.memory_space<vmem>>, %arg10: memref<2x1x32xf32, #tpu.memory_space<vmem>>, %arg11: memref<2x32x64xf32, #tpu.memory_space<vmem>>, %arg12: memref<2x1x64xf32, #tpu.memory_space<vmem>>, %arg13: memref<2x64x32xf32, #tpu.memory_space<vmem>>, %arg14: memref<2x1x32xf32, #tpu.memory_space<vmem>>, %arg15: memref<2x1x32xf32, #tpu.memory_space<vmem>>, %arg16: memref<2x1x32xf32, #tpu.memory_space<vmem>>, %arg17: memref<1x8x32xf32, #tpu.memory_space<vmem>>) attributes {dimension_semantics = [#tpu.dimension_semantics<parallel>], iteration_bounds = array<i64: 2>, scalar_prefetch = 0 : i64, scratch_operands = 0 : i64, tpu.core_type = #tpu.core_type<tc>, window_params = [{transform_indices = @transform_0, window_bounds = array<i64: 1, 8, 32>}, {transform_indices = @transform_1, window_bounds = array<i64: 1, 1, 8>}, {pipeline_mode = #tpu.pipeline_mode<synchronous>, transform_indices = @transform_2, window_bounds = array<i64: 1, 32>}, {pipeline_mode = #tpu.pipeline_mode<synchronous>, transform_indices = @transform_3, window_bounds = array<i64: 1, 32>}, {pipeline_mode = #tpu.pipeline_mode<synchronous>, transform_indices = @transform_4, window_bounds = array<i64: 2, 32, 96>}, {pipeline_mode = #tpu.pipeline_mode<synchronous>, transform_indices = @transform_5, window_bounds = array<i64: 2, 1, 96>}, {pipeline_mode = #tpu.pipeline_mode<synchronous>, transform_indices = @transform_6, window_bounds = array<i64: 2, 32, 32>}, {pipeline_mode = #tpu.pipeline_mode<synchronous>, transform_indices = @transform_7, window_bounds = array<i64: 2, 1, 32>}, {pipeline_mode = #tpu.pipeline_mode<synchronous>, transform_indices = @transform_8, window_bounds = array<i64: 2, 1, 32>}, {pipeline_mode = #tpu.pipeline_mode<synchronous>, transform_indices = @transform_9, window_bounds = array<i64: 2, 1, 32>}, {pipeline_mode = #tpu.pipeline_mode<synchronous>, transform_indices = @transform_10, window_bounds = array<i64: 2, 32, 64>}, {pipeline_mode = #tpu.pipeline_mode<synchronous>, transform_indices = @transform_11, window_bounds = array<i64: 2, 1, 64>}, {pipeline_mode = #tpu.pipeline_mode<synchronous>, transform_indices = @transform_12, window_bounds = array<i64: 2, 64, 32>}, {pipeline_mode = #tpu.pipeline_mode<synchronous>, transform_indices = @transform_13, window_bounds = array<i64: 2, 1, 32>}, {pipeline_mode = #tpu.pipeline_mode<synchronous>, transform_indices = @transform_14, window_bounds = array<i64: 2, 1, 32>}, {pipeline_mode = #tpu.pipeline_mode<synchronous>, transform_indices = @transform_15, window_bounds = array<i64: 2, 1, 32>}, {transform_indices = @transform_16, window_bounds = array<i64: 1, 8, 32>}]} {
    %c0 = arith.constant 0 : index
    %c0_0 = arith.constant 0 : index
    %c0_1 = arith.constant 0 : index
    %0 = vector.load %arg1[%c0, %c0_0, %c0_1] : memref<1x8x32xf32, #tpu.memory_space<vmem>>, vector<1x8x32xf32>
    %1 = vector.shape_cast %0 : vector<1x8x32xf32> to vector<8x32xf32>
    %c0_2 = arith.constant 0 : index
    %c0_3 = arith.constant 0 : index
    %c0_4 = arith.constant 0 : index
    %2 = vector.load %arg2[%c0_2, %c0_3, %c0_4] : memref<1x1x8xf32, #tpu.memory_space<vmem>>, vector<1x1x8xf32>
    %3 = vector.shape_cast %2 : vector<1x1x8xf32> to vector<1x8xf32>
    %c0_5 = arith.constant 0 : index
    %c0_6 = arith.constant 0 : index
    %4 = vector.load %arg3[%c0_5, %c0_6] : memref<1x32xf32, #tpu.memory_space<vmem>>, vector<1x32xf32>
    %c0_7 = arith.constant 0 : index
    %c0_8 = arith.constant 0 : index
    %5 = vector.load %arg4[%c0_7, %c0_8] : memref<1x32xf32, #tpu.memory_space<vmem>>, vector<1x32xf32>
    %cst = arith.constant dense<0.000000e+00> : vector<8xf32>
    %6 = vector.multi_reduction <add>, %1, %cst [1] : vector<8x32xf32> to vector<8xf32>
    %7 = vector.shape_cast %6 : vector<8xf32> to vector<8x1xf32>
    %cst_9 = arith.constant 3.200000e+01 : f32
    %8 = vector.broadcast %cst_9 : f32 to vector<8x1xf32>
    %9 = arith.divf %7, %8 : vector<8x1xf32>
    %10 = vector.broadcast %9 : vector<8x1xf32> to vector<8x32xf32>
    %11 = arith.subf %1, %10 : vector<8x32xf32>
    %12 = arith.mulf %11, %11 : vector<8x32xf32>
    %cst_10 = arith.constant dense<0.000000e+00> : vector<8xf32>
    %13 = vector.multi_reduction <add>, %12, %cst_10 [1] : vector<8x32xf32> to vector<8xf32>
    %14 = vector.shape_cast %13 : vector<8xf32> to vector<8x1xf32>
    %cst_11 = arith.constant 3.200000e+01 : f32
    %15 = vector.broadcast %cst_11 : f32 to vector<8x1xf32>
    %16 = arith.divf %14, %15 : vector<8x1xf32>
    %17 = vector.broadcast %9 : vector<8x1xf32> to vector<8x32xf32>
    %18 = arith.subf %1, %17 : vector<8x32xf32>
    %cst_12 = arith.constant 9.99999974E-6 : f32
    %19 = vector.broadcast %cst_12 : f32 to vector<8x1xf32>
    %20 = arith.addf %16, %19 : vector<8x1xf32>
    %21 = math.rsqrt %20 : vector<8x1xf32>
    %22 = vector.broadcast %21 : vector<8x1xf32> to vector<8x32xf32>
    %23 = arith.mulf %18, %22 : vector<8x32xf32>
    %24 = vector.broadcast %4 : vector<1x32xf32> to vector<8x32xf32>
    %25 = arith.mulf %23, %24 : vector<8x32xf32>
    %26 = vector.broadcast %5 : vector<1x32xf32> to vector<8x32xf32>
    %27 = arith.addf %25, %26 : vector<8x32xf32>
    %c0_13 = arith.constant 0 : index
    %c0_14 = arith.constant 0 : index
    %c0_15 = arith.constant 0 : index
    %28 = vector.load %arg5[%c0_13, %c0_14, %c0_15] : memref<2x32x96xf32, #tpu.memory_space<vmem>>, vector<1x32x96xf32>
    %29 = vector.shape_cast %28 : vector<1x32x96xf32> to vector<32x96xf32>
    %30 = arith.truncf %27 : vector<8x32xf32> to vector<8x32xbf16>
    %31 = arith.truncf %29 : vector<32x96xf32> to vector<32x96xbf16>
    %cst_16 = arith.constant dense<0.000000e+00> : vector<8x96xf32>
    %32 = tpu.matmul %30, %31, %cst_16 {dimension_numbers = #tpu.dot_dimension_numbers<[1], [0], [0], [1], [0, 0, 1, 1], [], []>} : vector<8x32xbf16>, vector<32x96xbf16>, vector<8x96xf32> -> vector<8x96xf32>
    %c0_17 = arith.constant 0 : index
    %c0_18 = arith.constant 0 : index
    %c0_19 = arith.constant 0 : index
    %33 = vector.load %arg6[%c0_17, %c0_18, %c0_19] : memref<2x1x96xf32, #tpu.memory_space<vmem>>, vector<1x1x96xf32>
    %34 = vector.shape_cast %33 : vector<1x1x96xf32> to vector<1x96xf32>
    %35 = vector.broadcast %34 : vector<1x96xf32> to vector<8x96xf32>
    %36 = arith.addf %32, %35 : vector<8x96xf32>
    %37 = vector.extract_strided_slice %36 {offsets = [0, 0], sizes = [8, 32], strides = [1, 1]} : vector<8x96xf32> to vector<8x32xf32>
    %38 = vector.extract_strided_slice %36 {offsets = [0, 32], sizes = [8, 32], strides = [1, 1]} : vector<8x96xf32> to vector<8x32xf32>
    %39 = vector.extract_strided_slice %36 {offsets = [0, 64], sizes = [8, 32], strides = [1, 1]} : vector<8x96xf32> to vector<8x32xf32>
    %c0_20 = arith.constant 0 : index
    %c0_21 = arith.constant 0 : index
    %c0_22 = arith.constant 0 : index
    %40 = vector.load %arg7[%c0_20, %c0_21, %c0_22] : memref<2x32x32xf32, #tpu.memory_space<vmem>>, vector<1x32x32xf32>
    %41 = vector.shape_cast %40 : vector<1x32x32xf32> to vector<32x32xf32>
    %c0_23 = arith.constant 0 : index
    %c0_24 = arith.constant 0 : index
    %c0_25 = arith.constant 0 : index
    %42 = vector.load %arg8[%c0_23, %c0_24, %c0_25] : memref<2x1x32xf32, #tpu.memory_space<vmem>>, vector<1x1x32xf32>
    %43 = vector.shape_cast %42 : vector<1x1x32xf32> to vector<1x32xf32>
    %cst_26 = arith.constant 0.000000e+00 : f32
    %44 = vector.broadcast %cst_26 : f32 to vector<8x32xf32>
    %45 = vector.extract_strided_slice %37 {offsets = [0, 0], sizes = [8, 16], strides = [1, 1]} : vector<8x32xf32> to vector<8x16xf32>
    %46 = arith.truncf %45 : vector<8x16xf32> to vector<8x16xbf16>
    %47 = vector.extract_strided_slice %38 {offsets = [0, 0], sizes = [8, 16], strides = [1, 1]} : vector<8x32xf32> to vector<8x16xf32>
    %48 = arith.truncf %47 : vector<8x16xf32> to vector<8x16xbf16>
    %49 = vector.extract_strided_slice %39 {offsets = [0, 0], sizes = [8, 16], strides = [1, 1]} : vector<8x32xf32> to vector<8x16xf32>
    %50 = arith.truncf %49 : vector<8x16xf32> to vector<8x16xbf16>
    %cst_27 = arith.constant dense<0.000000e+00> : vector<8x8xf32>
    %51 = tpu.matmul %46, %48, %cst_27 {dimension_numbers = #tpu.dot_dimension_numbers<[1], [1], [0], [0], [0, 0, 1, 0], [], []>} : vector<8x16xbf16>, vector<8x16xbf16>, vector<8x8xf32> -> vector<8x8xf32>
    %cst_28 = arith.constant 2.500000e-01 : f32
    %52 = vector.broadcast %cst_28 : f32 to vector<8x8xf32>
    %53 = arith.mulf %51, %52 : vector<8x8xf32>
    %54 = vector.broadcast %3 : vector<1x8xf32> to vector<8x8xf32>
    %55 = arith.addf %53, %54 : vector<8x8xf32>
    %cst_29 = arith.constant dense<0xFF800000> : vector<8xf32>
    %56 = vector.multi_reduction <maximumf>, %55, %cst_29 [1] : vector<8x8xf32> to vector<8xf32>
    %57 = vector.shape_cast %56 : vector<8xf32> to vector<8x1xf32>
    %58 = vector.broadcast %57 : vector<8x1xf32> to vector<8x8xf32>
    %59 = arith.subf %55, %58 : vector<8x8xf32>
    %60 = math.exp %59 : vector<8x8xf32>
    %cst_30 = arith.constant dense<0.000000e+00> : vector<8xf32>
    %61 = vector.multi_reduction <add>, %60, %cst_30 [1] : vector<8x8xf32> to vector<8xf32>
    %62 = vector.shape_cast %61 : vector<8xf32> to vector<8x1xf32>
    %63 = tpu.reciprocal %62 {approx = true} : vector<8x1xf32> -> vector<8x1xf32>
    %64 = vector.broadcast %63 : vector<8x1xf32> to vector<8x8xf32>
    %65 = arith.mulf %60, %64 : vector<8x8xf32>
    %66 = arith.truncf %65 : vector<8x8xf32> to vector<8x8xbf16>
    %cst_31 = arith.constant dense<0.000000e+00> : vector<8x16xf32>
    %67 = tpu.matmul %66, %50, %cst_31 {dimension_numbers = #tpu.dot_dimension_numbers<[1], [0], [0], [1], [0, 0, 1, 1], [], []>} : vector<8x8xbf16>, vector<8x16xbf16>, vector<8x16xf32> -> vector<8x16xf32>
    %68 = arith.truncf %67 : vector<8x16xf32> to vector<8x16xbf16>
    %69 = vector.extract_strided_slice %41 {offsets = [0, 0], sizes = [16, 32], strides = [1, 1]} : vector<32x32xf32> to vector<16x32xf32>
    %70 = arith.truncf %69 : vector<16x32xf32> to vector<16x32xbf16>
    %cst_32 = arith.constant dense<0.000000e+00> : vector<8x32xf32>
    %71 = tpu.matmul %68, %70, %cst_32 {dimension_numbers = #tpu.dot_dimension_numbers<[1], [0], [0], [1], [0, 0, 1, 1], [], []>} : vector<8x16xbf16>, vector<16x32xbf16>, vector<8x32xf32> -> vector<8x32xf32>
    %72 = arith.addf %44, %71 : vector<8x32xf32>
    %73 = vector.extract_strided_slice %37 {offsets = [0, 16], sizes = [8, 16], strides = [1, 1]} : vector<8x32xf32> to vector<8x16xf32>
    %74 = arith.truncf %73 : vector<8x16xf32> to vector<8x16xbf16>
    %75 = vector.extract_strided_slice %38 {offsets = [0, 16], sizes = [8, 16], strides = [1, 1]} : vector<8x32xf32> to vector<8x16xf32>
    %76 = arith.truncf %75 : vector<8x16xf32> to vector<8x16xbf16>
    %77 = vector.extract_strided_slice %39 {offsets = [0, 16], sizes = [8, 16], strides = [1, 1]} : vector<8x32xf32> to vector<8x16xf32>
    %78 = arith.truncf %77 : vector<8x16xf32> to vector<8x16xbf16>
    %cst_33 = arith.constant dense<0.000000e+00> : vector<8x8xf32>
    %79 = tpu.matmul %74, %76, %cst_33 {dimension_numbers = #tpu.dot_dimension_numbers<[1], [1], [0], [0], [0, 0, 1, 0], [], []>} : vector<8x16xbf16>, vector<8x16xbf16>, vector<8x8xf32> -> vector<8x8xf32>
    %cst_34 = arith.constant 2.500000e-01 : f32
    %80 = vector.broadcast %cst_34 : f32 to vector<8x8xf32>
    %81 = arith.mulf %79, %80 : vector<8x8xf32>
    %82 = vector.broadcast %3 : vector<1x8xf32> to vector<8x8xf32>
    %83 = arith.addf %81, %82 : vector<8x8xf32>
    %cst_35 = arith.constant dense<0xFF800000> : vector<8xf32>
    %84 = vector.multi_reduction <maximumf>, %83, %cst_35 [1] : vector<8x8xf32> to vector<8xf32>
    %85 = vector.shape_cast %84 : vector<8xf32> to vector<8x1xf32>
    %86 = vector.broadcast %85 : vector<8x1xf32> to vector<8x8xf32>
    %87 = arith.subf %83, %86 : vector<8x8xf32>
    %88 = math.exp %87 : vector<8x8xf32>
    %cst_36 = arith.constant dense<0.000000e+00> : vector<8xf32>
    %89 = vector.multi_reduction <add>, %88, %cst_36 [1] : vector<8x8xf32> to vector<8xf32>
    %90 = vector.shape_cast %89 : vector<8xf32> to vector<8x1xf32>
    %91 = tpu.reciprocal %90 {approx = true} : vector<8x1xf32> -> vector<8x1xf32>
    %92 = vector.broadcast %91 : vector<8x1xf32> to vector<8x8xf32>
    %93 = arith.mulf %88, %92 : vector<8x8xf32>
    %94 = arith.truncf %93 : vector<8x8xf32> to vector<8x8xbf16>
    %cst_37 = arith.constant dense<0.000000e+00> : vector<8x16xf32>
    %95 = tpu.matmul %94, %78, %cst_37 {dimension_numbers = #tpu.dot_dimension_numbers<[1], [0], [0], [1], [0, 0, 1, 1], [], []>} : vector<8x8xbf16>, vector<8x16xbf16>, vector<8x16xf32> -> vector<8x16xf32>
    %96 = arith.truncf %95 : vector<8x16xf32> to vector<8x16xbf16>
    %97 = vector.extract_strided_slice %41 {offsets = [16, 0], sizes = [16, 32], strides = [1, 1]} : vector<32x32xf32> to vector<16x32xf32>
    %98 = arith.truncf %97 : vector<16x32xf32> to vector<16x32xbf16>
    %cst_38 = arith.constant dense<0.000000e+00> : vector<8x32xf32>
    %99 = tpu.matmul %96, %98, %cst_38 {dimension_numbers = #tpu.dot_dimension_numbers<[1], [0], [0], [1], [0, 0, 1, 1], [], []>} : vector<8x16xbf16>, vector<16x32xbf16>, vector<8x32xf32> -> vector<8x32xf32>
    %100 = arith.addf %72, %99 : vector<8x32xf32>
    %101 = vector.broadcast %43 : vector<1x32xf32> to vector<8x32xf32>
    %102 = arith.addf %100, %101 : vector<8x32xf32>
    %103 = arith.addf %27, %102 : vector<8x32xf32>
    %c0_39 = arith.constant 0 : index
    %c0_40 = arith.constant 0 : index
    %c0_41 = arith.constant 0 : index
    %104 = vector.load %arg9[%c0_39, %c0_40, %c0_41] : memref<2x1x32xf32, #tpu.memory_space<vmem>>, vector<1x1x32xf32>
    %105 = vector.shape_cast %104 : vector<1x1x32xf32> to vector<1x32xf32>
    %c0_42 = arith.constant 0 : index
    %c0_43 = arith.constant 0 : index
    %c0_44 = arith.constant 0 : index
    %106 = vector.load %arg10[%c0_42, %c0_43, %c0_44] : memref<2x1x32xf32, #tpu.memory_space<vmem>>, vector<1x1x32xf32>
    %107 = vector.shape_cast %106 : vector<1x1x32xf32> to vector<1x32xf32>
    %cst_45 = arith.constant dense<0.000000e+00> : vector<8xf32>
    %108 = vector.multi_reduction <add>, %103, %cst_45 [1] : vector<8x32xf32> to vector<8xf32>
    %109 = vector.shape_cast %108 : vector<8xf32> to vector<8x1xf32>
    %cst_46 = arith.constant 3.200000e+01 : f32
    %110 = vector.broadcast %cst_46 : f32 to vector<8x1xf32>
    %111 = arith.divf %109, %110 : vector<8x1xf32>
    %112 = vector.broadcast %111 : vector<8x1xf32> to vector<8x32xf32>
    %113 = arith.subf %103, %112 : vector<8x32xf32>
    %114 = arith.mulf %113, %113 : vector<8x32xf32>
    %cst_47 = arith.constant dense<0.000000e+00> : vector<8xf32>
    %115 = vector.multi_reduction <add>, %114, %cst_47 [1] : vector<8x32xf32> to vector<8xf32>
    %116 = vector.shape_cast %115 : vector<8xf32> to vector<8x1xf32>
    %cst_48 = arith.constant 3.200000e+01 : f32
    %117 = vector.broadcast %cst_48 : f32 to vector<8x1xf32>
    %118 = arith.divf %116, %117 : vector<8x1xf32>
    %119 = vector.broadcast %111 : vector<8x1xf32> to vector<8x32xf32>
    %120 = arith.subf %103, %119 : vector<8x32xf32>
    %cst_49 = arith.constant 9.99999974E-6 : f32
    %121 = vector.broadcast %cst_49 : f32 to vector<8x1xf32>
    %122 = arith.addf %118, %121 : vector<8x1xf32>
    %123 = math.rsqrt %122 : vector<8x1xf32>
    %124 = vector.broadcast %123 : vector<8x1xf32> to vector<8x32xf32>
    %125 = arith.mulf %120, %124 : vector<8x32xf32>
    %126 = vector.broadcast %105 : vector<1x32xf32> to vector<8x32xf32>
    %127 = arith.mulf %125, %126 : vector<8x32xf32>
    %128 = vector.broadcast %107 : vector<1x32xf32> to vector<8x32xf32>
    %129 = arith.addf %127, %128 : vector<8x32xf32>
    %c0_50 = arith.constant 0 : index
    %c0_51 = arith.constant 0 : index
    %c0_52 = arith.constant 0 : index
    %130 = vector.load %arg11[%c0_50, %c0_51, %c0_52] : memref<2x32x64xf32, #tpu.memory_space<vmem>>, vector<1x32x64xf32>
    %131 = vector.shape_cast %130 : vector<1x32x64xf32> to vector<32x64xf32>
    %132 = arith.truncf %129 : vector<8x32xf32> to vector<8x32xbf16>
    %133 = arith.truncf %131 : vector<32x64xf32> to vector<32x64xbf16>
    %cst_53 = arith.constant dense<0.000000e+00> : vector<8x64xf32>
    %134 = tpu.matmul %132, %133, %cst_53 {dimension_numbers = #tpu.dot_dimension_numbers<[1], [0], [0], [1], [0, 0, 1, 1], [], []>} : vector<8x32xbf16>, vector<32x64xbf16>, vector<8x64xf32> -> vector<8x64xf32>
    %c0_54 = arith.constant 0 : index
    %c0_55 = arith.constant 0 : index
    %c0_56 = arith.constant 0 : index
    %135 = vector.load %arg12[%c0_54, %c0_55, %c0_56] : memref<2x1x64xf32, #tpu.memory_space<vmem>>, vector<1x1x64xf32>
    %136 = vector.shape_cast %135 : vector<1x1x64xf32> to vector<1x64xf32>
    %137 = vector.broadcast %136 : vector<1x64xf32> to vector<8x64xf32>
    %138 = arith.addf %134, %137 : vector<8x64xf32>
    %cst_57 = arith.constant 5.000000e-01 : f32
    %139 = vector.broadcast %cst_57 : f32 to vector<8x64xf32>
    %140 = arith.mulf %139, %138 : vector<8x64xf32>
    %cst_58 = arith.constant 4.471500e-02 : f32
    %141 = vector.broadcast %cst_58 : f32 to vector<8x64xf32>
    %142 = arith.mulf %141, %138 : vector<8x64xf32>
    %143 = arith.mulf %142, %138 : vector<8x64xf32>
    %144 = arith.mulf %143, %138 : vector<8x64xf32>
    %145 = arith.addf %138, %144 : vector<8x64xf32>
    %cst_59 = arith.constant 0.797884583 : f32
    %146 = vector.broadcast %cst_59 : f32 to vector<8x64xf32>
    %147 = arith.mulf %146, %145 : vector<8x64xf32>
    %148 = math.tanh %147 : vector<8x64xf32>
    %cst_60 = arith.constant 1.000000e+00 : f32
    %149 = vector.broadcast %cst_60 : f32 to vector<8x64xf32>
    %150 = arith.addf %149, %148 : vector<8x64xf32>
    %151 = arith.mulf %140, %150 : vector<8x64xf32>
    %c0_61 = arith.constant 0 : index
    %c0_62 = arith.constant 0 : index
    %c0_63 = arith.constant 0 : index
    %152 = vector.load %arg13[%c0_61, %c0_62, %c0_63] : memref<2x64x32xf32, #tpu.memory_space<vmem>>, vector<1x64x32xf32>
    %153 = vector.shape_cast %152 : vector<1x64x32xf32> to vector<64x32xf32>
    %154 = arith.truncf %151 : vector<8x64xf32> to vector<8x64xbf16>
    %155 = arith.truncf %153 : vector<64x32xf32> to vector<64x32xbf16>
    %cst_64 = arith.constant dense<0.000000e+00> : vector<8x32xf32>
    %156 = tpu.matmul %154, %155, %cst_64 {dimension_numbers = #tpu.dot_dimension_numbers<[1], [0], [0], [1], [0, 0, 1, 1], [], []>} : vector<8x64xbf16>, vector<64x32xbf16>, vector<8x32xf32> -> vector<8x32xf32>
    %c0_65 = arith.constant 0 : index
    %c0_66 = arith.constant 0 : index
    %c0_67 = arith.constant 0 : index
    %157 = vector.load %arg14[%c0_65, %c0_66, %c0_67] : memref<2x1x32xf32, #tpu.memory_space<vmem>>, vector<1x1x32xf32>
    %158 = vector.shape_cast %157 : vector<1x1x32xf32> to vector<1x32xf32>
    %159 = vector.broadcast %158 : vector<1x32xf32> to vector<8x32xf32>
    %160 = arith.addf %156, %159 : vector<8x32xf32>
    %161 = arith.addf %129, %160 : vector<8x32xf32>
    %c0_68 = arith.constant 0 : index
    %c0_69 = arith.constant 0 : index
    %c0_70 = arith.constant 0 : index
    %162 = vector.load %arg15[%c0_68, %c0_69, %c0_70] : memref<2x1x32xf32, #tpu.memory_space<vmem>>, vector<1x1x32xf32>
    %163 = vector.shape_cast %162 : vector<1x1x32xf32> to vector<1x32xf32>
    %c0_71 = arith.constant 0 : index
    %c0_72 = arith.constant 0 : index
    %c0_73 = arith.constant 0 : index
    %164 = vector.load %arg16[%c0_71, %c0_72, %c0_73] : memref<2x1x32xf32, #tpu.memory_space<vmem>>, vector<1x1x32xf32>
    %165 = vector.shape_cast %164 : vector<1x1x32xf32> to vector<1x32xf32>
    %cst_74 = arith.constant dense<0.000000e+00> : vector<8xf32>
    %166 = vector.multi_reduction <add>, %161, %cst_74 [1] : vector<8x32xf32> to vector<8xf32>
    %167 = vector.shape_cast %166 : vector<8xf32> to vector<8x1xf32>
    %cst_75 = arith.constant 3.200000e+01 : f32
    %168 = vector.broadcast %cst_75 : f32 to vector<8x1xf32>
    %169 = arith.divf %167, %168 : vector<8x1xf32>
    %170 = vector.broadcast %169 : vector<8x1xf32> to vector<8x32xf32>
    %171 = arith.subf %161, %170 : vector<8x32xf32>
    %172 = arith.mulf %171, %171 : vector<8x32xf32>
    %cst_76 = arith.constant dense<0.000000e+00> : vector<8xf32>
    %173 = vector.multi_reduction <add>, %172, %cst_76 [1] : vector<8x32xf32> to vector<8xf32>
    %174 = vector.shape_cast %173 : vector<8xf32> to vector<8x1xf32>
    %cst_77 = arith.constant 3.200000e+01 : f32
    %175 = vector.broadcast %cst_77 : f32 to vector<8x1xf32>
    %176 = arith.divf %174, %175 : vector<8x1xf32>
    %177 = vector.broadcast %169 : vector<8x1xf32> to vector<8x32xf32>
    %178 = arith.subf %161, %177 : vector<8x32xf32>
    %cst_78 = arith.constant 9.99999974E-6 : f32
    %179 = vector.broadcast %cst_78 : f32 to vector<8x1xf32>
    %180 = arith.addf %176, %179 : vector<8x1xf32>
    %181 = math.rsqrt %180 : vector<8x1xf32>
    %182 = vector.broadcast %181 : vector<8x1xf32> to vector<8x32xf32>
    %183 = arith.mulf %178, %182 : vector<8x32xf32>
    %184 = vector.broadcast %163 : vector<1x32xf32> to vector<8x32xf32>
    %185 = arith.mulf %183, %184 : vector<8x32xf32>
    %186 = vector.broadcast %165 : vector<1x32xf32> to vector<8x32xf32>
    %187 = arith.addf %185, %186 : vector<8x32xf32>
    %c1 = arith.constant 1 : index
    %c0_79 = arith.constant 0 : index
    %c0_80 = arith.constant 0 : index
    %188 = vector.load %arg5[%c1, %c0_79, %c0_80] : memref<2x32x96xf32, #tpu.memory_space<vmem>>, vector<1x32x96xf32>
    %189 = vector.shape_cast %188 : vector<1x32x96xf32> to vector<32x96xf32>
    %190 = arith.truncf %187 : vector<8x32xf32> to vector<8x32xbf16>
    %191 = arith.truncf %189 : vector<32x96xf32> to vector<32x96xbf16>
    %cst_81 = arith.constant dense<0.000000e+00> : vector<8x96xf32>
    %192 = tpu.matmul %190, %191, %cst_81 {dimension_numbers = #tpu.dot_dimension_numbers<[1], [0], [0], [1], [0, 0, 1, 1], [], []>} : vector<8x32xbf16>, vector<32x96xbf16>, vector<8x96xf32> -> vector<8x96xf32>
    %c1_82 = arith.constant 1 : index
    %c0_83 = arith.constant 0 : index
    %c0_84 = arith.constant 0 : index
    %193 = vector.load %arg6[%c1_82, %c0_83, %c0_84] : memref<2x1x96xf32, #tpu.memory_space<vmem>>, vector<1x1x96xf32>
    %194 = vector.shape_cast %193 : vector<1x1x96xf32> to vector<1x96xf32>
    %195 = vector.broadcast %194 : vector<1x96xf32> to vector<8x96xf32>
    %196 = arith.addf %192, %195 : vector<8x96xf32>
    %197 = vector.extract_strided_slice %196 {offsets = [0, 0], sizes = [8, 32], strides = [1, 1]} : vector<8x96xf32> to vector<8x32xf32>
    %198 = vector.extract_strided_slice %196 {offsets = [0, 32], sizes = [8, 32], strides = [1, 1]} : vector<8x96xf32> to vector<8x32xf32>
    %199 = vector.extract_strided_slice %196 {offsets = [0, 64], sizes = [8, 32], strides = [1, 1]} : vector<8x96xf32> to vector<8x32xf32>
    %c1_85 = arith.constant 1 : index
    %c0_86 = arith.constant 0 : index
    %c0_87 = arith.constant 0 : index
    %200 = vector.load %arg7[%c1_85, %c0_86, %c0_87] : memref<2x32x32xf32, #tpu.memory_space<vmem>>, vector<1x32x32xf32>
    %201 = vector.shape_cast %200 : vector<1x32x32xf32> to vector<32x32xf32>
    %c1_88 = arith.constant 1 : index
    %c0_89 = arith.constant 0 : index
    %c0_90 = arith.constant 0 : index
    %202 = vector.load %arg8[%c1_88, %c0_89, %c0_90] : memref<2x1x32xf32, #tpu.memory_space<vmem>>, vector<1x1x32xf32>
    %203 = vector.shape_cast %202 : vector<1x1x32xf32> to vector<1x32xf32>
    %cst_91 = arith.constant 0.000000e+00 : f32
    %204 = vector.broadcast %cst_91 : f32 to vector<8x32xf32>
    %205 = vector.extract_strided_slice %197 {offsets = [0, 0], sizes = [8, 16], strides = [1, 1]} : vector<8x32xf32> to vector<8x16xf32>
    %206 = arith.truncf %205 : vector<8x16xf32> to vector<8x16xbf16>
    %207 = vector.extract_strided_slice %198 {offsets = [0, 0], sizes = [8, 16], strides = [1, 1]} : vector<8x32xf32> to vector<8x16xf32>
    %208 = arith.truncf %207 : vector<8x16xf32> to vector<8x16xbf16>
    %209 = vector.extract_strided_slice %199 {offsets = [0, 0], sizes = [8, 16], strides = [1, 1]} : vector<8x32xf32> to vector<8x16xf32>
    %210 = arith.truncf %209 : vector<8x16xf32> to vector<8x16xbf16>
    %cst_92 = arith.constant dense<0.000000e+00> : vector<8x8xf32>
    %211 = tpu.matmul %206, %208, %cst_92 {dimension_numbers = #tpu.dot_dimension_numbers<[1], [1], [0], [0], [0, 0, 1, 0], [], []>} : vector<8x16xbf16>, vector<8x16xbf16>, vector<8x8xf32> -> vector<8x8xf32>
    %cst_93 = arith.constant 2.500000e-01 : f32
    %212 = vector.broadcast %cst_93 : f32 to vector<8x8xf32>
    %213 = arith.mulf %211, %212 : vector<8x8xf32>
    %214 = vector.broadcast %3 : vector<1x8xf32> to vector<8x8xf32>
    %215 = arith.addf %213, %214 : vector<8x8xf32>
    %cst_94 = arith.constant dense<0xFF800000> : vector<8xf32>
    %216 = vector.multi_reduction <maximumf>, %215, %cst_94 [1] : vector<8x8xf32> to vector<8xf32>
    %217 = vector.shape_cast %216 : vector<8xf32> to vector<8x1xf32>
    %218 = vector.broadcast %217 : vector<8x1xf32> to vector<8x8xf32>
    %219 = arith.subf %215, %218 : vector<8x8xf32>
    %220 = math.exp %219 : vector<8x8xf32>
    %cst_95 = arith.constant dense<0.000000e+00> : vector<8xf32>
    %221 = vector.multi_reduction <add>, %220, %cst_95 [1] : vector<8x8xf32> to vector<8xf32>
    %222 = vector.shape_cast %221 : vector<8xf32> to vector<8x1xf32>
    %223 = tpu.reciprocal %222 {approx = true} : vector<8x1xf32> -> vector<8x1xf32>
    %224 = vector.broadcast %223 : vector<8x1xf32> to vector<8x8xf32>
    %225 = arith.mulf %220, %224 : vector<8x8xf32>
    %226 = arith.truncf %225 : vector<8x8xf32> to vector<8x8xbf16>
    %cst_96 = arith.constant dense<0.000000e+00> : vector<8x16xf32>
    %227 = tpu.matmul %226, %210, %cst_96 {dimension_numbers = #tpu.dot_dimension_numbers<[1], [0], [0], [1], [0, 0, 1, 1], [], []>} : vector<8x8xbf16>, vector<8x16xbf16>, vector<8x16xf32> -> vector<8x16xf32>
    %228 = arith.truncf %227 : vector<8x16xf32> to vector<8x16xbf16>
    %229 = vector.extract_strided_slice %201 {offsets = [0, 0], sizes = [16, 32], strides = [1, 1]} : vector<32x32xf32> to vector<16x32xf32>
    %230 = arith.truncf %229 : vector<16x32xf32> to vector<16x32xbf16>
    %cst_97 = arith.constant dense<0.000000e+00> : vector<8x32xf32>
    %231 = tpu.matmul %228, %230, %cst_97 {dimension_numbers = #tpu.dot_dimension_numbers<[1], [0], [0], [1], [0, 0, 1, 1], [], []>} : vector<8x16xbf16>, vector<16x32xbf16>, vector<8x32xf32> -> vector<8x32xf32>
    %232 = arith.addf %204, %231 : vector<8x32xf32>
    %233 = vector.extract_strided_slice %197 {offsets = [0, 16], sizes = [8, 16], strides = [1, 1]} : vector<8x32xf32> to vector<8x16xf32>
    %234 = arith.truncf %233 : vector<8x16xf32> to vector<8x16xbf16>
    %235 = vector.extract_strided_slice %198 {offsets = [0, 16], sizes = [8, 16], strides = [1, 1]} : vector<8x32xf32> to vector<8x16xf32>
    %236 = arith.truncf %235 : vector<8x16xf32> to vector<8x16xbf16>
    %237 = vector.extract_strided_slice %199 {offsets = [0, 16], sizes = [8, 16], strides = [1, 1]} : vector<8x32xf32> to vector<8x16xf32>
    %238 = arith.truncf %237 : vector<8x16xf32> to vector<8x16xbf16>
    %cst_98 = arith.constant dense<0.000000e+00> : vector<8x8xf32>
    %239 = tpu.matmul %234, %236, %cst_98 {dimension_numbers = #tpu.dot_dimension_numbers<[1], [1], [0], [0], [0, 0, 1, 0], [], []>} : vector<8x16xbf16>, vector<8x16xbf16>, vector<8x8xf32> -> vector<8x8xf32>
    %cst_99 = arith.constant 2.500000e-01 : f32
    %240 = vector.broadcast %cst_99 : f32 to vector<8x8xf32>
    %241 = arith.mulf %239, %240 : vector<8x8xf32>
    %242 = vector.broadcast %3 : vector<1x8xf32> to vector<8x8xf32>
    %243 = arith.addf %241, %242 : vector<8x8xf32>
    %cst_100 = arith.constant dense<0xFF800000> : vector<8xf32>
    %244 = vector.multi_reduction <maximumf>, %243, %cst_100 [1] : vector<8x8xf32> to vector<8xf32>
    %245 = vector.shape_cast %244 : vector<8xf32> to vector<8x1xf32>
    %246 = vector.broadcast %245 : vector<8x1xf32> to vector<8x8xf32>
    %247 = arith.subf %243, %246 : vector<8x8xf32>
    %248 = math.exp %247 : vector<8x8xf32>
    %cst_101 = arith.constant dense<0.000000e+00> : vector<8xf32>
    %249 = vector.multi_reduction <add>, %248, %cst_101 [1] : vector<8x8xf32> to vector<8xf32>
    %250 = vector.shape_cast %249 : vector<8xf32> to vector<8x1xf32>
    %251 = tpu.reciprocal %250 {approx = true} : vector<8x1xf32> -> vector<8x1xf32>
    %252 = vector.broadcast %251 : vector<8x1xf32> to vector<8x8xf32>
    %253 = arith.mulf %248, %252 : vector<8x8xf32>
    %254 = arith.truncf %253 : vector<8x8xf32> to vector<8x8xbf16>
    %cst_102 = arith.constant dense<0.000000e+00> : vector<8x16xf32>
    %255 = tpu.matmul %254, %238, %cst_102 {dimension_numbers = #tpu.dot_dimension_numbers<[1], [0], [0], [1], [0, 0, 1, 1], [], []>} : vector<8x8xbf16>, vector<8x16xbf16>, vector<8x16xf32> -> vector<8x16xf32>
    %256 = arith.truncf %255 : vector<8x16xf32> to vector<8x16xbf16>
    %257 = vector.extract_strided_slice %201 {offsets = [16, 0], sizes = [16, 32], strides = [1, 1]} : vector<32x32xf32> to vector<16x32xf32>
    %258 = arith.truncf %257 : vector<16x32xf32> to vector<16x32xbf16>
    %cst_103 = arith.constant dense<0.000000e+00> : vector<8x32xf32>
    %259 = tpu.matmul %256, %258, %cst_103 {dimension_numbers = #tpu.dot_dimension_numbers<[1], [0], [0], [1], [0, 0, 1, 1], [], []>} : vector<8x16xbf16>, vector<16x32xbf16>, vector<8x32xf32> -> vector<8x32xf32>
    %260 = arith.addf %232, %259 : vector<8x32xf32>
    %261 = vector.broadcast %203 : vector<1x32xf32> to vector<8x32xf32>
    %262 = arith.addf %260, %261 : vector<8x32xf32>
    %263 = arith.addf %187, %262 : vector<8x32xf32>
    %c1_104 = arith.constant 1 : index
    %c0_105 = arith.constant 0 : index
    %c0_106 = arith.constant 0 : index
    %264 = vector.load %arg9[%c1_104, %c0_105, %c0_106] : memref<2x1x32xf32, #tpu.memory_space<vmem>>, vector<1x1x32xf32>
    %265 = vector.shape_cast %264 : vector<1x1x32xf32> to vector<1x32xf32>
    %c1_107 = arith.constant 1 : index
    %c0_108 = arith.constant 0 : index
    %c0_109 = arith.constant 0 : index
    %266 = vector.load %arg10[%c1_107, %c0_108, %c0_109] : memref<2x1x32xf32, #tpu.memory_space<vmem>>, vector<1x1x32xf32>
    %267 = vector.shape_cast %266 : vector<1x1x32xf32> to vector<1x32xf32>
    %cst_110 = arith.constant dense<0.000000e+00> : vector<8xf32>
    %268 = vector.multi_reduction <add>, %263, %cst_110 [1] : vector<8x32xf32> to vector<8xf32>
    %269 = vector.shape_cast %268 : vector<8xf32> to vector<8x1xf32>
    %cst_111 = arith.constant 3.200000e+01 : f32
    %270 = vector.broadcast %cst_111 : f32 to vector<8x1xf32>
    %271 = arith.divf %269, %270 : vector<8x1xf32>
    %272 = vector.broadcast %271 : vector<8x1xf32> to vector<8x32xf32>
    %273 = arith.subf %263, %272 : vector<8x32xf32>
    %274 = arith.mulf %273, %273 : vector<8x32xf32>
    %cst_112 = arith.constant dense<0.000000e+00> : vector<8xf32>
    %275 = vector.multi_reduction <add>, %274, %cst_112 [1] : vector<8x32xf32> to vector<8xf32>
    %276 = vector.shape_cast %275 : vector<8xf32> to vector<8x1xf32>
    %cst_113 = arith.constant 3.200000e+01 : f32
    %277 = vector.broadcast %cst_113 : f32 to vector<8x1xf32>
    %278 = arith.divf %276, %277 : vector<8x1xf32>
    %279 = vector.broadcast %271 : vector<8x1xf32> to vector<8x32xf32>
    %280 = arith.subf %263, %279 : vector<8x32xf32>
    %cst_114 = arith.constant 9.99999974E-6 : f32
    %281 = vector.broadcast %cst_114 : f32 to vector<8x1xf32>
    %282 = arith.addf %278, %281 : vector<8x1xf32>
    %283 = math.rsqrt %282 : vector<8x1xf32>
    %284 = vector.broadcast %283 : vector<8x1xf32> to vector<8x32xf32>
    %285 = arith.mulf %280, %284 : vector<8x32xf32>
    %286 = vector.broadcast %265 : vector<1x32xf32> to vector<8x32xf32>
    %287 = arith.mulf %285, %286 : vector<8x32xf32>
    %288 = vector.broadcast %267 : vector<1x32xf32> to vector<8x32xf32>
    %289 = arith.addf %287, %288 : vector<8x32xf32>
    %c1_115 = arith.constant 1 : index
    %c0_116 = arith.constant 0 : index
    %c0_117 = arith.constant 0 : index
    %290 = vector.load %arg11[%c1_115, %c0_116, %c0_117] : memref<2x32x64xf32, #tpu.memory_space<vmem>>, vector<1x32x64xf32>
    %291 = vector.shape_cast %290 : vector<1x32x64xf32> to vector<32x64xf32>
    %292 = arith.truncf %289 : vector<8x32xf32> to vector<8x32xbf16>
    %293 = arith.truncf %291 : vector<32x64xf32> to vector<32x64xbf16>
    %cst_118 = arith.constant dense<0.000000e+00> : vector<8x64xf32>
    %294 = tpu.matmul %292, %293, %cst_118 {dimension_numbers = #tpu.dot_dimension_numbers<[1], [0], [0], [1], [0, 0, 1, 1], [], []>} : vector<8x32xbf16>, vector<32x64xbf16>, vector<8x64xf32> -> vector<8x64xf32>
    %c1_119 = arith.constant 1 : index
    %c0_120 = arith.constant 0 : index
    %c0_121 = arith.constant 0 : index
    %295 = vector.load %arg12[%c1_119, %c0_120, %c0_121] : memref<2x1x64xf32, #tpu.memory_space<vmem>>, vector<1x1x64xf32>
    %296 = vector.shape_cast %295 : vector<1x1x64xf32> to vector<1x64xf32>
    %297 = vector.broadcast %296 : vector<1x64xf32> to vector<8x64xf32>
    %298 = arith.addf %294, %297 : vector<8x64xf32>
    %cst_122 = arith.constant 5.000000e-01 : f32
    %299 = vector.broadcast %cst_122 : f32 to vector<8x64xf32>
    %300 = arith.mulf %299, %298 : vector<8x64xf32>
    %cst_123 = arith.constant 4.471500e-02 : f32
    %301 = vector.broadcast %cst_123 : f32 to vector<8x64xf32>
    %302 = arith.mulf %301, %298 : vector<8x64xf32>
    %303 = arith.mulf %302, %298 : vector<8x64xf32>
    %304 = arith.mulf %303, %298 : vector<8x64xf32>
    %305 = arith.addf %298, %304 : vector<8x64xf32>
    %cst_124 = arith.constant 0.797884583 : f32
    %306 = vector.broadcast %cst_124 : f32 to vector<8x64xf32>
    %307 = arith.mulf %306, %305 : vector<8x64xf32>
    %308 = math.tanh %307 : vector<8x64xf32>
    %cst_125 = arith.constant 1.000000e+00 : f32
    %309 = vector.broadcast %cst_125 : f32 to vector<8x64xf32>
    %310 = arith.addf %309, %308 : vector<8x64xf32>
    %311 = arith.mulf %300, %310 : vector<8x64xf32>
    %c1_126 = arith.constant 1 : index
    %c0_127 = arith.constant 0 : index
    %c0_128 = arith.constant 0 : index
    %312 = vector.load %arg13[%c1_126, %c0_127, %c0_128] : memref<2x64x32xf32, #tpu.memory_space<vmem>>, vector<1x64x32xf32>
    %313 = vector.shape_cast %312 : vector<1x64x32xf32> to vector<64x32xf32>
    %314 = arith.truncf %311 : vector<8x64xf32> to vector<8x64xbf16>
    %315 = arith.truncf %313 : vector<64x32xf32> to vector<64x32xbf16>
    %cst_129 = arith.constant dense<0.000000e+00> : vector<8x32xf32>
    %316 = tpu.matmul %314, %315, %cst_129 {dimension_numbers = #tpu.dot_dimension_numbers<[1], [0], [0], [1], [0, 0, 1, 1], [], []>} : vector<8x64xbf16>, vector<64x32xbf16>, vector<8x32xf32> -> vector<8x32xf32>
    %c1_130 = arith.constant 1 : index
    %c0_131 = arith.constant 0 : index
    %c0_132 = arith.constant 0 : index
    %317 = vector.load %arg14[%c1_130, %c0_131, %c0_132] : memref<2x1x32xf32, #tpu.memory_space<vmem>>, vector<1x1x32xf32>
    %318 = vector.shape_cast %317 : vector<1x1x32xf32> to vector<1x32xf32>
    %319 = vector.broadcast %318 : vector<1x32xf32> to vector<8x32xf32>
    %320 = arith.addf %316, %319 : vector<8x32xf32>
    %321 = arith.addf %289, %320 : vector<8x32xf32>
    %c1_133 = arith.constant 1 : index
    %c0_134 = arith.constant 0 : index
    %c0_135 = arith.constant 0 : index
    %322 = vector.load %arg15[%c1_133, %c0_134, %c0_135] : memref<2x1x32xf32, #tpu.memory_space<vmem>>, vector<1x1x32xf32>
    %323 = vector.shape_cast %322 : vector<1x1x32xf32> to vector<1x32xf32>
    %c1_136 = arith.constant 1 : index
    %c0_137 = arith.constant 0 : index
    %c0_138 = arith.constant 0 : index
    %324 = vector.load %arg16[%c1_136, %c0_137, %c0_138] : memref<2x1x32xf32, #tpu.memory_space<vmem>>, vector<1x1x32xf32>
    %325 = vector.shape_cast %324 : vector<1x1x32xf32> to vector<1x32xf32>
    %cst_139 = arith.constant dense<0.000000e+00> : vector<8xf32>
    %326 = vector.multi_reduction <add>, %321, %cst_139 [1] : vector<8x32xf32> to vector<8xf32>
    %327 = vector.shape_cast %326 : vector<8xf32> to vector<8x1xf32>
    %cst_140 = arith.constant 3.200000e+01 : f32
    %328 = vector.broadcast %cst_140 : f32 to vector<8x1xf32>
    %329 = arith.divf %327, %328 : vector<8x1xf32>
    %330 = vector.broadcast %329 : vector<8x1xf32> to vector<8x32xf32>
    %331 = arith.subf %321, %330 : vector<8x32xf32>
    %332 = arith.mulf %331, %331 : vector<8x32xf32>
    %cst_141 = arith.constant dense<0.000000e+00> : vector<8xf32>
    %333 = vector.multi_reduction <add>, %332, %cst_141 [1] : vector<8x32xf32> to vector<8xf32>
    %334 = vector.shape_cast %333 : vector<8xf32> to vector<8x1xf32>
    %cst_142 = arith.constant 3.200000e+01 : f32
    %335 = vector.broadcast %cst_142 : f32 to vector<8x1xf32>
    %336 = arith.divf %334, %335 : vector<8x1xf32>
    %337 = vector.broadcast %329 : vector<8x1xf32> to vector<8x32xf32>
    %338 = arith.subf %321, %337 : vector<8x32xf32>
    %cst_143 = arith.constant 9.99999974E-6 : f32
    %339 = vector.broadcast %cst_143 : f32 to vector<8x1xf32>
    %340 = arith.addf %336, %339 : vector<8x1xf32>
    %341 = math.rsqrt %340 : vector<8x1xf32>
    %342 = vector.broadcast %341 : vector<8x1xf32> to vector<8x32xf32>
    %343 = arith.mulf %338, %342 : vector<8x32xf32>
    %344 = vector.broadcast %323 : vector<1x32xf32> to vector<8x32xf32>
    %345 = arith.mulf %343, %344 : vector<8x32xf32>
    %346 = vector.broadcast %325 : vector<1x32xf32> to vector<8x32xf32>
    %347 = arith.addf %345, %346 : vector<8x32xf32>
    %c0_144 = arith.constant 0 : index
    %c0_145 = arith.constant 0 : index
    %c0_146 = arith.constant 0 : index
    %348 = vector.load %arg17[%c0_144, %c0_145, %c0_146] : memref<1x8x32xf32, #tpu.memory_space<vmem>>, vector<1x8x32xf32>
    %349 = vector.shape_cast %348 : vector<1x8x32xf32> to vector<8x32xf32>
    %350 = vector.shape_cast %347 : vector<8x32xf32> to vector<1x8x32xf32>
    tpu.vector_store %arg17[%c0_144, %c0_145, %c0_146], %350 {strides = array<i32>} : memref<1x8x32xf32, #tpu.memory_space<vmem>>, vector<1x8x32xf32>,
    return
  }
  func.func @transform_0(%arg0: i32) -> (i32, i32, i32) {
    %c0_i32 = arith.constant 0 : i32
    %c0_i32_0 = arith.constant 0 : i32
    %c0_i32_1 = arith.constant 0 : i32
    return %arg0, %c0_i32, %c0_i32_0 : i32, i32, i32
  }
  func.func @transform_1(%arg0: i32) -> (i32, i32, i32) {
    %c0_i32 = arith.constant 0 : i32
    %c0_i32_0 = arith.constant 0 : i32
    %c0_i32_1 = arith.constant 0 : i32
    return %arg0, %c0_i32, %c0_i32_0 : i32, i32, i32
  }
  func.func @transform_2(%arg0: i32) -> (i32, i32) {
    %c0_i32 = arith.constant 0 : i32
    %c0_i32_0 = arith.constant 0 : i32
    %c0_i32_1 = arith.constant 0 : i32
    return %c0_i32, %c0_i32_0 : i32, i32
  }
  func.func @transform_3(%arg0: i32) -> (i32, i32) {
    %c0_i32 = arith.constant 0 : i32
    %c0_i32_0 = arith.constant 0 : i32
    %c0_i32_1 = arith.constant 0 : i32
    return %c0_i32, %c0_i32_0 : i32, i32
  }
  func.func @transform_4(%arg0: i32) -> (i32, i32, i32) {
    %c0_i32 = arith.constant 0 : i32
    %c0_i32_0 = arith.constant 0 : i32
    %c0_i32_1 = arith.constant 0 : i32
    %c0_i32_2 = arith.constant 0 : i32
    return %c0_i32, %c0_i32_0, %c0_i32_1 : i32, i32, i32
  }
  func.func @transform_5(%arg0: i32) -> (i32, i32, i32) {
    %c0_i32 = arith.constant 0 : i32
    %c0_i32_0 = arith.constant 0 : i32
    %c0_i32_1 = arith.constant 0 : i32
    %c0_i32_2 = arith.constant 0 : i32
    return %c0_i32, %c0_i32_0, %c0_i32_1 : i32, i32, i32
  }
  func.func @transform_6(%arg0: i32) -> (i32, i32, i32) {
    %c0_i32 = arith.constant 0 : i32
    %c0_i32_0 = arith.constant 0 : i32
    %c0_i32_1 = arith.constant 0 : i32
    %c0_i32_2 = arith.constant 0 : i32
    return %c0_i32, %c0_i32_0, %c0_i32_1 : i32, i32, i32
  }
  func.func @transform_7(%arg0: i32) -> (i32, i32, i32) {
    %c0_i32 = arith.constant 0 : i32
    %c0_i32_0 = arith.constant 0 : i32
    %c0_i32_1 = arith.constant 0 : i32
    %c0_i32_2 = arith.constant 0 : i32
    return %c0_i32, %c0_i32_0, %c0_i32_1 : i32, i32, i32
  }
  func.func @transform_8(%arg0: i32) -> (i32, i32, i32) {
    %c0_i32 = arith.constant 0 : i32
    %c0_i32_0 = arith.constant 0 : i32
    %c0_i32_1 = arith.constant 0 : i32
    %c0_i32_2 = arith.constant 0 : i32
    return %c0_i32, %c0_i32_0, %c0_i32_1 : i32, i32, i32
  }
  func.func @transform_9(%arg0: i32) -> (i32, i32, i32) {
    %c0_i32 = arith.constant 0 : i32
    %c0_i32_0 = arith.constant 0 : i32
    %c0_i32_1 = arith.constant 0 : i32
    %c0_i32_2 = arith.constant 0 : i32
    return %c0_i32, %c0_i32_0, %c0_i32_1 : i32, i32, i32
  }
  func.func @transform_10(%arg0: i32) -> (i32, i32, i32) {
    %c0_i32 = arith.constant 0 : i32
    %c0_i32_0 = arith.constant 0 : i32
    %c0_i32_1 = arith.constant 0 : i32
    %c0_i32_2 = arith.constant 0 : i32
    return %c0_i32, %c0_i32_0, %c0_i32_1 : i32, i32, i32
  }
  func.func @transform_11(%arg0: i32) -> (i32, i32, i32) {
    %c0_i32 = arith.constant 0 : i32
    %c0_i32_0 = arith.constant 0 : i32
    %c0_i32_1 = arith.constant 0 : i32
    %c0_i32_2 = arith.constant 0 : i32
    return %c0_i32, %c0_i32_0, %c0_i32_1 : i32, i32, i32
  }
  func.func @transform_12(%arg0: i32) -> (i32, i32, i32) {
    %c0_i32 = arith.constant 0 : i32
    %c0_i32_0 = arith.constant 0 : i32
    %c0_i32_1 = arith.constant 0 : i32
    %c0_i32_2 = arith.constant 0 : i32
    return %c0_i32, %c0_i32_0, %c0_i32_1 : i32, i32, i32
  }
  func.func @transform_13(%arg0: i32) -> (i32, i32, i32) {
    %c0_i32 = arith.constant 0 : i32
    %c0_i32_0 = arith.constant 0 : i32
    %c0_i32_1 = arith.constant 0 : i32
    %c0_i32_2 = arith.constant 0 : i32
    return %c0_i32, %c0_i32_0, %c0_i32_1 : i32, i32, i32
  }
  func.func @transform_14(%arg0: i32) -> (i32, i32, i32) {
    %c0_i32 = arith.constant 0 : i32
    %c0_i32_0 = arith.constant 0 : i32
    %c0_i32_1 = arith.constant 0 : i32
    %c0_i32_2 = arith.constant 0 : i32
    return %c0_i32, %c0_i32_0, %c0_i32_1 : i32, i32, i32
  }
  func.func @transform_15(%arg0: i32) -> (i32, i32, i32) {
    %c0_i32 = arith.constant 0 : i32
    %c0_i32_0 = arith.constant 0 : i32
    %c0_i32_1 = arith.constant 0 : i32
    %c0_i32_2 = arith.constant 0 : i32
    return %c0_i32, %c0_i32_0, %c0_i32_1 : i32, i32, i32
  }
  func.func @transform_16(%arg0: i32) -> (i32, i32, i32) {
    %c0_i32 = arith.constant 0 : i32
    %c0_i32_0 = arith.constant 0 : i32
    %c0_i32_1 = arith.constant 0 : i32
    return %arg0, %c0_i32, %c0_i32_0 : i32, i32, i32
  }
}

module attributes {stable_mosaic.version = 11 : i64} {
  func.func @_decoder_kernel(%arg0: i32, %arg1: memref<1x8x32xf32, #tpu.memory_space<vmem>>, %arg2: memref<1x8x32xf32, #tpu.memory_space<vmem>>, %arg3: memref<1x1x8xf32, #tpu.memory_space<vmem>>, %arg4: memref<1x32xf32, #tpu.memory_space<vmem>>, %arg5: memref<1x32xf32, #tpu.memory_space<vmem>>, %arg6: memref<2x32x96xf32, #tpu.memory_space<vmem>>, %arg7: memref<2x1x96xf32, #tpu.memory_space<vmem>>, %arg8: memref<2x32x32xf32, #tpu.memory_space<vmem>>, %arg9: memref<2x1x32xf32, #tpu.memory_space<vmem>>, %arg10: memref<2x1x32xf32, #tpu.memory_space<vmem>>, %arg11: memref<2x1x32xf32, #tpu.memory_space<vmem>>, %arg12: memref<2x32x32xf32, #tpu.memory_space<vmem>>, %arg13: memref<2x1x32xf32, #tpu.memory_space<vmem>>, %arg14: memref<2x32x64xf32, #tpu.memory_space<vmem>>, %arg15: memref<2x1x64xf32, #tpu.memory_space<vmem>>, %arg16: memref<2x32x32xf32, #tpu.memory_space<vmem>>, %arg17: memref<2x1x32xf32, #tpu.memory_space<vmem>>, %arg18: memref<2x1x32xf32, #tpu.memory_space<vmem>>, %arg19: memref<2x1x32xf32, #tpu.memory_space<vmem>>, %arg20: memref<2x32x64xf32, #tpu.memory_space<vmem>>, %arg21: memref<2x1x64xf32, #tpu.memory_space<vmem>>, %arg22: memref<2x64x32xf32, #tpu.memory_space<vmem>>, %arg23: memref<2x1x32xf32, #tpu.memory_space<vmem>>, %arg24: memref<2x1x32xf32, #tpu.memory_space<vmem>>, %arg25: memref<2x1x32xf32, #tpu.memory_space<vmem>>, %arg26: memref<32x128xf32, #tpu.memory_space<vmem>>, %arg27: memref<1x128xf32, #tpu.memory_space<vmem>>, %arg28: memref<1x8x128xf32, #tpu.memory_space<vmem>>) attributes {dimension_semantics = [#tpu.dimension_semantics<parallel>], iteration_bounds = array<i64: 2>, scalar_prefetch = 0 : i64, scratch_operands = 0 : i64, tpu.core_type = #tpu.core_type<tc>, window_params = [{transform_indices = @transform_0, window_bounds = array<i64: 1, 8, 32>}, {transform_indices = @transform_1, window_bounds = array<i64: 1, 8, 32>}, {transform_indices = @transform_2, window_bounds = array<i64: 1, 1, 8>}, {pipeline_mode = #tpu.pipeline_mode<synchronous>, transform_indices = @transform_3, window_bounds = array<i64: 1, 32>}, {pipeline_mode = #tpu.pipeline_mode<synchronous>, transform_indices = @transform_4, window_bounds = array<i64: 1, 32>}, {pipeline_mode = #tpu.pipeline_mode<synchronous>, transform_indices = @transform_5, window_bounds = array<i64: 2, 32, 96>}, {pipeline_mode = #tpu.pipeline_mode<synchronous>, transform_indices = @transform_6, window_bounds = array<i64: 2, 1, 96>}, {pipeline_mode = #tpu.pipeline_mode<synchronous>, transform_indices = @transform_7, window_bounds = array<i64: 2, 32, 32>}, {pipeline_mode = #tpu.pipeline_mode<synchronous>, transform_indices = @transform_8, window_bounds = array<i64: 2, 1, 32>}, {pipeline_mode = #tpu.pipeline_mode<synchronous>, transform_indices = @transform_9, window_bounds = array<i64: 2, 1, 32>}, {pipeline_mode = #tpu.pipeline_mode<synchronous>, transform_indices = @transform_10, window_bounds = array<i64: 2, 1, 32>}, {pipeline_mode = #tpu.pipeline_mode<synchronous>, transform_indices = @transform_11, window_bounds = array<i64: 2, 32, 32>}, {pipeline_mode = #tpu.pipeline_mode<synchronous>, transform_indices = @transform_12, window_bounds = array<i64: 2, 1, 32>}, {pipeline_mode = #tpu.pipeline_mode<synchronous>, transform_indices = @transform_13, window_bounds = array<i64: 2, 32, 64>}, {pipeline_mode = #tpu.pipeline_mode<synchronous>, transform_indices = @transform_14, window_bounds = array<i64: 2, 1, 64>}, {pipeline_mode = #tpu.pipeline_mode<synchronous>, transform_indices = @transform_15, window_bounds = array<i64: 2, 32, 32>}, {pipeline_mode = #tpu.pipeline_mode<synchronous>, transform_indices = @transform_16, window_bounds = array<i64: 2, 1, 32>}, {pipeline_mode = #tpu.pipeline_mode<synchronous>, transform_indices = @transform_17, window_bounds = array<i64: 2, 1, 32>}, {pipeline_mode = #tpu.pipeline_mode<synchronous>, transform_indices = @transform_18, window_bounds = array<i64: 2, 1, 32>}, {pipeline_mode = #tpu.pipeline_mode<synchronous>, transform_indices = @transform_19, window_bounds = array<i64: 2, 32, 64>}, {pipeline_mode = #tpu.pipeline_mode<synchronous>, transform_indices = @transform_20, window_bounds = array<i64: 2, 1, 64>}, {pipeline_mode = #tpu.pipeline_mode<synchronous>, transform_indices = @transform_21, window_bounds = array<i64: 2, 64, 32>}, {pipeline_mode = #tpu.pipeline_mode<synchronous>, transform_indices = @transform_22, window_bounds = array<i64: 2, 1, 32>}, {pipeline_mode = #tpu.pipeline_mode<synchronous>, transform_indices = @transform_23, window_bounds = array<i64: 2, 1, 32>}, {pipeline_mode = #tpu.pipeline_mode<synchronous>, transform_indices = @transform_24, window_bounds = array<i64: 2, 1, 32>}, {pipeline_mode = #tpu.pipeline_mode<synchronous>, transform_indices = @transform_25, window_bounds = array<i64: 32, 128>}, {pipeline_mode = #tpu.pipeline_mode<synchronous>, transform_indices = @transform_26, window_bounds = array<i64: 1, 128>}, {transform_indices = @transform_27, window_bounds = array<i64: 1, 8, 128>}]} {
    %c0 = arith.constant 0 : index
    %c0_0 = arith.constant 0 : index
    %c0_1 = arith.constant 0 : index
    %0 = vector.load %arg1[%c0, %c0_0, %c0_1] : memref<1x8x32xf32, #tpu.memory_space<vmem>>, vector<1x8x32xf32>
    %1 = vector.shape_cast %0 : vector<1x8x32xf32> to vector<8x32xf32>
    %c0_2 = arith.constant 0 : index
    %c0_3 = arith.constant 0 : index
    %c0_4 = arith.constant 0 : index
    %2 = vector.load %arg2[%c0_2, %c0_3, %c0_4] : memref<1x8x32xf32, #tpu.memory_space<vmem>>, vector<1x8x32xf32>
    %3 = vector.shape_cast %2 : vector<1x8x32xf32> to vector<8x32xf32>
    %c0_5 = arith.constant 0 : index
    %c0_6 = arith.constant 0 : index
    %c0_7 = arith.constant 0 : index
    %4 = vector.load %arg3[%c0_5, %c0_6, %c0_7] : memref<1x1x8xf32, #tpu.memory_space<vmem>>, vector<1x1x8xf32>
    %5 = vector.shape_cast %4 : vector<1x1x8xf32> to vector<1x8xf32>
    %6 = tpu.iota {dimensions = array<i32: 0>} : vector<8x8xi32>
    %7 = tpu.iota {dimensions = array<i32: 1>} : vector<8x8xi32>
    %8 = arith.cmpi sge, %6, %7 : vector<8x8xi32>
    %cst = arith.constant 0.000000e+00 : f32
    %cst_8 = arith.constant -1.000000e+09 : f32
    %9 = vector.broadcast %cst : f32 to vector<8x8xf32>
    %10 = vector.broadcast %cst_8 : f32 to vector<8x8xf32>
    %11 = arith.select %8, %9, %10 : vector<8x8xi1>, vector<8x8xf32>
    %c0_9 = arith.constant 0 : index
    %c0_10 = arith.constant 0 : index
    %12 = vector.load %arg4[%c0_9, %c0_10] : memref<1x32xf32, #tpu.memory_space<vmem>>, vector<1x32xf32>
    %c0_11 = arith.constant 0 : index
    %c0_12 = arith.constant 0 : index
    %13 = vector.load %arg5[%c0_11, %c0_12] : memref<1x32xf32, #tpu.memory_space<vmem>>, vector<1x32xf32>
    %cst_13 = arith.constant dense<0.000000e+00> : vector<8xf32>
    %14 = vector.multi_reduction <add>, %1, %cst_13 [1] : vector<8x32xf32> to vector<8xf32>
    %15 = vector.shape_cast %14 : vector<8xf32> to vector<8x1xf32>
    %cst_14 = arith.constant 3.200000e+01 : f32
    %16 = vector.broadcast %cst_14 : f32 to vector<8x1xf32>
    %17 = arith.divf %15, %16 : vector<8x1xf32>
    %18 = vector.broadcast %17 : vector<8x1xf32> to vector<8x32xf32>
    %19 = arith.subf %1, %18 : vector<8x32xf32>
    %20 = arith.mulf %19, %19 : vector<8x32xf32>
    %cst_15 = arith.constant dense<0.000000e+00> : vector<8xf32>
    %21 = vector.multi_reduction <add>, %20, %cst_15 [1] : vector<8x32xf32> to vector<8xf32>
    %22 = vector.shape_cast %21 : vector<8xf32> to vector<8x1xf32>
    %cst_16 = arith.constant 3.200000e+01 : f32
    %23 = vector.broadcast %cst_16 : f32 to vector<8x1xf32>
    %24 = arith.divf %22, %23 : vector<8x1xf32>
    %25 = vector.broadcast %17 : vector<8x1xf32> to vector<8x32xf32>
    %26 = arith.subf %1, %25 : vector<8x32xf32>
    %cst_17 = arith.constant 9.99999974E-6 : f32
    %27 = vector.broadcast %cst_17 : f32 to vector<8x1xf32>
    %28 = arith.addf %24, %27 : vector<8x1xf32>
    %29 = math.rsqrt %28 : vector<8x1xf32>
    %30 = vector.broadcast %29 : vector<8x1xf32> to vector<8x32xf32>
    %31 = arith.mulf %26, %30 : vector<8x32xf32>
    %32 = vector.broadcast %12 : vector<1x32xf32> to vector<8x32xf32>
    %33 = arith.mulf %31, %32 : vector<8x32xf32>
    %34 = vector.broadcast %13 : vector<1x32xf32> to vector<8x32xf32>
    %35 = arith.addf %33, %34 : vector<8x32xf32>
    %c0_18 = arith.constant 0 : index
    %c0_19 = arith.constant 0 : index
    %c0_20 = arith.constant 0 : index
    %36 = vector.load %arg6[%c0_18, %c0_19, %c0_20] : memref<2x32x96xf32, #tpu.memory_space<vmem>>, vector<1x32x96xf32>
    %37 = vector.shape_cast %36 : vector<1x32x96xf32> to vector<32x96xf32>
    %38 = arith.truncf %35 : vector<8x32xf32> to vector<8x32xbf16>
    %39 = arith.truncf %37 : vector<32x96xf32> to vector<32x96xbf16>
    %cst_21 = arith.constant dense<0.000000e+00> : vector<8x96xf32>
    %40 = tpu.matmul %38, %39, %cst_21 {dimension_numbers = #tpu.dot_dimension_numbers<[1], [0], [0], [1], [0, 0, 1, 1], [], []>} : vector<8x32xbf16>, vector<32x96xbf16>, vector<8x96xf32> -> vector<8x96xf32>
    %c0_22 = arith.constant 0 : index
    %c0_23 = arith.constant 0 : index
    %c0_24 = arith.constant 0 : index
    %41 = vector.load %arg7[%c0_22, %c0_23, %c0_24] : memref<2x1x96xf32, #tpu.memory_space<vmem>>, vector<1x1x96xf32>
    %42 = vector.shape_cast %41 : vector<1x1x96xf32> to vector<1x96xf32>
    %43 = vector.broadcast %42 : vector<1x96xf32> to vector<8x96xf32>
    %44 = arith.addf %40, %43 : vector<8x96xf32>
    %45 = vector.extract_strided_slice %44 {offsets = [0, 0], sizes = [8, 32], strides = [1, 1]} : vector<8x96xf32> to vector<8x32xf32>
    %46 = vector.extract_strided_slice %44 {offsets = [0, 32], sizes = [8, 32], strides = [1, 1]} : vector<8x96xf32> to vector<8x32xf32>
    %47 = vector.extract_strided_slice %44 {offsets = [0, 64], sizes = [8, 32], strides = [1, 1]} : vector<8x96xf32> to vector<8x32xf32>
    %c0_25 = arith.constant 0 : index
    %c0_26 = arith.constant 0 : index
    %c0_27 = arith.constant 0 : index
    %48 = vector.load %arg8[%c0_25, %c0_26, %c0_27] : memref<2x32x32xf32, #tpu.memory_space<vmem>>, vector<1x32x32xf32>
    %49 = vector.shape_cast %48 : vector<1x32x32xf32> to vector<32x32xf32>
    %c0_28 = arith.constant 0 : index
    %c0_29 = arith.constant 0 : index
    %c0_30 = arith.constant 0 : index
    %50 = vector.load %arg9[%c0_28, %c0_29, %c0_30] : memref<2x1x32xf32, #tpu.memory_space<vmem>>, vector<1x1x32xf32>
    %51 = vector.shape_cast %50 : vector<1x1x32xf32> to vector<1x32xf32>
    %cst_31 = arith.constant 0.000000e+00 : f32
    %52 = vector.broadcast %cst_31 : f32 to vector<8x32xf32>
    %53 = vector.extract_strided_slice %45 {offsets = [0, 0], sizes = [8, 16], strides = [1, 1]} : vector<8x32xf32> to vector<8x16xf32>
    %54 = arith.truncf %53 : vector<8x16xf32> to vector<8x16xbf16>
    %55 = vector.extract_strided_slice %46 {offsets = [0, 0], sizes = [8, 16], strides = [1, 1]} : vector<8x32xf32> to vector<8x16xf32>
    %56 = arith.truncf %55 : vector<8x16xf32> to vector<8x16xbf16>
    %57 = vector.extract_strided_slice %47 {offsets = [0, 0], sizes = [8, 16], strides = [1, 1]} : vector<8x32xf32> to vector<8x16xf32>
    %58 = arith.truncf %57 : vector<8x16xf32> to vector<8x16xbf16>
    %cst_32 = arith.constant dense<0.000000e+00> : vector<8x8xf32>
    %59 = tpu.matmul %54, %56, %cst_32 {dimension_numbers = #tpu.dot_dimension_numbers<[1], [1], [0], [0], [0, 0, 1, 0], [], []>} : vector<8x16xbf16>, vector<8x16xbf16>, vector<8x8xf32> -> vector<8x8xf32>
    %cst_33 = arith.constant 2.500000e-01 : f32
    %60 = vector.broadcast %cst_33 : f32 to vector<8x8xf32>
    %61 = arith.mulf %59, %60 : vector<8x8xf32>
    %62 = arith.addf %61, %11 : vector<8x8xf32>
    %cst_34 = arith.constant dense<0xFF800000> : vector<8xf32>
    %63 = vector.multi_reduction <maximumf>, %62, %cst_34 [1] : vector<8x8xf32> to vector<8xf32>
    %64 = vector.shape_cast %63 : vector<8xf32> to vector<8x1xf32>
    %65 = vector.broadcast %64 : vector<8x1xf32> to vector<8x8xf32>
    %66 = arith.subf %62, %65 : vector<8x8xf32>
    %67 = math.exp %66 : vector<8x8xf32>
    %cst_35 = arith.constant dense<0.000000e+00> : vector<8xf32>
    %68 = vector.multi_reduction <add>, %67, %cst_35 [1] : vector<8x8xf32> to vector<8xf32>
    %69 = vector.shape_cast %68 : vector<8xf32> to vector<8x1xf32>
    %70 = tpu.reciprocal %69 {approx = true} : vector<8x1xf32> -> vector<8x1xf32>
    %71 = vector.broadcast %70 : vector<8x1xf32> to vector<8x8xf32>
    %72 = arith.mulf %67, %71 : vector<8x8xf32>
    %73 = arith.truncf %72 : vector<8x8xf32> to vector<8x8xbf16>
    %cst_36 = arith.constant dense<0.000000e+00> : vector<8x16xf32>
    %74 = tpu.matmul %73, %58, %cst_36 {dimension_numbers = #tpu.dot_dimension_numbers<[1], [0], [0], [1], [0, 0, 1, 1], [], []>} : vector<8x8xbf16>, vector<8x16xbf16>, vector<8x16xf32> -> vector<8x16xf32>
    %75 = arith.truncf %74 : vector<8x16xf32> to vector<8x16xbf16>
    %76 = vector.extract_strided_slice %49 {offsets = [0, 0], sizes = [16, 32], strides = [1, 1]} : vector<32x32xf32> to vector<16x32xf32>
    %77 = arith.truncf %76 : vector<16x32xf32> to vector<16x32xbf16>
    %cst_37 = arith.constant dense<0.000000e+00> : vector<8x32xf32>
    %78 = tpu.matmul %75, %77, %cst_37 {dimension_numbers = #tpu.dot_dimension_numbers<[1], [0], [0], [1], [0, 0, 1, 1], [], []>} : vector<8x16xbf16>, vector<16x32xbf16>, vector<8x32xf32> -> vector<8x32xf32>
    %79 = arith.addf %52, %78 : vector<8x32xf32>
    %80 = vector.extract_strided_slice %45 {offsets = [0, 16], sizes = [8, 16], strides = [1, 1]} : vector<8x32xf32> to vector<8x16xf32>
    %81 = arith.truncf %80 : vector<8x16xf32> to vector<8x16xbf16>
    %82 = vector.extract_strided_slice %46 {offsets = [0, 16], sizes = [8, 16], strides = [1, 1]} : vector<8x32xf32> to vector<8x16xf32>
    %83 = arith.truncf %82 : vector<8x16xf32> to vector<8x16xbf16>
    %84 = vector.extract_strided_slice %47 {offsets = [0, 16], sizes = [8, 16], strides = [1, 1]} : vector<8x32xf32> to vector<8x16xf32>
    %85 = arith.truncf %84 : vector<8x16xf32> to vector<8x16xbf16>
    %cst_38 = arith.constant dense<0.000000e+00> : vector<8x8xf32>
    %86 = tpu.matmul %81, %83, %cst_38 {dimension_numbers = #tpu.dot_dimension_numbers<[1], [1], [0], [0], [0, 0, 1, 0], [], []>} : vector<8x16xbf16>, vector<8x16xbf16>, vector<8x8xf32> -> vector<8x8xf32>
    %cst_39 = arith.constant 2.500000e-01 : f32
    %87 = vector.broadcast %cst_39 : f32 to vector<8x8xf32>
    %88 = arith.mulf %86, %87 : vector<8x8xf32>
    %89 = arith.addf %88, %11 : vector<8x8xf32>
    %cst_40 = arith.constant dense<0xFF800000> : vector<8xf32>
    %90 = vector.multi_reduction <maximumf>, %89, %cst_40 [1] : vector<8x8xf32> to vector<8xf32>
    %91 = vector.shape_cast %90 : vector<8xf32> to vector<8x1xf32>
    %92 = vector.broadcast %91 : vector<8x1xf32> to vector<8x8xf32>
    %93 = arith.subf %89, %92 : vector<8x8xf32>
    %94 = math.exp %93 : vector<8x8xf32>
    %cst_41 = arith.constant dense<0.000000e+00> : vector<8xf32>
    %95 = vector.multi_reduction <add>, %94, %cst_41 [1] : vector<8x8xf32> to vector<8xf32>
    %96 = vector.shape_cast %95 : vector<8xf32> to vector<8x1xf32>
    %97 = tpu.reciprocal %96 {approx = true} : vector<8x1xf32> -> vector<8x1xf32>
    %98 = vector.broadcast %97 : vector<8x1xf32> to vector<8x8xf32>
    %99 = arith.mulf %94, %98 : vector<8x8xf32>
    %100 = arith.truncf %99 : vector<8x8xf32> to vector<8x8xbf16>
    %cst_42 = arith.constant dense<0.000000e+00> : vector<8x16xf32>
    %101 = tpu.matmul %100, %85, %cst_42 {dimension_numbers = #tpu.dot_dimension_numbers<[1], [0], [0], [1], [0, 0, 1, 1], [], []>} : vector<8x8xbf16>, vector<8x16xbf16>, vector<8x16xf32> -> vector<8x16xf32>
    %102 = arith.truncf %101 : vector<8x16xf32> to vector<8x16xbf16>
    %103 = vector.extract_strided_slice %49 {offsets = [16, 0], sizes = [16, 32], strides = [1, 1]} : vector<32x32xf32> to vector<16x32xf32>
    %104 = arith.truncf %103 : vector<16x32xf32> to vector<16x32xbf16>
    %cst_43 = arith.constant dense<0.000000e+00> : vector<8x32xf32>
    %105 = tpu.matmul %102, %104, %cst_43 {dimension_numbers = #tpu.dot_dimension_numbers<[1], [0], [0], [1], [0, 0, 1, 1], [], []>} : vector<8x16xbf16>, vector<16x32xbf16>, vector<8x32xf32> -> vector<8x32xf32>
    %106 = arith.addf %79, %105 : vector<8x32xf32>
    %107 = vector.broadcast %51 : vector<1x32xf32> to vector<8x32xf32>
    %108 = arith.addf %106, %107 : vector<8x32xf32>
    %109 = arith.addf %35, %108 : vector<8x32xf32>
    %c0_44 = arith.constant 0 : index
    %c0_45 = arith.constant 0 : index
    %c0_46 = arith.constant 0 : index
    %110 = vector.load %arg10[%c0_44, %c0_45, %c0_46] : memref<2x1x32xf32, #tpu.memory_space<vmem>>, vector<1x1x32xf32>
    %111 = vector.shape_cast %110 : vector<1x1x32xf32> to vector<1x32xf32>
    %c0_47 = arith.constant 0 : index
    %c0_48 = arith.constant 0 : index
    %c0_49 = arith.constant 0 : index
    %112 = vector.load %arg11[%c0_47, %c0_48, %c0_49] : memref<2x1x32xf32, #tpu.memory_space<vmem>>, vector<1x1x32xf32>
    %113 = vector.shape_cast %112 : vector<1x1x32xf32> to vector<1x32xf32>
    %cst_50 = arith.constant dense<0.000000e+00> : vector<8xf32>
    %114 = vector.multi_reduction <add>, %109, %cst_50 [1] : vector<8x32xf32> to vector<8xf32>
    %115 = vector.shape_cast %114 : vector<8xf32> to vector<8x1xf32>
    %cst_51 = arith.constant 3.200000e+01 : f32
    %116 = vector.broadcast %cst_51 : f32 to vector<8x1xf32>
    %117 = arith.divf %115, %116 : vector<8x1xf32>
    %118 = vector.broadcast %117 : vector<8x1xf32> to vector<8x32xf32>
    %119 = arith.subf %109, %118 : vector<8x32xf32>
    %120 = arith.mulf %119, %119 : vector<8x32xf32>
    %cst_52 = arith.constant dense<0.000000e+00> : vector<8xf32>
    %121 = vector.multi_reduction <add>, %120, %cst_52 [1] : vector<8x32xf32> to vector<8xf32>
    %122 = vector.shape_cast %121 : vector<8xf32> to vector<8x1xf32>
    %cst_53 = arith.constant 3.200000e+01 : f32
    %123 = vector.broadcast %cst_53 : f32 to vector<8x1xf32>
    %124 = arith.divf %122, %123 : vector<8x1xf32>
    %125 = vector.broadcast %117 : vector<8x1xf32> to vector<8x32xf32>
    %126 = arith.subf %109, %125 : vector<8x32xf32>
    %cst_54 = arith.constant 9.99999974E-6 : f32
    %127 = vector.broadcast %cst_54 : f32 to vector<8x1xf32>
    %128 = arith.addf %124, %127 : vector<8x1xf32>
    %129 = math.rsqrt %128 : vector<8x1xf32>
    %130 = vector.broadcast %129 : vector<8x1xf32> to vector<8x32xf32>
    %131 = arith.mulf %126, %130 : vector<8x32xf32>
    %132 = vector.broadcast %111 : vector<1x32xf32> to vector<8x32xf32>
    %133 = arith.mulf %131, %132 : vector<8x32xf32>
    %134 = vector.broadcast %113 : vector<1x32xf32> to vector<8x32xf32>
    %135 = arith.addf %133, %134 : vector<8x32xf32>
    %c0_55 = arith.constant 0 : index
    %c0_56 = arith.constant 0 : index
    %c0_57 = arith.constant 0 : index
    %136 = vector.load %arg12[%c0_55, %c0_56, %c0_57] : memref<2x32x32xf32, #tpu.memory_space<vmem>>, vector<1x32x32xf32>
    %137 = vector.shape_cast %136 : vector<1x32x32xf32> to vector<32x32xf32>
    %138 = arith.truncf %135 : vector<8x32xf32> to vector<8x32xbf16>
    %139 = arith.truncf %137 : vector<32x32xf32> to vector<32x32xbf16>
    %cst_58 = arith.constant dense<0.000000e+00> : vector<8x32xf32>
    %140 = tpu.matmul %138, %139, %cst_58 {dimension_numbers = #tpu.dot_dimension_numbers<[1], [0], [0], [1], [0, 0, 1, 1], [], []>} : vector<8x32xbf16>, vector<32x32xbf16>, vector<8x32xf32> -> vector<8x32xf32>
    %c0_59 = arith.constant 0 : index
    %c0_60 = arith.constant 0 : index
    %c0_61 = arith.constant 0 : index
    %141 = vector.load %arg13[%c0_59, %c0_60, %c0_61] : memref<2x1x32xf32, #tpu.memory_space<vmem>>, vector<1x1x32xf32>
    %142 = vector.shape_cast %141 : vector<1x1x32xf32> to vector<1x32xf32>
    %143 = vector.broadcast %142 : vector<1x32xf32> to vector<8x32xf32>
    %144 = arith.addf %140, %143 : vector<8x32xf32>
    %c0_62 = arith.constant 0 : index
    %c0_63 = arith.constant 0 : index
    %c0_64 = arith.constant 0 : index
    %145 = vector.load %arg14[%c0_62, %c0_63, %c0_64] : memref<2x32x64xf32, #tpu.memory_space<vmem>>, vector<1x32x64xf32>
    %146 = vector.shape_cast %145 : vector<1x32x64xf32> to vector<32x64xf32>
    %147 = arith.truncf %3 : vector<8x32xf32> to vector<8x32xbf16>
    %148 = arith.truncf %146 : vector<32x64xf32> to vector<32x64xbf16>
    %cst_65 = arith.constant dense<0.000000e+00> : vector<8x64xf32>
    %149 = tpu.matmul %147, %148, %cst_65 {dimension_numbers = #tpu.dot_dimension_numbers<[1], [0], [0], [1], [0, 0, 1, 1], [], []>} : vector<8x32xbf16>, vector<32x64xbf16>, vector<8x64xf32> -> vector<8x64xf32>
    %c0_66 = arith.constant 0 : index
    %c0_67 = arith.constant 0 : index
    %c0_68 = arith.constant 0 : index
    %150 = vector.load %arg15[%c0_66, %c0_67, %c0_68] : memref<2x1x64xf32, #tpu.memory_space<vmem>>, vector<1x1x64xf32>
    %151 = vector.shape_cast %150 : vector<1x1x64xf32> to vector<1x64xf32>
    %152 = vector.broadcast %151 : vector<1x64xf32> to vector<8x64xf32>
    %153 = arith.addf %149, %152 : vector<8x64xf32>
    %154 = vector.extract_strided_slice %153 {offsets = [0, 0], sizes = [8, 32], strides = [1, 1]} : vector<8x64xf32> to vector<8x32xf32>
    %155 = vector.extract_strided_slice %153 {offsets = [0, 32], sizes = [8, 32], strides = [1, 1]} : vector<8x64xf32> to vector<8x32xf32>
    %c0_69 = arith.constant 0 : index
    %c0_70 = arith.constant 0 : index
    %c0_71 = arith.constant 0 : index
    %156 = vector.load %arg16[%c0_69, %c0_70, %c0_71] : memref<2x32x32xf32, #tpu.memory_space<vmem>>, vector<1x32x32xf32>
    %157 = vector.shape_cast %156 : vector<1x32x32xf32> to vector<32x32xf32>
    %c0_72 = arith.constant 0 : index
    %c0_73 = arith.constant 0 : index
    %c0_74 = arith.constant 0 : index
    %158 = vector.load %arg17[%c0_72, %c0_73, %c0_74] : memref<2x1x32xf32, #tpu.memory_space<vmem>>, vector<1x1x32xf32>
    %159 = vector.shape_cast %158 : vector<1x1x32xf32> to vector<1x32xf32>
    %cst_75 = arith.constant 0.000000e+00 : f32
    %160 = vector.broadcast %cst_75 : f32 to vector<8x32xf32>
    %161 = vector.extract_strided_slice %144 {offsets = [0, 0], sizes = [8, 16], strides = [1, 1]} : vector<8x32xf32> to vector<8x16xf32>
    %162 = arith.truncf %161 : vector<8x16xf32> to vector<8x16xbf16>
    %163 = vector.extract_strided_slice %154 {offsets = [0, 0], sizes = [8, 16], strides = [1, 1]} : vector<8x32xf32> to vector<8x16xf32>
    %164 = arith.truncf %163 : vector<8x16xf32> to vector<8x16xbf16>
    %165 = vector.extract_strided_slice %155 {offsets = [0, 0], sizes = [8, 16], strides = [1, 1]} : vector<8x32xf32> to vector<8x16xf32>
    %166 = arith.truncf %165 : vector<8x16xf32> to vector<8x16xbf16>
    %cst_76 = arith.constant dense<0.000000e+00> : vector<8x8xf32>
    %167 = tpu.matmul %162, %164, %cst_76 {dimension_numbers = #tpu.dot_dimension_numbers<[1], [1], [0], [0], [0, 0, 1, 0], [], []>} : vector<8x16xbf16>, vector<8x16xbf16>, vector<8x8xf32> -> vector<8x8xf32>
    %cst_77 = arith.constant 2.500000e-01 : f32
    %168 = vector.broadcast %cst_77 : f32 to vector<8x8xf32>
    %169 = arith.mulf %167, %168 : vector<8x8xf32>
    %170 = vector.broadcast %5 : vector<1x8xf32> to vector<8x8xf32>
    %171 = arith.addf %169, %170 : vector<8x8xf32>
    %cst_78 = arith.constant dense<0xFF800000> : vector<8xf32>
    %172 = vector.multi_reduction <maximumf>, %171, %cst_78 [1] : vector<8x8xf32> to vector<8xf32>
    %173 = vector.shape_cast %172 : vector<8xf32> to vector<8x1xf32>
    %174 = vector.broadcast %173 : vector<8x1xf32> to vector<8x8xf32>
    %175 = arith.subf %171, %174 : vector<8x8xf32>
    %176 = math.exp %175 : vector<8x8xf32>
    %cst_79 = arith.constant dense<0.000000e+00> : vector<8xf32>
    %177 = vector.multi_reduction <add>, %176, %cst_79 [1] : vector<8x8xf32> to vector<8xf32>
    %178 = vector.shape_cast %177 : vector<8xf32> to vector<8x1xf32>
    %179 = tpu.reciprocal %178 {approx = true} : vector<8x1xf32> -> vector<8x1xf32>
    %180 = vector.broadcast %179 : vector<8x1xf32> to vector<8x8xf32>
    %181 = arith.mulf %176, %180 : vector<8x8xf32>
    %182 = arith.truncf %181 : vector<8x8xf32> to vector<8x8xbf16>
    %cst_80 = arith.constant dense<0.000000e+00> : vector<8x16xf32>
    %183 = tpu.matmul %182, %166, %cst_80 {dimension_numbers = #tpu.dot_dimension_numbers<[1], [0], [0], [1], [0, 0, 1, 1], [], []>} : vector<8x8xbf16>, vector<8x16xbf16>, vector<8x16xf32> -> vector<8x16xf32>
    %184 = arith.truncf %183 : vector<8x16xf32> to vector<8x16xbf16>
    %185 = vector.extract_strided_slice %157 {offsets = [0, 0], sizes = [16, 32], strides = [1, 1]} : vector<32x32xf32> to vector<16x32xf32>
    %186 = arith.truncf %185 : vector<16x32xf32> to vector<16x32xbf16>
    %cst_81 = arith.constant dense<0.000000e+00> : vector<8x32xf32>
    %187 = tpu.matmul %184, %186, %cst_81 {dimension_numbers = #tpu.dot_dimension_numbers<[1], [0], [0], [1], [0, 0, 1, 1], [], []>} : vector<8x16xbf16>, vector<16x32xbf16>, vector<8x32xf32> -> vector<8x32xf32>
    %188 = arith.addf %160, %187 : vector<8x32xf32>
    %189 = vector.extract_strided_slice %144 {offsets = [0, 16], sizes = [8, 16], strides = [1, 1]} : vector<8x32xf32> to vector<8x16xf32>
    %190 = arith.truncf %189 : vector<8x16xf32> to vector<8x16xbf16>
    %191 = vector.extract_strided_slice %154 {offsets = [0, 16], sizes = [8, 16], strides = [1, 1]} : vector<8x32xf32> to vector<8x16xf32>
    %192 = arith.truncf %191 : vector<8x16xf32> to vector<8x16xbf16>
    %193 = vector.extract_strided_slice %155 {offsets = [0, 16], sizes = [8, 16], strides = [1, 1]} : vector<8x32xf32> to vector<8x16xf32>
    %194 = arith.truncf %193 : vector<8x16xf32> to vector<8x16xbf16>
    %cst_82 = arith.constant dense<0.000000e+00> : vector<8x8xf32>
    %195 = tpu.matmul %190, %192, %cst_82 {dimension_numbers = #tpu.dot_dimension_numbers<[1], [1], [0], [0], [0, 0, 1, 0], [], []>} : vector<8x16xbf16>, vector<8x16xbf16>, vector<8x8xf32> -> vector<8x8xf32>
    %cst_83 = arith.constant 2.500000e-01 : f32
    %196 = vector.broadcast %cst_83 : f32 to vector<8x8xf32>
    %197 = arith.mulf %195, %196 : vector<8x8xf32>
    %198 = vector.broadcast %5 : vector<1x8xf32> to vector<8x8xf32>
    %199 = arith.addf %197, %198 : vector<8x8xf32>
    %cst_84 = arith.constant dense<0xFF800000> : vector<8xf32>
    %200 = vector.multi_reduction <maximumf>, %199, %cst_84 [1] : vector<8x8xf32> to vector<8xf32>
    %201 = vector.shape_cast %200 : vector<8xf32> to vector<8x1xf32>
    %202 = vector.broadcast %201 : vector<8x1xf32> to vector<8x8xf32>
    %203 = arith.subf %199, %202 : vector<8x8xf32>
    %204 = math.exp %203 : vector<8x8xf32>
    %cst_85 = arith.constant dense<0.000000e+00> : vector<8xf32>
    %205 = vector.multi_reduction <add>, %204, %cst_85 [1] : vector<8x8xf32> to vector<8xf32>
    %206 = vector.shape_cast %205 : vector<8xf32> to vector<8x1xf32>
    %207 = tpu.reciprocal %206 {approx = true} : vector<8x1xf32> -> vector<8x1xf32>
    %208 = vector.broadcast %207 : vector<8x1xf32> to vector<8x8xf32>
    %209 = arith.mulf %204, %208 : vector<8x8xf32>
    %210 = arith.truncf %209 : vector<8x8xf32> to vector<8x8xbf16>
    %cst_86 = arith.constant dense<0.000000e+00> : vector<8x16xf32>
    %211 = tpu.matmul %210, %194, %cst_86 {dimension_numbers = #tpu.dot_dimension_numbers<[1], [0], [0], [1], [0, 0, 1, 1], [], []>} : vector<8x8xbf16>, vector<8x16xbf16>, vector<8x16xf32> -> vector<8x16xf32>
    %212 = arith.truncf %211 : vector<8x16xf32> to vector<8x16xbf16>
    %213 = vector.extract_strided_slice %157 {offsets = [16, 0], sizes = [16, 32], strides = [1, 1]} : vector<32x32xf32> to vector<16x32xf32>
    %214 = arith.truncf %213 : vector<16x32xf32> to vector<16x32xbf16>
    %cst_87 = arith.constant dense<0.000000e+00> : vector<8x32xf32>
    %215 = tpu.matmul %212, %214, %cst_87 {dimension_numbers = #tpu.dot_dimension_numbers<[1], [0], [0], [1], [0, 0, 1, 1], [], []>} : vector<8x16xbf16>, vector<16x32xbf16>, vector<8x32xf32> -> vector<8x32xf32>
    %216 = arith.addf %188, %215 : vector<8x32xf32>
    %217 = vector.broadcast %159 : vector<1x32xf32> to vector<8x32xf32>
    %218 = arith.addf %216, %217 : vector<8x32xf32>
    %219 = arith.addf %135, %218 : vector<8x32xf32>
    %c0_88 = arith.constant 0 : index
    %c0_89 = arith.constant 0 : index
    %c0_90 = arith.constant 0 : index
    %220 = vector.load %arg18[%c0_88, %c0_89, %c0_90] : memref<2x1x32xf32, #tpu.memory_space<vmem>>, vector<1x1x32xf32>
    %221 = vector.shape_cast %220 : vector<1x1x32xf32> to vector<1x32xf32>
    %c0_91 = arith.constant 0 : index
    %c0_92 = arith.constant 0 : index
    %c0_93 = arith.constant 0 : index
    %222 = vector.load %arg19[%c0_91, %c0_92, %c0_93] : memref<2x1x32xf32, #tpu.memory_space<vmem>>, vector<1x1x32xf32>
    %223 = vector.shape_cast %222 : vector<1x1x32xf32> to vector<1x32xf32>
    %cst_94 = arith.constant dense<0.000000e+00> : vector<8xf32>
    %224 = vector.multi_reduction <add>, %219, %cst_94 [1] : vector<8x32xf32> to vector<8xf32>
    %225 = vector.shape_cast %224 : vector<8xf32> to vector<8x1xf32>
    %cst_95 = arith.constant 3.200000e+01 : f32
    %226 = vector.broadcast %cst_95 : f32 to vector<8x1xf32>
    %227 = arith.divf %225, %226 : vector<8x1xf32>
    %228 = vector.broadcast %227 : vector<8x1xf32> to vector<8x32xf32>
    %229 = arith.subf %219, %228 : vector<8x32xf32>
    %230 = arith.mulf %229, %229 : vector<8x32xf32>
    %cst_96 = arith.constant dense<0.000000e+00> : vector<8xf32>
    %231 = vector.multi_reduction <add>, %230, %cst_96 [1] : vector<8x32xf32> to vector<8xf32>
    %232 = vector.shape_cast %231 : vector<8xf32> to vector<8x1xf32>
    %cst_97 = arith.constant 3.200000e+01 : f32
    %233 = vector.broadcast %cst_97 : f32 to vector<8x1xf32>
    %234 = arith.divf %232, %233 : vector<8x1xf32>
    %235 = vector.broadcast %227 : vector<8x1xf32> to vector<8x32xf32>
    %236 = arith.subf %219, %235 : vector<8x32xf32>
    %cst_98 = arith.constant 9.99999974E-6 : f32
    %237 = vector.broadcast %cst_98 : f32 to vector<8x1xf32>
    %238 = arith.addf %234, %237 : vector<8x1xf32>
    %239 = math.rsqrt %238 : vector<8x1xf32>
    %240 = vector.broadcast %239 : vector<8x1xf32> to vector<8x32xf32>
    %241 = arith.mulf %236, %240 : vector<8x32xf32>
    %242 = vector.broadcast %221 : vector<1x32xf32> to vector<8x32xf32>
    %243 = arith.mulf %241, %242 : vector<8x32xf32>
    %244 = vector.broadcast %223 : vector<1x32xf32> to vector<8x32xf32>
    %245 = arith.addf %243, %244 : vector<8x32xf32>
    %c0_99 = arith.constant 0 : index
    %c0_100 = arith.constant 0 : index
    %c0_101 = arith.constant 0 : index
    %246 = vector.load %arg20[%c0_99, %c0_100, %c0_101] : memref<2x32x64xf32, #tpu.memory_space<vmem>>, vector<1x32x64xf32>
    %247 = vector.shape_cast %246 : vector<1x32x64xf32> to vector<32x64xf32>
    %248 = arith.truncf %245 : vector<8x32xf32> to vector<8x32xbf16>
    %249 = arith.truncf %247 : vector<32x64xf32> to vector<32x64xbf16>
    %cst_102 = arith.constant dense<0.000000e+00> : vector<8x64xf32>
    %250 = tpu.matmul %248, %249, %cst_102 {dimension_numbers = #tpu.dot_dimension_numbers<[1], [0], [0], [1], [0, 0, 1, 1], [], []>} : vector<8x32xbf16>, vector<32x64xbf16>, vector<8x64xf32> -> vector<8x64xf32>
    %c0_103 = arith.constant 0 : index
    %c0_104 = arith.constant 0 : index
    %c0_105 = arith.constant 0 : index
    %251 = vector.load %arg21[%c0_103, %c0_104, %c0_105] : memref<2x1x64xf32, #tpu.memory_space<vmem>>, vector<1x1x64xf32>
    %252 = vector.shape_cast %251 : vector<1x1x64xf32> to vector<1x64xf32>
    %253 = vector.broadcast %252 : vector<1x64xf32> to vector<8x64xf32>
    %254 = arith.addf %250, %253 : vector<8x64xf32>
    %cst_106 = arith.constant 5.000000e-01 : f32
    %255 = vector.broadcast %cst_106 : f32 to vector<8x64xf32>
    %256 = arith.mulf %255, %254 : vector<8x64xf32>
    %cst_107 = arith.constant 4.471500e-02 : f32
    %257 = vector.broadcast %cst_107 : f32 to vector<8x64xf32>
    %258 = arith.mulf %257, %254 : vector<8x64xf32>
    %259 = arith.mulf %258, %254 : vector<8x64xf32>
    %260 = arith.mulf %259, %254 : vector<8x64xf32>
    %261 = arith.addf %254, %260 : vector<8x64xf32>
    %cst_108 = arith.constant 0.797884583 : f32
    %262 = vector.broadcast %cst_108 : f32 to vector<8x64xf32>
    %263 = arith.mulf %262, %261 : vector<8x64xf32>
    %264 = math.tanh %263 : vector<8x64xf32>
    %cst_109 = arith.constant 1.000000e+00 : f32
    %265 = vector.broadcast %cst_109 : f32 to vector<8x64xf32>
    %266 = arith.addf %265, %264 : vector<8x64xf32>
    %267 = arith.mulf %256, %266 : vector<8x64xf32>
    %c0_110 = arith.constant 0 : index
    %c0_111 = arith.constant 0 : index
    %c0_112 = arith.constant 0 : index
    %268 = vector.load %arg22[%c0_110, %c0_111, %c0_112] : memref<2x64x32xf32, #tpu.memory_space<vmem>>, vector<1x64x32xf32>
    %269 = vector.shape_cast %268 : vector<1x64x32xf32> to vector<64x32xf32>
    %270 = arith.truncf %267 : vector<8x64xf32> to vector<8x64xbf16>
    %271 = arith.truncf %269 : vector<64x32xf32> to vector<64x32xbf16>
    %cst_113 = arith.constant dense<0.000000e+00> : vector<8x32xf32>
    %272 = tpu.matmul %270, %271, %cst_113 {dimension_numbers = #tpu.dot_dimension_numbers<[1], [0], [0], [1], [0, 0, 1, 1], [], []>} : vector<8x64xbf16>, vector<64x32xbf16>, vector<8x32xf32> -> vector<8x32xf32>
    %c0_114 = arith.constant 0 : index
    %c0_115 = arith.constant 0 : index
    %c0_116 = arith.constant 0 : index
    %273 = vector.load %arg23[%c0_114, %c0_115, %c0_116] : memref<2x1x32xf32, #tpu.memory_space<vmem>>, vector<1x1x32xf32>
    %274 = vector.shape_cast %273 : vector<1x1x32xf32> to vector<1x32xf32>
    %275 = vector.broadcast %274 : vector<1x32xf32> to vector<8x32xf32>
    %276 = arith.addf %272, %275 : vector<8x32xf32>
    %277 = arith.addf %245, %276 : vector<8x32xf32>
    %c0_117 = arith.constant 0 : index
    %c0_118 = arith.constant 0 : index
    %c0_119 = arith.constant 0 : index
    %278 = vector.load %arg24[%c0_117, %c0_118, %c0_119] : memref<2x1x32xf32, #tpu.memory_space<vmem>>, vector<1x1x32xf32>
    %279 = vector.shape_cast %278 : vector<1x1x32xf32> to vector<1x32xf32>
    %c0_120 = arith.constant 0 : index
    %c0_121 = arith.constant 0 : index
    %c0_122 = arith.constant 0 : index
    %280 = vector.load %arg25[%c0_120, %c0_121, %c0_122] : memref<2x1x32xf32, #tpu.memory_space<vmem>>, vector<1x1x32xf32>
    %281 = vector.shape_cast %280 : vector<1x1x32xf32> to vector<1x32xf32>
    %cst_123 = arith.constant dense<0.000000e+00> : vector<8xf32>
    %282 = vector.multi_reduction <add>, %277, %cst_123 [1] : vector<8x32xf32> to vector<8xf32>
    %283 = vector.shape_cast %282 : vector<8xf32> to vector<8x1xf32>
    %cst_124 = arith.constant 3.200000e+01 : f32
    %284 = vector.broadcast %cst_124 : f32 to vector<8x1xf32>
    %285 = arith.divf %283, %284 : vector<8x1xf32>
    %286 = vector.broadcast %285 : vector<8x1xf32> to vector<8x32xf32>
    %287 = arith.subf %277, %286 : vector<8x32xf32>
    %288 = arith.mulf %287, %287 : vector<8x32xf32>
    %cst_125 = arith.constant dense<0.000000e+00> : vector<8xf32>
    %289 = vector.multi_reduction <add>, %288, %cst_125 [1] : vector<8x32xf32> to vector<8xf32>
    %290 = vector.shape_cast %289 : vector<8xf32> to vector<8x1xf32>
    %cst_126 = arith.constant 3.200000e+01 : f32
    %291 = vector.broadcast %cst_126 : f32 to vector<8x1xf32>
    %292 = arith.divf %290, %291 : vector<8x1xf32>
    %293 = vector.broadcast %285 : vector<8x1xf32> to vector<8x32xf32>
    %294 = arith.subf %277, %293 : vector<8x32xf32>
    %cst_127 = arith.constant 9.99999974E-6 : f32
    %295 = vector.broadcast %cst_127 : f32 to vector<8x1xf32>
    %296 = arith.addf %292, %295 : vector<8x1xf32>
    %297 = math.rsqrt %296 : vector<8x1xf32>
    %298 = vector.broadcast %297 : vector<8x1xf32> to vector<8x32xf32>
    %299 = arith.mulf %294, %298 : vector<8x32xf32>
    %300 = vector.broadcast %279 : vector<1x32xf32> to vector<8x32xf32>
    %301 = arith.mulf %299, %300 : vector<8x32xf32>
    %302 = vector.broadcast %281 : vector<1x32xf32> to vector<8x32xf32>
    %303 = arith.addf %301, %302 : vector<8x32xf32>
    %c1 = arith.constant 1 : index
    %c0_128 = arith.constant 0 : index
    %c0_129 = arith.constant 0 : index
    %304 = vector.load %arg6[%c1, %c0_128, %c0_129] : memref<2x32x96xf32, #tpu.memory_space<vmem>>, vector<1x32x96xf32>
    %305 = vector.shape_cast %304 : vector<1x32x96xf32> to vector<32x96xf32>
    %306 = arith.truncf %303 : vector<8x32xf32> to vector<8x32xbf16>
    %307 = arith.truncf %305 : vector<32x96xf32> to vector<32x96xbf16>
    %cst_130 = arith.constant dense<0.000000e+00> : vector<8x96xf32>
    %308 = tpu.matmul %306, %307, %cst_130 {dimension_numbers = #tpu.dot_dimension_numbers<[1], [0], [0], [1], [0, 0, 1, 1], [], []>} : vector<8x32xbf16>, vector<32x96xbf16>, vector<8x96xf32> -> vector<8x96xf32>
    %c1_131 = arith.constant 1 : index
    %c0_132 = arith.constant 0 : index
    %c0_133 = arith.constant 0 : index
    %309 = vector.load %arg7[%c1_131, %c0_132, %c0_133] : memref<2x1x96xf32, #tpu.memory_space<vmem>>, vector<1x1x96xf32>
    %310 = vector.shape_cast %309 : vector<1x1x96xf32> to vector<1x96xf32>
    %311 = vector.broadcast %310 : vector<1x96xf32> to vector<8x96xf32>
    %312 = arith.addf %308, %311 : vector<8x96xf32>
    %313 = vector.extract_strided_slice %312 {offsets = [0, 0], sizes = [8, 32], strides = [1, 1]} : vector<8x96xf32> to vector<8x32xf32>
    %314 = vector.extract_strided_slice %312 {offsets = [0, 32], sizes = [8, 32], strides = [1, 1]} : vector<8x96xf32> to vector<8x32xf32>
    %315 = vector.extract_strided_slice %312 {offsets = [0, 64], sizes = [8, 32], strides = [1, 1]} : vector<8x96xf32> to vector<8x32xf32>
    %c1_134 = arith.constant 1 : index
    %c0_135 = arith.constant 0 : index
    %c0_136 = arith.constant 0 : index
    %316 = vector.load %arg8[%c1_134, %c0_135, %c0_136] : memref<2x32x32xf32, #tpu.memory_space<vmem>>, vector<1x32x32xf32>
    %317 = vector.shape_cast %316 : vector<1x32x32xf32> to vector<32x32xf32>
    %c1_137 = arith.constant 1 : index
    %c0_138 = arith.constant 0 : index
    %c0_139 = arith.constant 0 : index
    %318 = vector.load %arg9[%c1_137, %c0_138, %c0_139] : memref<2x1x32xf32, #tpu.memory_space<vmem>>, vector<1x1x32xf32>
    %319 = vector.shape_cast %318 : vector<1x1x32xf32> to vector<1x32xf32>
    %cst_140 = arith.constant 0.000000e+00 : f32
    %320 = vector.broadcast %cst_140 : f32 to vector<8x32xf32>
    %321 = vector.extract_strided_slice %313 {offsets = [0, 0], sizes = [8, 16], strides = [1, 1]} : vector<8x32xf32> to vector<8x16xf32>
    %322 = arith.truncf %321 : vector<8x16xf32> to vector<8x16xbf16>
    %323 = vector.extract_strided_slice %314 {offsets = [0, 0], sizes = [8, 16], strides = [1, 1]} : vector<8x32xf32> to vector<8x16xf32>
    %324 = arith.truncf %323 : vector<8x16xf32> to vector<8x16xbf16>
    %325 = vector.extract_strided_slice %315 {offsets = [0, 0], sizes = [8, 16], strides = [1, 1]} : vector<8x32xf32> to vector<8x16xf32>
    %326 = arith.truncf %325 : vector<8x16xf32> to vector<8x16xbf16>
    %cst_141 = arith.constant dense<0.000000e+00> : vector<8x8xf32>
    %327 = tpu.matmul %322, %324, %cst_141 {dimension_numbers = #tpu.dot_dimension_numbers<[1], [1], [0], [0], [0, 0, 1, 0], [], []>} : vector<8x16xbf16>, vector<8x16xbf16>, vector<8x8xf32> -> vector<8x8xf32>
    %cst_142 = arith.constant 2.500000e-01 : f32
    %328 = vector.broadcast %cst_142 : f32 to vector<8x8xf32>
    %329 = arith.mulf %327, %328 : vector<8x8xf32>
    %330 = arith.addf %329, %11 : vector<8x8xf32>
    %cst_143 = arith.constant dense<0xFF800000> : vector<8xf32>
    %331 = vector.multi_reduction <maximumf>, %330, %cst_143 [1] : vector<8x8xf32> to vector<8xf32>
    %332 = vector.shape_cast %331 : vector<8xf32> to vector<8x1xf32>
    %333 = vector.broadcast %332 : vector<8x1xf32> to vector<8x8xf32>
    %334 = arith.subf %330, %333 : vector<8x8xf32>
    %335 = math.exp %334 : vector<8x8xf32>
    %cst_144 = arith.constant dense<0.000000e+00> : vector<8xf32>
    %336 = vector.multi_reduction <add>, %335, %cst_144 [1] : vector<8x8xf32> to vector<8xf32>
    %337 = vector.shape_cast %336 : vector<8xf32> to vector<8x1xf32>
    %338 = tpu.reciprocal %337 {approx = true} : vector<8x1xf32> -> vector<8x1xf32>
    %339 = vector.broadcast %338 : vector<8x1xf32> to vector<8x8xf32>
    %340 = arith.mulf %335, %339 : vector<8x8xf32>
    %341 = arith.truncf %340 : vector<8x8xf32> to vector<8x8xbf16>
    %cst_145 = arith.constant dense<0.000000e+00> : vector<8x16xf32>
    %342 = tpu.matmul %341, %326, %cst_145 {dimension_numbers = #tpu.dot_dimension_numbers<[1], [0], [0], [1], [0, 0, 1, 1], [], []>} : vector<8x8xbf16>, vector<8x16xbf16>, vector<8x16xf32> -> vector<8x16xf32>
    %343 = arith.truncf %342 : vector<8x16xf32> to vector<8x16xbf16>
    %344 = vector.extract_strided_slice %317 {offsets = [0, 0], sizes = [16, 32], strides = [1, 1]} : vector<32x32xf32> to vector<16x32xf32>
    %345 = arith.truncf %344 : vector<16x32xf32> to vector<16x32xbf16>
    %cst_146 = arith.constant dense<0.000000e+00> : vector<8x32xf32>
    %346 = tpu.matmul %343, %345, %cst_146 {dimension_numbers = #tpu.dot_dimension_numbers<[1], [0], [0], [1], [0, 0, 1, 1], [], []>} : vector<8x16xbf16>, vector<16x32xbf16>, vector<8x32xf32> -> vector<8x32xf32>
    %347 = arith.addf %320, %346 : vector<8x32xf32>
    %348 = vector.extract_strided_slice %313 {offsets = [0, 16], sizes = [8, 16], strides = [1, 1]} : vector<8x32xf32> to vector<8x16xf32>
    %349 = arith.truncf %348 : vector<8x16xf32> to vector<8x16xbf16>
    %350 = vector.extract_strided_slice %314 {offsets = [0, 16], sizes = [8, 16], strides = [1, 1]} : vector<8x32xf32> to vector<8x16xf32>
    %351 = arith.truncf %350 : vector<8x16xf32> to vector<8x16xbf16>
    %352 = vector.extract_strided_slice %315 {offsets = [0, 16], sizes = [8, 16], strides = [1, 1]} : vector<8x32xf32> to vector<8x16xf32>
    %353 = arith.truncf %352 : vector<8x16xf32> to vector<8x16xbf16>
    %cst_147 = arith.constant dense<0.000000e+00> : vector<8x8xf32>
    %354 = tpu.matmul %349, %351, %cst_147 {dimension_numbers = #tpu.dot_dimension_numbers<[1], [1], [0], [0], [0, 0, 1, 0], [], []>} : vector<8x16xbf16>, vector<8x16xbf16>, vector<8x8xf32> -> vector<8x8xf32>
    %cst_148 = arith.constant 2.500000e-01 : f32
    %355 = vector.broadcast %cst_148 : f32 to vector<8x8xf32>
    %356 = arith.mulf %354, %355 : vector<8x8xf32>
    %357 = arith.addf %356, %11 : vector<8x8xf32>
    %cst_149 = arith.constant dense<0xFF800000> : vector<8xf32>
    %358 = vector.multi_reduction <maximumf>, %357, %cst_149 [1] : vector<8x8xf32> to vector<8xf32>
    %359 = vector.shape_cast %358 : vector<8xf32> to vector<8x1xf32>
    %360 = vector.broadcast %359 : vector<8x1xf32> to vector<8x8xf32>
    %361 = arith.subf %357, %360 : vector<8x8xf32>
    %362 = math.exp %361 : vector<8x8xf32>
    %cst_150 = arith.constant dense<0.000000e+00> : vector<8xf32>
    %363 = vector.multi_reduction <add>, %362, %cst_150 [1] : vector<8x8xf32> to vector<8xf32>
    %364 = vector.shape_cast %363 : vector<8xf32> to vector<8x1xf32>
    %365 = tpu.reciprocal %364 {approx = true} : vector<8x1xf32> -> vector<8x1xf32>
    %366 = vector.broadcast %365 : vector<8x1xf32> to vector<8x8xf32>
    %367 = arith.mulf %362, %366 : vector<8x8xf32>
    %368 = arith.truncf %367 : vector<8x8xf32> to vector<8x8xbf16>
    %cst_151 = arith.constant dense<0.000000e+00> : vector<8x16xf32>
    %369 = tpu.matmul %368, %353, %cst_151 {dimension_numbers = #tpu.dot_dimension_numbers<[1], [0], [0], [1], [0, 0, 1, 1], [], []>} : vector<8x8xbf16>, vector<8x16xbf16>, vector<8x16xf32> -> vector<8x16xf32>
    %370 = arith.truncf %369 : vector<8x16xf32> to vector<8x16xbf16>
    %371 = vector.extract_strided_slice %317 {offsets = [16, 0], sizes = [16, 32], strides = [1, 1]} : vector<32x32xf32> to vector<16x32xf32>
    %372 = arith.truncf %371 : vector<16x32xf32> to vector<16x32xbf16>
    %cst_152 = arith.constant dense<0.000000e+00> : vector<8x32xf32>
    %373 = tpu.matmul %370, %372, %cst_152 {dimension_numbers = #tpu.dot_dimension_numbers<[1], [0], [0], [1], [0, 0, 1, 1], [], []>} : vector<8x16xbf16>, vector<16x32xbf16>, vector<8x32xf32> -> vector<8x32xf32>
    %374 = arith.addf %347, %373 : vector<8x32xf32>
    %375 = vector.broadcast %319 : vector<1x32xf32> to vector<8x32xf32>
    %376 = arith.addf %374, %375 : vector<8x32xf32>
    %377 = arith.addf %303, %376 : vector<8x32xf32>
    %c1_153 = arith.constant 1 : index
    %c0_154 = arith.constant 0 : index
    %c0_155 = arith.constant 0 : index
    %378 = vector.load %arg10[%c1_153, %c0_154, %c0_155] : memref<2x1x32xf32, #tpu.memory_space<vmem>>, vector<1x1x32xf32>
    %379 = vector.shape_cast %378 : vector<1x1x32xf32> to vector<1x32xf32>
    %c1_156 = arith.constant 1 : index
    %c0_157 = arith.constant 0 : index
    %c0_158 = arith.constant 0 : index
    %380 = vector.load %arg11[%c1_156, %c0_157, %c0_158] : memref<2x1x32xf32, #tpu.memory_space<vmem>>, vector<1x1x32xf32>
    %381 = vector.shape_cast %380 : vector<1x1x32xf32> to vector<1x32xf32>
    %cst_159 = arith.constant dense<0.000000e+00> : vector<8xf32>
    %382 = vector.multi_reduction <add>, %377, %cst_159 [1] : vector<8x32xf32> to vector<8xf32>
    %383 = vector.shape_cast %382 : vector<8xf32> to vector<8x1xf32>
    %cst_160 = arith.constant 3.200000e+01 : f32
    %384 = vector.broadcast %cst_160 : f32 to vector<8x1xf32>
    %385 = arith.divf %383, %384 : vector<8x1xf32>
    %386 = vector.broadcast %385 : vector<8x1xf32> to vector<8x32xf32>
    %387 = arith.subf %377, %386 : vector<8x32xf32>
    %388 = arith.mulf %387, %387 : vector<8x32xf32>
    %cst_161 = arith.constant dense<0.000000e+00> : vector<8xf32>
    %389 = vector.multi_reduction <add>, %388, %cst_161 [1] : vector<8x32xf32> to vector<8xf32>
    %390 = vector.shape_cast %389 : vector<8xf32> to vector<8x1xf32>
    %cst_162 = arith.constant 3.200000e+01 : f32
    %391 = vector.broadcast %cst_162 : f32 to vector<8x1xf32>
    %392 = arith.divf %390, %391 : vector<8x1xf32>
    %393 = vector.broadcast %385 : vector<8x1xf32> to vector<8x32xf32>
    %394 = arith.subf %377, %393 : vector<8x32xf32>
    %cst_163 = arith.constant 9.99999974E-6 : f32
    %395 = vector.broadcast %cst_163 : f32 to vector<8x1xf32>
    %396 = arith.addf %392, %395 : vector<8x1xf32>
    %397 = math.rsqrt %396 : vector<8x1xf32>
    %398 = vector.broadcast %397 : vector<8x1xf32> to vector<8x32xf32>
    %399 = arith.mulf %394, %398 : vector<8x32xf32>
    %400 = vector.broadcast %379 : vector<1x32xf32> to vector<8x32xf32>
    %401 = arith.mulf %399, %400 : vector<8x32xf32>
    %402 = vector.broadcast %381 : vector<1x32xf32> to vector<8x32xf32>
    %403 = arith.addf %401, %402 : vector<8x32xf32>
    %c1_164 = arith.constant 1 : index
    %c0_165 = arith.constant 0 : index
    %c0_166 = arith.constant 0 : index
    %404 = vector.load %arg12[%c1_164, %c0_165, %c0_166] : memref<2x32x32xf32, #tpu.memory_space<vmem>>, vector<1x32x32xf32>
    %405 = vector.shape_cast %404 : vector<1x32x32xf32> to vector<32x32xf32>
    %406 = arith.truncf %403 : vector<8x32xf32> to vector<8x32xbf16>
    %407 = arith.truncf %405 : vector<32x32xf32> to vector<32x32xbf16>
    %cst_167 = arith.constant dense<0.000000e+00> : vector<8x32xf32>
    %408 = tpu.matmul %406, %407, %cst_167 {dimension_numbers = #tpu.dot_dimension_numbers<[1], [0], [0], [1], [0, 0, 1, 1], [], []>} : vector<8x32xbf16>, vector<32x32xbf16>, vector<8x32xf32> -> vector<8x32xf32>
    %c1_168 = arith.constant 1 : index
    %c0_169 = arith.constant 0 : index
    %c0_170 = arith.constant 0 : index
    %409 = vector.load %arg13[%c1_168, %c0_169, %c0_170] : memref<2x1x32xf32, #tpu.memory_space<vmem>>, vector<1x1x32xf32>
    %410 = vector.shape_cast %409 : vector<1x1x32xf32> to vector<1x32xf32>
    %411 = vector.broadcast %410 : vector<1x32xf32> to vector<8x32xf32>
    %412 = arith.addf %408, %411 : vector<8x32xf32>
    %c1_171 = arith.constant 1 : index
    %c0_172 = arith.constant 0 : index
    %c0_173 = arith.constant 0 : index
    %413 = vector.load %arg14[%c1_171, %c0_172, %c0_173] : memref<2x32x64xf32, #tpu.memory_space<vmem>>, vector<1x32x64xf32>
    %414 = vector.shape_cast %413 : vector<1x32x64xf32> to vector<32x64xf32>
    %415 = arith.truncf %3 : vector<8x32xf32> to vector<8x32xbf16>
    %416 = arith.truncf %414 : vector<32x64xf32> to vector<32x64xbf16>
    %cst_174 = arith.constant dense<0.000000e+00> : vector<8x64xf32>
    %417 = tpu.matmul %415, %416, %cst_174 {dimension_numbers = #tpu.dot_dimension_numbers<[1], [0], [0], [1], [0, 0, 1, 1], [], []>} : vector<8x32xbf16>, vector<32x64xbf16>, vector<8x64xf32> -> vector<8x64xf32>
    %c1_175 = arith.constant 1 : index
    %c0_176 = arith.constant 0 : index
    %c0_177 = arith.constant 0 : index
    %418 = vector.load %arg15[%c1_175, %c0_176, %c0_177] : memref<2x1x64xf32, #tpu.memory_space<vmem>>, vector<1x1x64xf32>
    %419 = vector.shape_cast %418 : vector<1x1x64xf32> to vector<1x64xf32>
    %420 = vector.broadcast %419 : vector<1x64xf32> to vector<8x64xf32>
    %421 = arith.addf %417, %420 : vector<8x64xf32>
    %422 = vector.extract_strided_slice %421 {offsets = [0, 0], sizes = [8, 32], strides = [1, 1]} : vector<8x64xf32> to vector<8x32xf32>
    %423 = vector.extract_strided_slice %421 {offsets = [0, 32], sizes = [8, 32], strides = [1, 1]} : vector<8x64xf32> to vector<8x32xf32>
    %c1_178 = arith.constant 1 : index
    %c0_179 = arith.constant 0 : index
    %c0_180 = arith.constant 0 : index
    %424 = vector.load %arg16[%c1_178, %c0_179, %c0_180] : memref<2x32x32xf32, #tpu.memory_space<vmem>>, vector<1x32x32xf32>
    %425 = vector.shape_cast %424 : vector<1x32x32xf32> to vector<32x32xf32>
    %c1_181 = arith.constant 1 : index
    %c0_182 = arith.constant 0 : index
    %c0_183 = arith.constant 0 : index
    %426 = vector.load %arg17[%c1_181, %c0_182, %c0_183] : memref<2x1x32xf32, #tpu.memory_space<vmem>>, vector<1x1x32xf32>
    %427 = vector.shape_cast %426 : vector<1x1x32xf32> to vector<1x32xf32>
    %cst_184 = arith.constant 0.000000e+00 : f32
    %428 = vector.broadcast %cst_184 : f32 to vector<8x32xf32>
    %429 = vector.extract_strided_slice %412 {offsets = [0, 0], sizes = [8, 16], strides = [1, 1]} : vector<8x32xf32> to vector<8x16xf32>
    %430 = arith.truncf %429 : vector<8x16xf32> to vector<8x16xbf16>
    %431 = vector.extract_strided_slice %422 {offsets = [0, 0], sizes = [8, 16], strides = [1, 1]} : vector<8x32xf32> to vector<8x16xf32>
    %432 = arith.truncf %431 : vector<8x16xf32> to vector<8x16xbf16>
    %433 = vector.extract_strided_slice %423 {offsets = [0, 0], sizes = [8, 16], strides = [1, 1]} : vector<8x32xf32> to vector<8x16xf32>
    %434 = arith.truncf %433 : vector<8x16xf32> to vector<8x16xbf16>
    %cst_185 = arith.constant dense<0.000000e+00> : vector<8x8xf32>
    %435 = tpu.matmul %430, %432, %cst_185 {dimension_numbers = #tpu.dot_dimension_numbers<[1], [1], [0], [0], [0, 0, 1, 0], [], []>} : vector<8x16xbf16>, vector<8x16xbf16>, vector<8x8xf32> -> vector<8x8xf32>
    %cst_186 = arith.constant 2.500000e-01 : f32
    %436 = vector.broadcast %cst_186 : f32 to vector<8x8xf32>
    %437 = arith.mulf %435, %436 : vector<8x8xf32>
    %438 = vector.broadcast %5 : vector<1x8xf32> to vector<8x8xf32>
    %439 = arith.addf %437, %438 : vector<8x8xf32>
    %cst_187 = arith.constant dense<0xFF800000> : vector<8xf32>
    %440 = vector.multi_reduction <maximumf>, %439, %cst_187 [1] : vector<8x8xf32> to vector<8xf32>
    %441 = vector.shape_cast %440 : vector<8xf32> to vector<8x1xf32>
    %442 = vector.broadcast %441 : vector<8x1xf32> to vector<8x8xf32>
    %443 = arith.subf %439, %442 : vector<8x8xf32>
    %444 = math.exp %443 : vector<8x8xf32>
    %cst_188 = arith.constant dense<0.000000e+00> : vector<8xf32>
    %445 = vector.multi_reduction <add>, %444, %cst_188 [1] : vector<8x8xf32> to vector<8xf32>
    %446 = vector.shape_cast %445 : vector<8xf32> to vector<8x1xf32>
    %447 = tpu.reciprocal %446 {approx = true} : vector<8x1xf32> -> vector<8x1xf32>
    %448 = vector.broadcast %447 : vector<8x1xf32> to vector<8x8xf32>
    %449 = arith.mulf %444, %448 : vector<8x8xf32>
    %450 = arith.truncf %449 : vector<8x8xf32> to vector<8x8xbf16>
    %cst_189 = arith.constant dense<0.000000e+00> : vector<8x16xf32>
    %451 = tpu.matmul %450, %434, %cst_189 {dimension_numbers = #tpu.dot_dimension_numbers<[1], [0], [0], [1], [0, 0, 1, 1], [], []>} : vector<8x8xbf16>, vector<8x16xbf16>, vector<8x16xf32> -> vector<8x16xf32>
    %452 = arith.truncf %451 : vector<8x16xf32> to vector<8x16xbf16>
    %453 = vector.extract_strided_slice %425 {offsets = [0, 0], sizes = [16, 32], strides = [1, 1]} : vector<32x32xf32> to vector<16x32xf32>
    %454 = arith.truncf %453 : vector<16x32xf32> to vector<16x32xbf16>
    %cst_190 = arith.constant dense<0.000000e+00> : vector<8x32xf32>
    %455 = tpu.matmul %452, %454, %cst_190 {dimension_numbers = #tpu.dot_dimension_numbers<[1], [0], [0], [1], [0, 0, 1, 1], [], []>} : vector<8x16xbf16>, vector<16x32xbf16>, vector<8x32xf32> -> vector<8x32xf32>
    %456 = arith.addf %428, %455 : vector<8x32xf32>
    %457 = vector.extract_strided_slice %412 {offsets = [0, 16], sizes = [8, 16], strides = [1, 1]} : vector<8x32xf32> to vector<8x16xf32>
    %458 = arith.truncf %457 : vector<8x16xf32> to vector<8x16xbf16>
    %459 = vector.extract_strided_slice %422 {offsets = [0, 16], sizes = [8, 16], strides = [1, 1]} : vector<8x32xf32> to vector<8x16xf32>
    %460 = arith.truncf %459 : vector<8x16xf32> to vector<8x16xbf16>
    %461 = vector.extract_strided_slice %423 {offsets = [0, 16], sizes = [8, 16], strides = [1, 1]} : vector<8x32xf32> to vector<8x16xf32>
    %462 = arith.truncf %461 : vector<8x16xf32> to vector<8x16xbf16>
    %cst_191 = arith.constant dense<0.000000e+00> : vector<8x8xf32>
    %463 = tpu.matmul %458, %460, %cst_191 {dimension_numbers = #tpu.dot_dimension_numbers<[1], [1], [0], [0], [0, 0, 1, 0], [], []>} : vector<8x16xbf16>, vector<8x16xbf16>, vector<8x8xf32> -> vector<8x8xf32>
    %cst_192 = arith.constant 2.500000e-01 : f32
    %464 = vector.broadcast %cst_192 : f32 to vector<8x8xf32>
    %465 = arith.mulf %463, %464 : vector<8x8xf32>
    %466 = vector.broadcast %5 : vector<1x8xf32> to vector<8x8xf32>
    %467 = arith.addf %465, %466 : vector<8x8xf32>
    %cst_193 = arith.constant dense<0xFF800000> : vector<8xf32>
    %468 = vector.multi_reduction <maximumf>, %467, %cst_193 [1] : vector<8x8xf32> to vector<8xf32>
    %469 = vector.shape_cast %468 : vector<8xf32> to vector<8x1xf32>
    %470 = vector.broadcast %469 : vector<8x1xf32> to vector<8x8xf32>
    %471 = arith.subf %467, %470 : vector<8x8xf32>
    %472 = math.exp %471 : vector<8x8xf32>
    %cst_194 = arith.constant dense<0.000000e+00> : vector<8xf32>
    %473 = vector.multi_reduction <add>, %472, %cst_194 [1] : vector<8x8xf32> to vector<8xf32>
    %474 = vector.shape_cast %473 : vector<8xf32> to vector<8x1xf32>
    %475 = tpu.reciprocal %474 {approx = true} : vector<8x1xf32> -> vector<8x1xf32>
    %476 = vector.broadcast %475 : vector<8x1xf32> to vector<8x8xf32>
    %477 = arith.mulf %472, %476 : vector<8x8xf32>
    %478 = arith.truncf %477 : vector<8x8xf32> to vector<8x8xbf16>
    %cst_195 = arith.constant dense<0.000000e+00> : vector<8x16xf32>
    %479 = tpu.matmul %478, %462, %cst_195 {dimension_numbers = #tpu.dot_dimension_numbers<[1], [0], [0], [1], [0, 0, 1, 1], [], []>} : vector<8x8xbf16>, vector<8x16xbf16>, vector<8x16xf32> -> vector<8x16xf32>
    %480 = arith.truncf %479 : vector<8x16xf32> to vector<8x16xbf16>
    %481 = vector.extract_strided_slice %425 {offsets = [16, 0], sizes = [16, 32], strides = [1, 1]} : vector<32x32xf32> to vector<16x32xf32>
    %482 = arith.truncf %481 : vector<16x32xf32> to vector<16x32xbf16>
    %cst_196 = arith.constant dense<0.000000e+00> : vector<8x32xf32>
    %483 = tpu.matmul %480, %482, %cst_196 {dimension_numbers = #tpu.dot_dimension_numbers<[1], [0], [0], [1], [0, 0, 1, 1], [], []>} : vector<8x16xbf16>, vector<16x32xbf16>, vector<8x32xf32> -> vector<8x32xf32>
    %484 = arith.addf %456, %483 : vector<8x32xf32>
    %485 = vector.broadcast %427 : vector<1x32xf32> to vector<8x32xf32>
    %486 = arith.addf %484, %485 : vector<8x32xf32>
    %487 = arith.addf %403, %486 : vector<8x32xf32>
    %c1_197 = arith.constant 1 : index
    %c0_198 = arith.constant 0 : index
    %c0_199 = arith.constant 0 : index
    %488 = vector.load %arg18[%c1_197, %c0_198, %c0_199] : memref<2x1x32xf32, #tpu.memory_space<vmem>>, vector<1x1x32xf32>
    %489 = vector.shape_cast %488 : vector<1x1x32xf32> to vector<1x32xf32>
    %c1_200 = arith.constant 1 : index
    %c0_201 = arith.constant 0 : index
    %c0_202 = arith.constant 0 : index
    %490 = vector.load %arg19[%c1_200, %c0_201, %c0_202] : memref<2x1x32xf32, #tpu.memory_space<vmem>>, vector<1x1x32xf32>
    %491 = vector.shape_cast %490 : vector<1x1x32xf32> to vector<1x32xf32>
    %cst_203 = arith.constant dense<0.000000e+00> : vector<8xf32>
    %492 = vector.multi_reduction <add>, %487, %cst_203 [1] : vector<8x32xf32> to vector<8xf32>
    %493 = vector.shape_cast %492 : vector<8xf32> to vector<8x1xf32>
    %cst_204 = arith.constant 3.200000e+01 : f32
    %494 = vector.broadcast %cst_204 : f32 to vector<8x1xf32>
    %495 = arith.divf %493, %494 : vector<8x1xf32>
    %496 = vector.broadcast %495 : vector<8x1xf32> to vector<8x32xf32>
    %497 = arith.subf %487, %496 : vector<8x32xf32>
    %498 = arith.mulf %497, %497 : vector<8x32xf32>
    %cst_205 = arith.constant dense<0.000000e+00> : vector<8xf32>
    %499 = vector.multi_reduction <add>, %498, %cst_205 [1] : vector<8x32xf32> to vector<8xf32>
    %500 = vector.shape_cast %499 : vector<8xf32> to vector<8x1xf32>
    %cst_206 = arith.constant 3.200000e+01 : f32
    %501 = vector.broadcast %cst_206 : f32 to vector<8x1xf32>
    %502 = arith.divf %500, %501 : vector<8x1xf32>
    %503 = vector.broadcast %495 : vector<8x1xf32> to vector<8x32xf32>
    %504 = arith.subf %487, %503 : vector<8x32xf32>
    %cst_207 = arith.constant 9.99999974E-6 : f32
    %505 = vector.broadcast %cst_207 : f32 to vector<8x1xf32>
    %506 = arith.addf %502, %505 : vector<8x1xf32>
    %507 = math.rsqrt %506 : vector<8x1xf32>
    %508 = vector.broadcast %507 : vector<8x1xf32> to vector<8x32xf32>
    %509 = arith.mulf %504, %508 : vector<8x32xf32>
    %510 = vector.broadcast %489 : vector<1x32xf32> to vector<8x32xf32>
    %511 = arith.mulf %509, %510 : vector<8x32xf32>
    %512 = vector.broadcast %491 : vector<1x32xf32> to vector<8x32xf32>
    %513 = arith.addf %511, %512 : vector<8x32xf32>
    %c1_208 = arith.constant 1 : index
    %c0_209 = arith.constant 0 : index
    %c0_210 = arith.constant 0 : index
    %514 = vector.load %arg20[%c1_208, %c0_209, %c0_210] : memref<2x32x64xf32, #tpu.memory_space<vmem>>, vector<1x32x64xf32>
    %515 = vector.shape_cast %514 : vector<1x32x64xf32> to vector<32x64xf32>
    %516 = arith.truncf %513 : vector<8x32xf32> to vector<8x32xbf16>
    %517 = arith.truncf %515 : vector<32x64xf32> to vector<32x64xbf16>
    %cst_211 = arith.constant dense<0.000000e+00> : vector<8x64xf32>
    %518 = tpu.matmul %516, %517, %cst_211 {dimension_numbers = #tpu.dot_dimension_numbers<[1], [0], [0], [1], [0, 0, 1, 1], [], []>} : vector<8x32xbf16>, vector<32x64xbf16>, vector<8x64xf32> -> vector<8x64xf32>
    %c1_212 = arith.constant 1 : index
    %c0_213 = arith.constant 0 : index
    %c0_214 = arith.constant 0 : index
    %519 = vector.load %arg21[%c1_212, %c0_213, %c0_214] : memref<2x1x64xf32, #tpu.memory_space<vmem>>, vector<1x1x64xf32>
    %520 = vector.shape_cast %519 : vector<1x1x64xf32> to vector<1x64xf32>
    %521 = vector.broadcast %520 : vector<1x64xf32> to vector<8x64xf32>
    %522 = arith.addf %518, %521 : vector<8x64xf32>
    %cst_215 = arith.constant 5.000000e-01 : f32
    %523 = vector.broadcast %cst_215 : f32 to vector<8x64xf32>
    %524 = arith.mulf %523, %522 : vector<8x64xf32>
    %cst_216 = arith.constant 4.471500e-02 : f32
    %525 = vector.broadcast %cst_216 : f32 to vector<8x64xf32>
    %526 = arith.mulf %525, %522 : vector<8x64xf32>
    %527 = arith.mulf %526, %522 : vector<8x64xf32>
    %528 = arith.mulf %527, %522 : vector<8x64xf32>
    %529 = arith.addf %522, %528 : vector<8x64xf32>
    %cst_217 = arith.constant 0.797884583 : f32
    %530 = vector.broadcast %cst_217 : f32 to vector<8x64xf32>
    %531 = arith.mulf %530, %529 : vector<8x64xf32>
    %532 = math.tanh %531 : vector<8x64xf32>
    %cst_218 = arith.constant 1.000000e+00 : f32
    %533 = vector.broadcast %cst_218 : f32 to vector<8x64xf32>
    %534 = arith.addf %533, %532 : vector<8x64xf32>
    %535 = arith.mulf %524, %534 : vector<8x64xf32>
    %c1_219 = arith.constant 1 : index
    %c0_220 = arith.constant 0 : index
    %c0_221 = arith.constant 0 : index
    %536 = vector.load %arg22[%c1_219, %c0_220, %c0_221] : memref<2x64x32xf32, #tpu.memory_space<vmem>>, vector<1x64x32xf32>
    %537 = vector.shape_cast %536 : vector<1x64x32xf32> to vector<64x32xf32>
    %538 = arith.truncf %535 : vector<8x64xf32> to vector<8x64xbf16>
    %539 = arith.truncf %537 : vector<64x32xf32> to vector<64x32xbf16>
    %cst_222 = arith.constant dense<0.000000e+00> : vector<8x32xf32>
    %540 = tpu.matmul %538, %539, %cst_222 {dimension_numbers = #tpu.dot_dimension_numbers<[1], [0], [0], [1], [0, 0, 1, 1], [], []>} : vector<8x64xbf16>, vector<64x32xbf16>, vector<8x32xf32> -> vector<8x32xf32>
    %c1_223 = arith.constant 1 : index
    %c0_224 = arith.constant 0 : index
    %c0_225 = arith.constant 0 : index
    %541 = vector.load %arg23[%c1_223, %c0_224, %c0_225] : memref<2x1x32xf32, #tpu.memory_space<vmem>>, vector<1x1x32xf32>
    %542 = vector.shape_cast %541 : vector<1x1x32xf32> to vector<1x32xf32>
    %543 = vector.broadcast %542 : vector<1x32xf32> to vector<8x32xf32>
    %544 = arith.addf %540, %543 : vector<8x32xf32>
    %545 = arith.addf %513, %544 : vector<8x32xf32>
    %c1_226 = arith.constant 1 : index
    %c0_227 = arith.constant 0 : index
    %c0_228 = arith.constant 0 : index
    %546 = vector.load %arg24[%c1_226, %c0_227, %c0_228] : memref<2x1x32xf32, #tpu.memory_space<vmem>>, vector<1x1x32xf32>
    %547 = vector.shape_cast %546 : vector<1x1x32xf32> to vector<1x32xf32>
    %c1_229 = arith.constant 1 : index
    %c0_230 = arith.constant 0 : index
    %c0_231 = arith.constant 0 : index
    %548 = vector.load %arg25[%c1_229, %c0_230, %c0_231] : memref<2x1x32xf32, #tpu.memory_space<vmem>>, vector<1x1x32xf32>
    %549 = vector.shape_cast %548 : vector<1x1x32xf32> to vector<1x32xf32>
    %cst_232 = arith.constant dense<0.000000e+00> : vector<8xf32>
    %550 = vector.multi_reduction <add>, %545, %cst_232 [1] : vector<8x32xf32> to vector<8xf32>
    %551 = vector.shape_cast %550 : vector<8xf32> to vector<8x1xf32>
    %cst_233 = arith.constant 3.200000e+01 : f32
    %552 = vector.broadcast %cst_233 : f32 to vector<8x1xf32>
    %553 = arith.divf %551, %552 : vector<8x1xf32>
    %554 = vector.broadcast %553 : vector<8x1xf32> to vector<8x32xf32>
    %555 = arith.subf %545, %554 : vector<8x32xf32>
    %556 = arith.mulf %555, %555 : vector<8x32xf32>
    %cst_234 = arith.constant dense<0.000000e+00> : vector<8xf32>
    %557 = vector.multi_reduction <add>, %556, %cst_234 [1] : vector<8x32xf32> to vector<8xf32>
    %558 = vector.shape_cast %557 : vector<8xf32> to vector<8x1xf32>
    %cst_235 = arith.constant 3.200000e+01 : f32
    %559 = vector.broadcast %cst_235 : f32 to vector<8x1xf32>
    %560 = arith.divf %558, %559 : vector<8x1xf32>
    %561 = vector.broadcast %553 : vector<8x1xf32> to vector<8x32xf32>
    %562 = arith.subf %545, %561 : vector<8x32xf32>
    %cst_236 = arith.constant 9.99999974E-6 : f32
    %563 = vector.broadcast %cst_236 : f32 to vector<8x1xf32>
    %564 = arith.addf %560, %563 : vector<8x1xf32>
    %565 = math.rsqrt %564 : vector<8x1xf32>
    %566 = vector.broadcast %565 : vector<8x1xf32> to vector<8x32xf32>
    %567 = arith.mulf %562, %566 : vector<8x32xf32>
    %568 = vector.broadcast %547 : vector<1x32xf32> to vector<8x32xf32>
    %569 = arith.mulf %567, %568 : vector<8x32xf32>
    %570 = vector.broadcast %549 : vector<1x32xf32> to vector<8x32xf32>
    %571 = arith.addf %569, %570 : vector<8x32xf32>
    %c0_237 = arith.constant 0 : index
    %c0_238 = arith.constant 0 : index
    %572 = vector.load %arg26[%c0_237, %c0_238] : memref<32x128xf32, #tpu.memory_space<vmem>>, vector<32x128xf32>
    %573 = arith.truncf %571 : vector<8x32xf32> to vector<8x32xbf16>
    %574 = arith.truncf %572 : vector<32x128xf32> to vector<32x128xbf16>
    %cst_239 = arith.constant dense<0.000000e+00> : vector<8x128xf32>
    %575 = tpu.matmul %573, %574, %cst_239 {dimension_numbers = #tpu.dot_dimension_numbers<[1], [0], [0], [1], [0, 0, 1, 1], [], []>} : vector<8x32xbf16>, vector<32x128xbf16>, vector<8x128xf32> -> vector<8x128xf32>
    %c0_240 = arith.constant 0 : index
    %c0_241 = arith.constant 0 : index
    %576 = vector.load %arg27[%c0_240, %c0_241] : memref<1x128xf32, #tpu.memory_space<vmem>>, vector<1x128xf32>
    %577 = vector.broadcast %576 : vector<1x128xf32> to vector<8x128xf32>
    %578 = arith.addf %575, %577 : vector<8x128xf32>
    %c0_242 = arith.constant 0 : index
    %c0_243 = arith.constant 0 : index
    %c0_244 = arith.constant 0 : index
    %579 = vector.load %arg28[%c0_242, %c0_243, %c0_244] : memref<1x8x128xf32, #tpu.memory_space<vmem>>, vector<1x8x128xf32>
    %580 = vector.shape_cast %579 : vector<1x8x128xf32> to vector<8x128xf32>
    %581 = vector.shape_cast %578 : vector<8x128xf32> to vector<1x8x128xf32>
    tpu.vector_store %arg28[%c0_242, %c0_243, %c0_244], %581 {strides = array<i32>} : memref<1x8x128xf32, #tpu.memory_space<vmem>>, vector<1x8x128xf32>,
    return
  }
  func.func @transform_0(%arg0: i32) -> (i32, i32, i32) {
    %c0_i32 = arith.constant 0 : i32
    %c0_i32_0 = arith.constant 0 : i32
    %c0_i32_1 = arith.constant 0 : i32
    return %arg0, %c0_i32, %c0_i32_0 : i32, i32, i32
  }
  func.func @transform_1(%arg0: i32) -> (i32, i32, i32) {
    %c0_i32 = arith.constant 0 : i32
    %c0_i32_0 = arith.constant 0 : i32
    %c0_i32_1 = arith.constant 0 : i32
    return %arg0, %c0_i32, %c0_i32_0 : i32, i32, i32
  }
  func.func @transform_2(%arg0: i32) -> (i32, i32, i32) {
    %c0_i32 = arith.constant 0 : i32
    %c0_i32_0 = arith.constant 0 : i32
    %c0_i32_1 = arith.constant 0 : i32
    return %arg0, %c0_i32, %c0_i32_0 : i32, i32, i32
  }
  func.func @transform_3(%arg0: i32) -> (i32, i32) {
    %c0_i32 = arith.constant 0 : i32
    %c0_i32_0 = arith.constant 0 : i32
    %c0_i32_1 = arith.constant 0 : i32
    return %c0_i32, %c0_i32_0 : i32, i32
  }
  func.func @transform_4(%arg0: i32) -> (i32, i32) {
    %c0_i32 = arith.constant 0 : i32
    %c0_i32_0 = arith.constant 0 : i32
    %c0_i32_1 = arith.constant 0 : i32
    return %c0_i32, %c0_i32_0 : i32, i32
  }
  func.func @transform_5(%arg0: i32) -> (i32, i32, i32) {
    %c0_i32 = arith.constant 0 : i32
    %c0_i32_0 = arith.constant 0 : i32
    %c0_i32_1 = arith.constant 0 : i32
    %c0_i32_2 = arith.constant 0 : i32
    return %c0_i32, %c0_i32_0, %c0_i32_1 : i32, i32, i32
  }
  func.func @transform_6(%arg0: i32) -> (i32, i32, i32) {
    %c0_i32 = arith.constant 0 : i32
    %c0_i32_0 = arith.constant 0 : i32
    %c0_i32_1 = arith.constant 0 : i32
    %c0_i32_2 = arith.constant 0 : i32
    return %c0_i32, %c0_i32_0, %c0_i32_1 : i32, i32, i32
  }
  func.func @transform_7(%arg0: i32) -> (i32, i32, i32) {
    %c0_i32 = arith.constant 0 : i32
    %c0_i32_0 = arith.constant 0 : i32
    %c0_i32_1 = arith.constant 0 : i32
    %c0_i32_2 = arith.constant 0 : i32
    return %c0_i32, %c0_i32_0, %c0_i32_1 : i32, i32, i32
  }
  func.func @transform_8(%arg0: i32) -> (i32, i32, i32) {
    %c0_i32 = arith.constant 0 : i32
    %c0_i32_0 = arith.constant 0 : i32
    %c0_i32_1 = arith.constant 0 : i32
    %c0_i32_2 = arith.constant 0 : i32
    return %c0_i32, %c0_i32_0, %c0_i32_1 : i32, i32, i32
  }
  func.func @transform_9(%arg0: i32) -> (i32, i32, i32) {
    %c0_i32 = arith.constant 0 : i32
    %c0_i32_0 = arith.constant 0 : i32
    %c0_i32_1 = arith.constant 0 : i32
    %c0_i32_2 = arith.constant 0 : i32
    return %c0_i32, %c0_i32_0, %c0_i32_1 : i32, i32, i32
  }
  func.func @transform_10(%arg0: i32) -> (i32, i32, i32) {
    %c0_i32 = arith.constant 0 : i32
    %c0_i32_0 = arith.constant 0 : i32
    %c0_i32_1 = arith.constant 0 : i32
    %c0_i32_2 = arith.constant 0 : i32
    return %c0_i32, %c0_i32_0, %c0_i32_1 : i32, i32, i32
  }
  func.func @transform_11(%arg0: i32) -> (i32, i32, i32) {
    %c0_i32 = arith.constant 0 : i32
    %c0_i32_0 = arith.constant 0 : i32
    %c0_i32_1 = arith.constant 0 : i32
    %c0_i32_2 = arith.constant 0 : i32
    return %c0_i32, %c0_i32_0, %c0_i32_1 : i32, i32, i32
  }
  func.func @transform_12(%arg0: i32) -> (i32, i32, i32) {
    %c0_i32 = arith.constant 0 : i32
    %c0_i32_0 = arith.constant 0 : i32
    %c0_i32_1 = arith.constant 0 : i32
    %c0_i32_2 = arith.constant 0 : i32
    return %c0_i32, %c0_i32_0, %c0_i32_1 : i32, i32, i32
  }
  func.func @transform_13(%arg0: i32) -> (i32, i32, i32) {
    %c0_i32 = arith.constant 0 : i32
    %c0_i32_0 = arith.constant 0 : i32
    %c0_i32_1 = arith.constant 0 : i32
    %c0_i32_2 = arith.constant 0 : i32
    return %c0_i32, %c0_i32_0, %c0_i32_1 : i32, i32, i32
  }
  func.func @transform_14(%arg0: i32) -> (i32, i32, i32) {
    %c0_i32 = arith.constant 0 : i32
    %c0_i32_0 = arith.constant 0 : i32
    %c0_i32_1 = arith.constant 0 : i32
    %c0_i32_2 = arith.constant 0 : i32
    return %c0_i32, %c0_i32_0, %c0_i32_1 : i32, i32, i32
  }
  func.func @transform_15(%arg0: i32) -> (i32, i32, i32) {
    %c0_i32 = arith.constant 0 : i32
    %c0_i32_0 = arith.constant 0 : i32
    %c0_i32_1 = arith.constant 0 : i32
    %c0_i32_2 = arith.constant 0 : i32
    return %c0_i32, %c0_i32_0, %c0_i32_1 : i32, i32, i32
  }
  func.func @transform_16(%arg0: i32) -> (i32, i32, i32) {
    %c0_i32 = arith.constant 0 : i32
    %c0_i32_0 = arith.constant 0 : i32
    %c0_i32_1 = arith.constant 0 : i32
    %c0_i32_2 = arith.constant 0 : i32
    return %c0_i32, %c0_i32_0, %c0_i32_1 : i32, i32, i32
  }
  func.func @transform_17(%arg0: i32) -> (i32, i32, i32) {
    %c0_i32 = arith.constant 0 : i32
    %c0_i32_0 = arith.constant 0 : i32
    %c0_i32_1 = arith.constant 0 : i32
    %c0_i32_2 = arith.constant 0 : i32
    return %c0_i32, %c0_i32_0, %c0_i32_1 : i32, i32, i32
  }
  func.func @transform_18(%arg0: i32) -> (i32, i32, i32) {
    %c0_i32 = arith.constant 0 : i32
    %c0_i32_0 = arith.constant 0 : i32
    %c0_i32_1 = arith.constant 0 : i32
    %c0_i32_2 = arith.constant 0 : i32
    return %c0_i32, %c0_i32_0, %c0_i32_1 : i32, i32, i32
  }
  func.func @transform_19(%arg0: i32) -> (i32, i32, i32) {
    %c0_i32 = arith.constant 0 : i32
    %c0_i32_0 = arith.constant 0 : i32
    %c0_i32_1 = arith.constant 0 : i32
    %c0_i32_2 = arith.constant 0 : i32
    return %c0_i32, %c0_i32_0, %c0_i32_1 : i32, i32, i32
  }
  func.func @transform_20(%arg0: i32) -> (i32, i32, i32) {
    %c0_i32 = arith.constant 0 : i32
    %c0_i32_0 = arith.constant 0 : i32
    %c0_i32_1 = arith.constant 0 : i32
    %c0_i32_2 = arith.constant 0 : i32
    return %c0_i32, %c0_i32_0, %c0_i32_1 : i32, i32, i32
  }
  func.func @transform_21(%arg0: i32) -> (i32, i32, i32) {
    %c0_i32 = arith.constant 0 : i32
    %c0_i32_0 = arith.constant 0 : i32
    %c0_i32_1 = arith.constant 0 : i32
    %c0_i32_2 = arith.constant 0 : i32
    return %c0_i32, %c0_i32_0, %c0_i32_1 : i32, i32, i32
  }
  func.func @transform_22(%arg0: i32) -> (i32, i32, i32) {
    %c0_i32 = arith.constant 0 : i32
    %c0_i32_0 = arith.constant 0 : i32
    %c0_i32_1 = arith.constant 0 : i32
    %c0_i32_2 = arith.constant 0 : i32
    return %c0_i32, %c0_i32_0, %c0_i32_1 : i32, i32, i32
  }
  func.func @transform_23(%arg0: i32) -> (i32, i32, i32) {
    %c0_i32 = arith.constant 0 : i32
    %c0_i32_0 = arith.constant 0 : i32
    %c0_i32_1 = arith.constant 0 : i32
    %c0_i32_2 = arith.constant 0 : i32
    return %c0_i32, %c0_i32_0, %c0_i32_1 : i32, i32, i32
  }
  func.func @transform_24(%arg0: i32) -> (i32, i32, i32) {
    %c0_i32 = arith.constant 0 : i32
    %c0_i32_0 = arith.constant 0 : i32
    %c0_i32_1 = arith.constant 0 : i32
    %c0_i32_2 = arith.constant 0 : i32
    return %c0_i32, %c0_i32_0, %c0_i32_1 : i32, i32, i32
  }
  func.func @transform_25(%arg0: i32) -> (i32, i32) {
    %c0_i32 = arith.constant 0 : i32
    %c0_i32_0 = arith.constant 0 : i32
    %c0_i32_1 = arith.constant 0 : i32
    return %c0_i32, %c0_i32_0 : i32, i32
  }
  func.func @transform_26(%arg0: i32) -> (i32, i32) {
    %c0_i32 = arith.constant 0 : i32
    %c0_i32_0 = arith.constant 0 : i32
    %c0_i32_1 = arith.constant 0 : i32
    return %c0_i32, %c0_i32_0 : i32, i32
  }
  func.func @transform_27(%arg0: i32) -> (i32, i32, i32) {
    %c0_i32 = arith.constant 0 : i32
    %c0_i32_0 = arith.constant 0 : i32
    %c0_i32_1 = arith.constant 0 : i32
    return %arg0, %c0_i32, %c0_i32_0 : i32, i32, i32
  }
}

</mosaic_0001>

<bundles_post_ra>
// kernel: _lambda_.2
= control target key start
LH: loop header
LB: loop body
LE: loop exit
PB: predicated region body
PF: predicated region fallthrough
CT: control target
= control target key end

     0   :  { %s2187_s21 = smov 0   ;;  %s2524_s0 = inlined_call_operand.vmem [shape: f32[2,8,32], index: 0, kind: input, shape index: {}]   ;;  %s2525_s1 = inlined_call_operand.vmem [shape: f32[2,1,8], index: 1, kind: input, shape index: {}]   ;;  %s2526_s2 = inlined_call_operand.vmem [shape: f32[1,32], index: 2, kind: input, shape index: {}]   ;;  %s2527_s3 = inlined_call_operand.vmem [shape: f32[1,32], index: 3, kind: input, shape index: {}]   ;;  %s2528_s4 = inlined_call_operand.vmem [shape: f32[2,32,96], index: 4, kind: input, shape index: {}]   ;;  %s2529_s5 = inlined_call_operand.vmem [shape: f32[2,1,96], index: 5, kind: input, shape index: {}]   ;;  %s2530_s6 = inlined_call_operand.vmem [shape: f32[2,32,32], index: 6, kind: input, shape index: {}]   ;;  %s2531_s7 = inlined_call_operand.vmem [shape: f32[2,1,32], index: 7, kind: input, shape index: {}, may-alias: {7,9,13,15}]   ;;  %s2532_s8 = inlined_call_operand.vmem [shape: f32[2,1,32], index: 8, kind: input, shape index: {}, may-alias: {8,14}]   ;;  %s2533_s9 = inlined_call_operand.vmem [shape: f32[2,1,32], index: 9, kind: input, shape index: {}, may-alias: {7,9,13,15}]   ;;  %s2534_s10 = inlined_call_operand.vmem [shape: f32[2,32,64], index: 10, kind: input, shape index: {}]   ;;  %s2535_s11 = inlined_call_operand.vmem [shape: f32[2,1,64], index: 11, kind: input, shape index: {}]   ;;  %s2536_s12 = inlined_call_operand.vmem [shape: f32[2,64,32], index: 12, kind: input, shape index: {}]   ;;  %s2537_s13 = inlined_call_operand.vmem [shape: f32[2,1,32], index: 13, kind: input, shape index: {}, may-alias: {7,9,13,15}]   ;;  %s2538_s14 = inlined_call_operand.vmem [shape: f32[2,1,32], index: 14, kind: input, shape index: {}, may-alias: {8,14}]   ;;  %s2539_s15 = inlined_call_operand.vmem [shape: f32[2,1,32], index: 15, kind: input, shape index: {}, may-alias: {7,9,13,15}]   ;;  %s2540_s16 = inlined_call_operand.vmem [shape: f32[2,8,32], index: 16, kind: output, shape index: {}]  }
   0x1   :  { %2543 = sst [smem:[#allocation2_spill]] %s2524_s0 }
   0x2 LB: > { %s1794_s22 = sadd.s32 4294967295, %s2093_s21   ;;  %p1798_p0 = scmp.ge.s32.totalorder %s2093_s21, 1  ;;  %s2093_s21 = sphi %s2187_s21, %s26_s21  }
   0x3   : > { %p469_p1 = scmp.lt.s32.totalorder %s2093_s21, 3 }
   0x5   : > { %p470_p2 = pnand %p1798_p0, %p469_p1 }
   0x6   : > { %p520_p3 = scmp.lt.s32.totalorder (!%p470_p2), %s1794_s22, 1  ;;  %s2544_s26 = sld [smem:[#allocation2_spill]] (!%p470_p2) }
   0x7   : > { %473 = sbr.rel (%p470_p2) target bundleno = 4875 (0x130b), region = 84  ;;  %s2097_s30 = smov (!%p470_p2), 112  }
   0x8   : > { %s2098_s0 = smov (!%p470_p2), 96   ;;  %s2099_s17 = smov (!%p470_p2), 80  }
   0x9   : > { %s2542_s24 = smov (!%p470_p2), 48   ;;  %s2101_s25 = smov (!%p470_p2), 64  }
   0xc   : > { %s2548_s22 = smov (!%p520_p3, %s1794_s22), 1  ;;  %vm536_vm0 = vcmask 261120   ;;  %v567_v7 = vld [vmem:[%s2528_s4 + $0x10] sm:$0xff]  ;;  %v568_v8 = vld [vmem:[%s2528_s4 + $0x18] sm:$0xff]  ;;  %v565_v9 = vld [vmem:[%s2528_s4] sm:$0xff]  ;;  %v2095_v10 = vmov 0.0  }
   0xd   : > { %s2541_s23 = sshll.u32 %s2548_s22, 3  ;;  %1914 = vmatprep.subr.bf16.mxu1 %v2095_v10  ;;  %v571_v11 = vpack.c.bf16 %v568_v8, %v567_v7  ;;  %v566_v12 = vld [vmem:[%s2528_s4 + $0x8] sm:$0xff]  ;;  %vm2096_vm1 = vmmov 0   ;;  %1928 = vmatprep.subr.bf16.mxu0 %v2095_v10  ;;  %v1801_v18 = vld [vmem:[%s2526_s2] ss:$0 sm:$0xff]  ;;  %vm631_vm2 = vcmask 130048   ;;  %s526_s20 = scalar_lea.vmem %s2525_s1, %s2548_s22 }
   0xe   : > { %s523_s27 = scalar_lea.vmem %s2544_s26, %s2541_s23  ;;  %1918 = vmatprep.mubr.msk.bf16.mxu1 %vm2096_vm1, %v2095_v10  ;;  %1930 = vmatprep.mubr.msk.bf16.mxu0 %vm2096_vm1, %v2095_v10  ;;  %v570_v13 = vpack.c.bf16 %v566_v12, %v565_v9  ;;  %v1802_v20 = vld [vmem:[%s2527_s3] ss:$0 sm:$0xff]  ;;  %vm686_vm3 = vcmask 64512   ;;  %vm704_vm4 = vcmask 1043456   ;;  %vm1073_vm5 = vcmask 523264   ;;  %s2546_s23 = sshll.u32 %s2548_s22, 3 }
   0xf   : > { %v532_v0 = vld [vmem:[%s523_s27] sm:$0xff]  ;;  %1915 = vmatpush3.bf16.msra.mxu1 %v571_v11  ;;  %v623_v11 = vld [vmem:[%s2530_s6 + $0x8] sm:$0xff]  ;;  %s530_s28 = scalar_lea.vmem %s2540_s16, %s2546_s23 }
  0x10   : > { %v537_v1 = vsel %vm536_vm0, %v532_v0, 0.0  ;;  %1916 = vmatprep.subr.bf16.mxu1 %v2095_v10  ;;  %v1803_v24 = vld [vmem:[%s2529_s5] ss:$0 sm:$0xff] }
  0x11   : > { %538 = vadd.xlane.f32.xlu0 %v537_v1  ;;  %v2258_v36 = vld [vmem:[%s526_s20] ss:$0 sm:$0xff] }
  0x12   : > { %v622_v9 = vld [vmem:[%s2530_s6] sm:$0xff] }
  0x13   : > { %1917 = vmatpush3.bf16.msra.mxu1 %v570_v13  ;;  %v749_v12 = vpack.c.bf16 %v623_v11, %v622_v9  ;;  %v624_v13 = vld [vmem:[%s2530_s6 + $0x10] sm:$0xff]  ;;  %v1815_v9 = vld [vmem:[%s2535_s11] ss:$0 sm:$0xff] }
  0x14   : > { %1922 = vmatprep.subr.bf16.mxu1 %v2095_v10 }
  0x9a   : > { %v539_v2 = vpop.xlane.xlu0 %538 }
  0x9b   : > { %v541_v3 = vmul.f32 0.03125, %v539_v2 }
  0x9d   : > { %v542_v4 = vsub.f32 %v532_v0, %v541_v3 }
  0x9f   : > { %v543_v5 = vmul.f32 %v542_v4, %v542_v4 }
  0xa1   : > { %v544_v6 = vsel %vm536_vm0, %v543_v5, 0.0 }
  0xa2   : > { %545 = vadd.xlane.f32.xlu0 %v544_v6 }
 0x12b   : > { %v546_v14 = vpop.xlane.xlu0 %545 }
 0x12c   : > { %v547_v15 = vmul.f32 0.03125, %v546_v14  ;;  %v625_v14 = vld [vmem:[%s2530_s6 + $0x18] sm:$0xff] }
 0x12e   : > { %v548_v16 = vadd.f32 1e-05, %v547_v15  ;;  %v863_v15 = vpack.c.bf16 %v625_v14, %v624_v13 }
 0x130   : > { %2057 = vrsqrt.f32 %v548_v16 }
 0x13d   : > { %v2058_v17 = vpop.eup %2057 }
 0x13e   : > { %v550_v19 = vmul.f32 %v2058_v17, %v542_v4 }
 0x140   : > { %v557_v21 = vmul.f32 %v1801_v18, %v550_v19 }
 0x142   : > { %v2231_v22 = vadd.f32 %v1802_v20, %v557_v21 }
 0x144   : > { %v569_v23 = vpack.c.bf16 %v2231_v22, %v2231_v22 }
 0x146   : > { %1919 = vmatmul.mubr.msk.bf16.vlgmr.msra.gmra.mxu1 %vm536_vm0, %v569_v23 }
 0x147   : > { %1924 = vmatprep.mubr.msk.bf16.mxu1 %vm2096_vm1, %v2095_v10 }
 0x206   : > { %v616_v25 = vpop.f32.mrf.mxu1 }
 0x207   : > { %v617_v26 = vadd.f32 %v1803_v24, %v616_v25 }
 0x208   : > { %v1920_v27 = vpop.f32.mrf.mxu1 }
 0x209   : > { %v627_v28 = vpack.c.bf16 %v617_v26, %v617_v26 }
 0x20a   : > { %v619_v29 = vpop.f32.mrf.mxu1 }
 0x20b   : > { %750 = vrot.lane.b32.xlu0 %v627_v28, %s2097_s30  ;;  %629 = vrot.lane.b32.xlu1 %v627_v28, %s2098_s0 }
 0x20c   : > { %v1921_v30 = vpop.f32.mrf.mxu1 }
 0x20f   : > { %752 = vrot.lane.b32.xlu1 %v627_v28, %s2099_s17 }
 0x27d   : > { %v630_v31 = vpop.permute.xlu1 %629  ;;  %v751_v35 = vpop.permute.xlu0 %750 }
 0x27e   : > { %v636_v32 = vsel %vm631_vm2, %v630_v31, 0  ;;  %v1812_v31 = vld [vmem:[%s2531_s7] ss:$0 sm:$0xff] }
 0x27f   : > { %1923 = vmatpush3.bf16.xpose.msra.mxu1 %v636_v32 }
 0x280   : > { %1934 = vmatprep.subr.bf16.mxu1 %v2095_v10 }
 0x281   : > { %v753_v33 = vpop.permute.xlu1 %752 }
 0x282   : > { %v758_v34 = vsel %vm631_vm2, %v753_v33, 0 }
 0x286   : > { %1925 = vmatmul.mubr.msk.bf16.vlgmr.msra.gmra.mxu1 %vm631_vm2, %v627_v28 }
 0x287   : > { %1935 = vmatpush3.bf16.xpose.msra.mxu1 %v758_v34  ;;  %1936 = vmatprep.mubr.msk.bf16.mxu1 %vm2096_vm1, %v2095_v10 }
 0x288   : > { %1946 = vmatprep.subr.bf16.mxu1 %v2095_v10 }
 0x28e   : > { %1937 = vmatmul.mubr.msk.bf16.vlgmr.msra.gmra.mxu1 %vm631_vm2, %v751_v35 }
 0x28f   : > { %1948 = vmatprep.mubr.msk.bf16.mxu1 %vm2096_vm1, %v2095_v10  ;;  %1947 = vmatpush3.bf16.msra.mxu1 %v863_v15 }
 0x290   : > { %1958 = vmatprep.subr.bf16.mxu1 %v2095_v10 }
 0x346   : > { %v672_v37 = vpop.f32.mrf.mxu1 }
 0x347   : > { %v678_v38 = vmul.f32 0.25, %v672_v37 }
 0x348   : > { %v1926_v39 = vpop.f32.mrf.mxu1 }
 0x349   : > { %v685_v40 = vadd.f32 %v2258_v36, %v678_v38 }
 0x34a   : > { %v675_v41 = vpop.f32.mrf.mxu1 }
 0x34b   : > { %v687_v42 = vsel %vm686_vm3, %v685_v40, -inf }
 0x34c   : > { %688 = vmax.xlane.f32.xlu1 %v687_v42  ;;  %v1927_v43 = vpop.f32.mrf.mxu1 }
 0x34e   : > { %v794_v44 = vpop.f32.mrf.mxu1 }
 0x34f   : > { %v800_v45 = vmul.f32 0.25, %v794_v44 }
 0x350   : > { %v1938_v46 = vpop.f32.mrf.mxu1 }
 0x351   : > { %v801_v47 = vadd.f32 %v2258_v36, %v800_v45  ;;  %v989_v46 = vld [vmem:[%s2534_s10 + $0x10] sm:$0xff] }
 0x352   : > { %v797_v48 = vpop.f32.mrf.mxu1 }
 0x353   : > { %v802_v49 = vsel %vm686_vm3, %v801_v47, -inf  ;;  %v987_v48 = vld [vmem:[%s2534_s10] sm:$0xff] }
 0x354   : > { %803 = vmax.xlane.f32.xlu0 %v802_v49  ;;  %v1939_v50 = vpop.f32.mrf.mxu1  ;;  %v988_v49 = vld [vmem:[%s2534_s10 + $0x8] sm:$0xff] }
 0x355   : > { %v992_v50 = vpack.c.bf16 %v988_v49, %v987_v48 }
 0x36a   : > { %814 = vrot.lane.b32.xlu0 %v627_v28, %s2542_s24 }
 0x3d5   : > { %v689_v51 = vpop.xlane.xlu1 %688 }
 0x3d6   : > { %v690_v52 = vsub.f32 %v685_v40, %v689_v51 }
 0x3d8   : > { %v691_v53 = vmul.f32 1.442695, %v690_v52 }
 0x3da   : > { %2059 = vpow2.f32 %v691_v53 }
 0x3dd   : > { %v804_v54 = vpop.xlane.xlu0 %803 }
 0x3de   : > { %v805_v55 = vsub.f32 %v801_v47, %v804_v54  ;;  %v990_v47 = vld [vmem:[%s2534_s10 + $0x18] sm:$0xff] }
 0x3e0   : > { %v806_v56 = vmul.f32 1.442695, %v805_v55  ;;  %v1813_v55 = vld [vmem:[%s2532_s8] ss:$0 sm:$0xff] }
 0x3e1   : > { %v815_v3 = vpop.permute.xlu0 %814 }
 0x3e2   : > { %2061 = vpow2.f32 %v806_v56  ;;  %v820_v5 = vsel %vm704_vm4, %v815_v3, 0  ;;  %v1055_v3 = vld [vmem:[%s2536_s12 + $0x10] sm:$0xff] }
 0x3e7   : > { %v2060_v57 = vpop.eup %2059 }
 0x3e8   : > { %v693_v58 = vsel %vm686_vm3, %v2060_v57, 0.0 }
 0x3e9   : > { %694 = vadd.xlane.f32.xlu1 %v693_v58 }
 0x3ef   : > { %v2062_v59 = vpop.eup %2061 }
 0x3f0   : > { %v808_v60 = vsel %vm686_vm3, %v2062_v59, 0.0 }
 0x3f1   : > { %809 = vadd.xlane.f32.xlu1 %v808_v60 }
 0x402   : > { %699 = vrot.lane.b32.xlu1 %v627_v28, %s2101_s25 }
 0x472   : > { %v695_v61 = vpop.xlane.xlu1 %694 }
 0x473   : > { %2063 = vrcp.f32 %v695_v61  ;;  %v1059_v61 = vld [vmem:[%s2536_s12 + $0x30] sm:$0xff] }
 0x47a   : > { %v810_v62 = vpop.xlane.xlu1 %809 }
 0x47b   : > { %2065 = vrcp.f32 %v810_v62  ;;  %v1060_v62 = vld [vmem:[%s2536_s12 + $0x38] sm:$0xff] }
 0x47e   : > { %v700_v63 = vpop.permute.xlu1 %699 }
 0x47f   : > { %v706_v0 = vsel %vm704_vm4, %v700_v63, 0  ;;  %v1057_v63 = vld [vmem:[%s2536_s12 + $0x20] sm:$0xff] }
 0x480   : > { %v2064_v1 = vpop.eup %2063  ;;  %1929 = vmatpush3.bf16.msra.mxu0 %v706_v0  ;;  %v1065_v0 = vpack.c.bf16 %v1060_v62, %v1059_v61 }
 0x481   : > { %1940 = vmatprep.subr.bf16.mxu0 %v2095_v10  ;;  %v697_v2 = vmul.f32 %v2064_v1, %v2060_v57  ;;  %v1814_v57 = vld [vmem:[%s2533_s9] ss:$0 sm:$0xff]  ;;  %v1058_v1 = vld [vmem:[%s2536_s12 + $0x28] sm:$0xff] }
 0x483   : > { %v698_v4 = vpack.c.bf16 %v697_v2, %v697_v2  ;;  %v1064_v2 = vpack.c.bf16 %v1058_v1, %v1057_v63 }
 0x485   : > { %1931 = vmatmul.mubr.msk.bf16.vlgmr.msra.gmra.mxu0 %vm686_vm3, %v698_v4  ;;  %v1056_v4 = vld [vmem:[%s2536_s12 + $0x18] sm:$0xff] }
 0x486   : > { %1941 = vmatpush3.bf16.msra.mxu0 %v820_v5  ;;  %1942 = vmatprep.mubr.msk.bf16.mxu0 %vm2096_vm1, %v2095_v10  ;;  %v1063_v5 = vpack.c.bf16 %v1056_v4, %v1055_v3 }
 0x487   : > { %1952 = vmatprep.subr.bf16.mxu0 %v2095_v10 }
 0x488   : > { %v2066_v6 = vpop.eup %2065 }
 0x489   : > { %v812_v7 = vmul.f32 %v2066_v6, %v2062_v59  ;;  %v1053_v6 = vld [vmem:[%s2536_s12] sm:$0xff] }
 0x48b   : > { %v813_v8 = vpack.c.bf16 %v812_v7, %v812_v7  ;;  %v1054_v7 = vld [vmem:[%s2536_s12 + $0x8] sm:$0xff] }
 0x48d   : > { %1943 = vmatmul.mubr.msk.bf16.vlgmr.msra.gmra.mxu0 %vm686_vm3, %v813_v8  ;;  %v1062_v8 = vpack.c.bf16 %v1054_v7, %v1053_v6 }
 0x48e   : > { %1954 = vmatprep.mubr.msk.bf16.mxu0 %vm2096_vm1, %v2095_v10  ;;  %1953 = vmatpush3.bf16.msra.mxu0 %v749_v12 }
 0x48f   : > { %1966 = vmatprep.subr.bf16.mxu0 %v2095_v10 }
 0x545   : > { %v742_v16 = vpop.f32.mrf.mxu0 }
 0x546   : > { %v748_v17 = vpack.c.bf16 %v742_v16, %v742_v16 }
 0x547   : > { %v1932_v18 = vpop.f32.mrf.mxu0 }
 0x548   : > { %1955 = vmatmul.mubr.msk.bf16.vlgmr.msra.gmra.mxu0 %vm631_vm2, %v748_v17 }
 0x549   : > { %v745_v19 = vpop.f32.mrf.mxu0  ;;  %1974 = vmatprep.mubr.msk.bf16.mxu0 %vm2096_vm1, %v2095_v10  ;;  %1967 = vmatpush3.bf16.msra.mxu0 %v1065_v0 }
 0x54a   : > { %1968 = vmatprep.subr.bf16.mxu0 %v2095_v10 }
 0x54b   : > { %v1933_v20 = vpop.f32.mrf.mxu0 }
 0x54d   : > { %v856_v21 = vpop.f32.mrf.mxu0  ;;  %1969 = vmatpush3.bf16.msra.mxu0 %v1064_v2 }
 0x54e   : > { %v862_v23 = vpack.c.bf16 %v856_v21, %v856_v21  ;;  %1970 = vmatprep.subr.bf16.mxu0 %v2095_v10 }
 0x54f   : > { %v1944_v24 = vpop.f32.mrf.mxu0 }
 0x550   : > { %1949 = vmatmul.mubr.msk.bf16.vlgmr.msra.gmra.mxu1 %vm631_vm2, %v862_v23 }
 0x551   : > { %v859_v25 = vpop.f32.mrf.mxu0  ;;  %1962 = vmatprep.mubr.msk.bf16.mxu1 %vm2096_vm1, %v2095_v10  ;;  %1971 = vmatpush3.bf16.msra.mxu0 %v1063_v5 }
 0x552   : > { %1972 = vmatprep.subr.bf16.mxu0 %v2095_v10 }
 0x553   : > { %v1945_v26 = vpop.f32.mrf.mxu0 }
 0x555   : > { %1973 = vmatpush3.bf16.msra.mxu0 %v1062_v8 }
 0x556   : > { %1992 = vmatprep.subr.bf16.mxu0 %v2095_v10 }
 0x608   : > { %v944_v27 = vpop.f32.mrf.mxu0 }
 0x60a   : > { %v1956_v28 = vpop.f32.mrf.mxu0 }
 0x60c   : > { %v947_v29 = vpop.f32.mrf.mxu0 }
 0x60e   : > { %v1957_v30 = vpop.f32.mrf.mxu0 }
 0x610   : > { %v901_v32 = vpop.f32.mrf.mxu1 }
 0x611   : > { %v945_v33 = vadd.f32 %v944_v27, %v901_v32  ;;  %v1817_v27 = vld [vmem:[%s2537_s13] ss:$0 sm:$0xff] }
 0x612   : > { %v1950_v34 = vpop.f32.mrf.mxu1 }
 0x613   : > { %v956_v35 = vadd.f32 %v1812_v31, %v945_v33 }
 0x614   : > { %v904_v37 = vpop.f32.mrf.mxu1 }
 0x615   : > { %v957_v38 = vadd.f32 %v956_v35, %v2231_v22  ;;  %v993_v22 = vpack.c.bf16 %v990_v47, %v989_v46 }
 0x616   : > { %v1951_v39 = vpop.f32.mrf.mxu1 }
 0x617   : > { %v960_v40 = vsel %vm536_vm0, %v957_v38, 0.0  ;;  %1959 = vmatpush3.bf16.msra.mxu1 %v993_v22 }
 0x618   : > { %961 = vadd.xlane.f32.xlu1 %v960_v40  ;;  %1960 = vmatprep.subr.bf16.mxu1 %v2095_v10 }
 0x61b   : > { %1961 = vmatpush3.bf16.msra.mxu1 %v992_v50  ;;  %v1819_v50 = vld [vmem:[%s2538_s14] ss:$0 sm:$0xff] }
 0x61c   : > { %1978 = vmatprep.subr.bf16.mxu1 %v2095_v10 }
 0x6a1   : > { %v962_v41 = vpop.xlane.xlu1 %961 }
 0x6a2   : > { %v963_v42 = vmul.f32 0.03125, %v962_v41  ;;  %v1823_v41 = vld [vmem:[%s2528_s4 + $0x30] sm:$0xff] }
 0x6a4   : > { %v964_v43 = vsub.f32 %v957_v38, %v963_v42  ;;  %v1824_v42 = vld [vmem:[%s2528_s4 + $0x38] sm:$0xff] }
 0x6a6   : > { %v965_v44 = vmul.f32 %v964_v43, %v964_v43 }
 0x6a8   : > { %v966_v45 = vsel %vm536_vm0, %v965_v44, 0.0  ;;  %v1821_v44 = vld [vmem:[%s2528_s4 + $0x20] sm:$0xff] }
 0x6a9   : > { %967 = vadd.xlane.f32.xlu0 %v966_v45  ;;  %v1822_v45 = vld [vmem:[%s2528_s4 + $0x28] sm:$0xff] }
 0x6aa   : > { %v1153_v46 = vpack.c.bf16 %v1822_v45, %v1821_v44  ;;  %v1830_v45 = vld [vmem:[%s2530_s6 + $0x30] sm:$0xff] }
 0x732   : > { %v968_v51 = vpop.xlane.xlu0 %967 }
 0x733   : > { %v969_v52 = vmul.f32 0.03125, %v968_v51 }
 0x735   : > { %v970_v53 = vadd.f32 1e-05, %v969_v52  ;;  %v1820_v52 = vld [vmem:[%s2539_s15] ss:$0 sm:$0xff] }
 0x737   : > { %2067 = vrsqrt.f32 %v970_v53 }
 0x744   : > { %v2068_v54 = vpop.eup %2067 }
 0x745   : > { %v972_v56 = vmul.f32 %v2068_v54, %v964_v43  ;;  %v1154_v43 = vpack.c.bf16 %v1824_v42, %v1823_v41  ;;  %v1828_v42 = vld [vmem:[%s2530_s6 + $0x20] sm:$0xff] }
 0x747   : > { %v979_v58 = vmul.f32 %v1813_v55, %v972_v56  ;;  %v1826_v56 = vld [vmem:[%s2529_s5 + $0x1] ss:$0 sm:$0xff] }
 0x749   : > { %v986_v59 = vadd.f32 %v1814_v57, %v979_v58 }
 0x74b   : > { %v991_v60 = vpack.c.bf16 %v986_v59, %v986_v59 }
 0x74d   : > { %1963 = vmatmul.mubr.msk.bf16.vlgmr.msra.gmra.mxu1 %vm536_vm0, %v991_v60 }
 0x74e   : > { %1982 = vmatprep.mubr.msk.bf16.mxu1 %vm2096_vm1, %v2095_v10  ;;  %1979 = vmatpush3.bf16.msra.mxu1 %v1154_v43  ;;  %v1829_v43 = vld [vmem:[%s2530_s6 + $0x28] sm:$0xff] }
 0x74f   : > { %1980 = vmatprep.subr.bf16.mxu1 %v2095_v10  ;;  %v1326_v44 = vpack.c.bf16 %v1829_v43, %v1828_v42 }
 0x752   : > { %1981 = vmatpush3.bf16.msra.mxu1 %v1153_v46  ;;  %v1831_v46 = vld [vmem:[%s2530_s6 + $0x38] sm:$0xff] }
 0x753   : > { %1986 = vmatprep.subr.bf16.mxu1 %v2095_v10 }
 0x80d   : > { %v1038_v11 = vpop.f32.mrf.mxu1 }
 0x80e   : > { %v1039_v12 = vadd.f32 %v1815_v9, %v1038_v11 }
 0x80f   : > { %v1964_v13 = vpop.f32.mrf.mxu1 }
 0x810   : > { %v1045_v14 = vmul.f32 0.044715, %v1039_v12  ;;  %v1044_v23 = vmul.f32 0.5, %v1039_v12 }
 0x811   : > { %v1041_v15 = vpop.f32.mrf.mxu1 }
 0x812   : > { %v1046_v16 = vmul.f32 %v1045_v14, %v1039_v12 }
 0x813   : > { %v1965_v17 = vpop.f32.mrf.mxu1 }
 0x814   : > { %v1047_v18 = vmul.f32 %v1046_v16, %v1039_v12 }
 0x816   : > { %v1048_v19 = vadd.f32 %v1047_v18, %v1039_v12 }
 0x818   : > { %v1049_v20 = vmul.f32 0.7978846, %v1048_v19 }
 0x81a   : > { %2069 = vtanh.f32 %v1049_v20 }
 0x827   : > { %v2070_v21 = vpop.eup %2069 }
 0x828   : > { %v1051_v24 = vadd.f32 1.0, %v2070_v21 }
 0x82a   : > { %v1052_v25 = vmul.f32 %v1051_v24, %v1044_v23 }
 0x82c   : > { %v1061_v26 = vpack.c.bf16 %v1052_v25, %v1052_v25 }
 0x82e   : > { %1975 = vmatmul.mubr.msk.bf16.vlgmr.msra.gmra.mxu0 %vm1073_vm5, %v1061_v26 }
 0x82f   : > { %1994 = vmatprep.mubr.msk.bf16.mxu0 %vm2096_vm1, %v2095_v10 }
 0x8ee   : > { %v1111_v28 = vpop.f32.mrf.mxu0 }
 0x8ef   : > { %v1112_v29 = vadd.f32 %v1817_v27, %v1111_v28 }
 0x8f0   : > { %v1976_v30 = vpop.f32.mrf.mxu0 }
 0x8f1   : > { %v1117_v31 = vadd.f32 %v1112_v29, %v986_v59 }
 0x8f2   : > { %v1114_v32 = vpop.f32.mrf.mxu0 }
 0x8f3   : > { %v1120_v33 = vsel %vm536_vm0, %v1117_v31, 0.0 }
 0x8f4   : > { %1121 = vadd.xlane.f32.xlu1 %v1120_v33  ;;  %v1977_v34 = vpop.f32.mrf.mxu0 }
 0x97d   : > { %v1122_v35 = vpop.xlane.xlu1 %1121 }
 0x97e   : > { %v1123_v37 = vmul.f32 0.03125, %v1122_v35 }
 0x980   : > { %v1124_v38 = vsub.f32 %v1117_v31, %v1123_v37 }
 0x982   : > { %v1125_v39 = vmul.f32 %v1124_v38, %v1124_v38 }
 0x984   : > { %v1126_v40 = vsel %vm536_vm0, %v1125_v39, 0.0 }
 0x985   : > { %1127 = vadd.xlane.f32.xlu1 %v1126_v40 }
 0xa0e   : > { %v1128_v47 = vpop.xlane.xlu1 %1127 }
 0xa0f   : > { %v1129_v22 = vmul.f32 0.03125, %v1128_v47  ;;  %v1440_v47 = vpack.c.bf16 %v1831_v46, %v1830_v45 }
 0xa11   : > { %v1130_v48 = vadd.f32 1e-05, %v1129_v22 }
 0xa13   : > { %2071 = vrsqrt.f32 %v1130_v48 }
 0xa20   : > { %v2072_v49 = vpop.eup %2071 }
 0xa21   : > { %v1132_v51 = vmul.f32 %v2072_v49, %v1124_v38 }
 0xa23   : > { %v1139_v53 = vmul.f32 %v1819_v50, %v1132_v51 }
 0xa25   : > { %v2386_v54 = vadd.f32 %v1820_v52, %v1139_v53 }
 0xa27   : > { %v1152_v55 = vpack.c.bf16 %v2386_v54, %v2386_v54 }
 0xa29   : > { %1983 = vmatmul.mubr.msk.bf16.vlgmr.msra.gmra.mxu1 %vm536_vm0, %v1152_v55 }
 0xa2a   : > { %1988 = vmatprep.mubr.msk.bf16.mxu1 %vm2096_vm1, %v2095_v10 }
 0xae9   : > { %v1200_v57 = vpop.f32.mrf.mxu1 }
 0xaea   : > { %v1201_v58 = vadd.f32 %v1826_v56, %v1200_v57 }
 0xaeb   : > { %v1984_v59 = vpop.f32.mrf.mxu1 }
 0xaec   : > { %v1213_v60 = vpack.c.bf16 %v1201_v58, %v1201_v58 }
 0xaed   : > { %v1203_v61 = vpop.f32.mrf.mxu1 }
 0xaee   : > { %1329 = vrot.lane.b32.xlu0 %v1213_v60, %s2099_s17  ;;  %1215 = vrot.lane.b32.xlu1 %v1213_v60, %s2098_s0 }
 0xaef   : > { %v1985_v62 = vpop.f32.mrf.mxu1 }
 0xaf0   : > { %v1839_v62 = vld [vmem:[%s2531_s7 + $0x1] ss:$0 sm:$0xff] }
 0xaf2   : > { %1327 = vrot.lane.b32.xlu1 %v1213_v60, %s2097_s30  ;;  %s2545_s30 = smov 48  }
 0xb60   : > { %v1216_v63 = vpop.permute.xlu1 %1215  ;;  %v1330_v1 = vpop.permute.xlu0 %1329 }
 0xb61   : > { %v1221_v0 = vsel %vm631_vm2, %v1216_v63, 0  ;;  %v1335_v2 = vsel %vm631_vm2, %v1330_v1, 0 }
 0xb62   : > { %1987 = vmatpush3.bf16.xpose.msra.mxu1 %v1221_v0 }
 0xb63   : > { %1998 = vmatprep.subr.bf16.mxu1 %v2095_v10 }
 0xb64   : > { %v1328_v3 = vpop.permute.xlu1 %1327 }
 0xb69   : > { %1989 = vmatmul.mubr.msk.bf16.vlgmr.msra.gmra.mxu1 %vm631_vm2, %v1213_v60 }
 0xb6a   : > { %1999 = vmatpush3.bf16.xpose.msra.mxu1 %v1335_v2  ;;  %2000 = vmatprep.mubr.msk.bf16.mxu1 %vm2096_vm1, %v2095_v10 }
 0xb6b   : > { %2010 = vmatprep.subr.bf16.mxu1 %v2095_v10 }
 0xb71   : > { %2001 = vmatmul.mubr.msk.bf16.vlgmr.msra.gmra.mxu1 %vm631_vm2, %v1328_v3 }
 0xb72   : > { %2012 = vmatprep.mubr.msk.bf16.mxu1 %vm2096_vm1, %v2095_v10  ;;  %2011 = vmatpush3.bf16.msra.mxu1 %v1440_v47 }
 0xb73   : > { %2022 = vmatprep.subr.bf16.mxu1 %v2095_v10 }
 0xc29   : > { %v1257_v4 = vpop.f32.mrf.mxu1 }
 0xc2a   : > { %v1263_v5 = vmul.f32 0.25, %v1257_v4 }
 0xc2b   : > { %v1990_v6 = vpop.f32.mrf.mxu1 }
 0xc2c   : > { %v1264_v7 = vadd.f32 %v2258_v36, %v1263_v5 }
 0xc2d   : > { %v1260_v8 = vpop.f32.mrf.mxu1 }
 0xc2e   : > { %v1265_v9 = vsel %vm686_vm3, %v1264_v7, -inf }
 0xc2f   : > { %1266 = vmax.xlane.f32.xlu1 %v1265_v9  ;;  %v1991_v11 = vpop.f32.mrf.mxu1 }
 0xc31   : > { %v1371_v12 = vpop.f32.mrf.mxu1 }
 0xc32   : > { %v1377_v13 = vmul.f32 0.25, %v1371_v12 }
 0xc33   : > { %v2002_v14 = vpop.f32.mrf.mxu1 }
 0xc34   : > { %v1378_v15 = vadd.f32 %v2258_v36, %v1377_v13  ;;  %v1846_v13 = vld [vmem:[%s2534_s10 + $0x30] sm:$0xff]  ;;  %v1847_v14 = vld [vmem:[%s2534_s10 + $0x38] sm:$0xff] }
 0xc35   : > { %v1374_v16 = vpop.f32.mrf.mxu1 }
 0xc36   : > { %v1379_v17 = vsel %vm686_vm3, %v1378_v15, -inf  ;;  %v1845_v16 = vld [vmem:[%s2534_s10 + $0x28] sm:$0xff] }
 0xc37   : > { %1380 = vmax.xlane.f32.xlu0 %v1379_v17  ;;  %v2003_v18 = vpop.f32.mrf.mxu1 }
 0xcb8   : > { %v1267_v19 = vpop.xlane.xlu1 %1266 }
 0xcb9   : > { %v1268_v20 = vsub.f32 %v1264_v7, %v1267_v19 }
 0xcbb   : > { %v1269_v21 = vmul.f32 1.442695, %v1268_v20 }
 0xcbd   : > { %2073 = vpow2.f32 %v1269_v21 }
 0xcc0   : > { %v1381_v23 = vpop.xlane.xlu0 %1380 }
 0xcc1   : > { %v1382_v24 = vsub.f32 %v1378_v15, %v1381_v23  ;;  %v1844_v15 = vld [vmem:[%s2534_s10 + $0x20] sm:$0xff] }
 0xcc2   : > { %v1572_v17 = vpack.c.bf16 %v1845_v16, %v1844_v15  ;;  %v1842_v23 = vld [vmem:[%s2532_s8 + $0x1] ss:$0 sm:$0xff] }
 0xcc3   : > { %v1383_v25 = vmul.f32 1.442695, %v1382_v24 }
 0xcc5   : > { %2075 = vpow2.f32 %v1383_v25  ;;  %v1843_v25 = vld [vmem:[%s2533_s9 + $0x1] ss:$0 sm:$0xff] }
 0xcca   : > { %v2074_v26 = vpop.eup %2073 }
 0xccb   : > { %v1271_v27 = vsel %vm686_vm3, %v2074_v26, 0.0 }
 0xccc   : > { %1272 = vadd.xlane.f32.xlu0 %v1271_v27 }
 0xcd2   : > { %v2076_v28 = vpop.eup %2075 }
 0xcd3   : > { %v1385_v36 = vsel %vm686_vm3, %v2076_v28, 0.0 }
 0xcd4   : > { %1386 = vadd.xlane.f32.xlu1 %v1385_v36  ;;  %v1857_v36 = vld [vmem:[%s2536_s12 + $0x70] sm:$0xff] }
 0xce2   : > { %1277 = vrot.lane.b32.xlu0 %v1213_v60, %s2101_s25 }
 0xce5   : > { %1391 = vrot.lane.b32.xlu1 %v1213_v60, %s2545_s30 }
 0xd55   : > { %v1273_v29 = vpop.xlane.xlu0 %1272 }
 0xd56   : > { %2077 = vrcp.f32 %v1273_v29  ;;  %v1858_v29 = vld [vmem:[%s2536_s12 + $0x78] sm:$0xff] }
 0xd59   : > { %v1278_v30 = vpop.permute.xlu0 %1277 }
 0xd5a   : > { %v1283_v31 = vsel %vm704_vm4, %v1278_v30, 0  ;;  %v1855_v30 = vld [vmem:[%s2536_s12 + $0x60] sm:$0xff] }
 0xd5b   : > { %1993 = vmatpush3.bf16.msra.mxu0 %v1283_v31  ;;  %v1647_v31 = vpack.c.bf16 %v1858_v29, %v1857_v36 }
 0xd5c   : > { %2004 = vmatprep.subr.bf16.mxu0 %v2095_v10 }
 0xd5d   : > { %v1387_v32 = vpop.xlane.xlu1 %1386 }
 0xd5e   : > { %2079 = vrcp.f32 %v1387_v32  ;;  %v1856_v32 = vld [vmem:[%s2536_s12 + $0x68] sm:$0xff] }
 0xd61   : > { %v1392_v35 = vpop.permute.xlu1 %1391 }
 0xd62   : > { %v1397_v38 = vsel %vm704_vm4, %v1392_v35, 0  ;;  %v1854_v35 = vld [vmem:[%s2536_s12 + $0x58] sm:$0xff] }
 0xd63   : > { %v2078_v33 = vpop.eup %2077 }
 0xd64   : > { %v1275_v34 = vmul.f32 %v2078_v33, %v2074_v26  ;;  %v1646_v33 = vpack.c.bf16 %v1856_v32, %v1855_v30 }
 0xd66   : > { %v1276_v37 = vpack.c.bf16 %v1275_v34, %v1275_v34  ;;  %v1853_v34 = vld [vmem:[%s2536_s12 + $0x50] sm:$0xff] }
 0xd68   : > { %1995 = vmatmul.mubr.msk.bf16.vlgmr.msra.gmra.mxu0 %vm686_vm3, %v1276_v37  ;;  %v1645_v37 = vpack.c.bf16 %v1854_v35, %v1853_v34 }
 0xd69   : > { %2005 = vmatpush3.bf16.msra.mxu0 %v1397_v38  ;;  %2006 = vmatprep.mubr.msk.bf16.mxu0 %vm2096_vm1, %v2095_v10  ;;  %v1851_v38 = vld [vmem:[%s2536_s12 + $0x40] sm:$0xff] }
 0xd6a   : > { %2016 = vmatprep.subr.bf16.mxu0 %v2095_v10 }
 0xd6b   : > { %v2080_v39 = vpop.eup %2079 }
 0xd6c   : > { %v1389_v40 = vmul.f32 %v2080_v39, %v2076_v28  ;;  %v1852_v39 = vld [vmem:[%s2536_s12 + $0x48] sm:$0xff] }
 0xd6e   : > { %v1390_v41 = vpack.c.bf16 %v1389_v40, %v1389_v40  ;;  %v1644_v40 = vpack.c.bf16 %v1852_v39, %v1851_v38 }
 0xd70   : > { %2007 = vmatmul.mubr.msk.bf16.vlgmr.msra.gmra.mxu0 %vm686_vm3, %v1390_v41  ;;  %v1849_v41 = vld [vmem:[%s2535_s11 + $0x1] ss:$0 sm:$0xff] }
 0xd71   : > { %2018 = vmatprep.mubr.msk.bf16.mxu0 %vm2096_vm1, %v2095_v10  ;;  %2017 = vmatpush3.bf16.msra.mxu0 %v1326_v44 }
 0xd72   : > { %2030 = vmatprep.subr.bf16.mxu0 %v2095_v10 }
 0xe28   : > { %v1319_v22 = vpop.f32.mrf.mxu0 }
 0xe29   : > { %v1325_v48 = vpack.c.bf16 %v1319_v22, %v1319_v22 }
 0xe2a   : > { %v1996_v49 = vpop.f32.mrf.mxu0 }
 0xe2b   : > { %2019 = vmatmul.mubr.msk.bf16.vlgmr.msra.gmra.mxu0 %vm631_vm2, %v1325_v48 }
 0xe2c   : > { %v1322_v50 = vpop.f32.mrf.mxu0  ;;  %2038 = vmatprep.mubr.msk.bf16.mxu0 %vm2096_vm1, %v2095_v10  ;;  %2031 = vmatpush3.bf16.msra.mxu0 %v1647_v31 }
 0xe2d   : > { %2032 = vmatprep.subr.bf16.mxu0 %v2095_v10 }
 0xe2e   : > { %v1997_v51 = vpop.f32.mrf.mxu0 }
 0xe30   : > { %v1433_v52 = vpop.f32.mrf.mxu0  ;;  %2033 = vmatpush3.bf16.msra.mxu0 %v1646_v33 }
 0xe31   : > { %v1439_v53 = vpack.c.bf16 %v1433_v52, %v1433_v52  ;;  %2034 = vmatprep.subr.bf16.mxu0 %v2095_v10 }
 0xe32   : > { %v2008_v55 = vpop.f32.mrf.mxu0 }
 0xe33   : > { %2013 = vmatmul.mubr.msk.bf16.vlgmr.msra.gmra.mxu1 %vm631_vm2, %v1439_v53 }
 0xe34   : > { %v1436_v56 = vpop.f32.mrf.mxu0  ;;  %2026 = vmatprep.mubr.msk.bf16.mxu1 %vm2096_vm1, %v2095_v10  ;;  %2035 = vmatpush3.bf16.msra.mxu0 %v1645_v37 }
 0xe35   : > { %2036 = vmatprep.subr.bf16.mxu0 %v2095_v10  ;;  %v1860_v56 = vld [vmem:[%s2537_s13 + $0x1] ss:$0 sm:$0xff] }
 0xe36   : > { %v2009_v57 = vpop.f32.mrf.mxu0 }
 0xe38   : > { %2037 = vmatpush3.bf16.msra.mxu0 %v1644_v40 }
 0xeeb   : > { %v1521_v58 = vpop.f32.mrf.mxu0 }
 0xeed   : > { %v2020_v59 = vpop.f32.mrf.mxu0 }
 0xeef   : > { %v1524_v60 = vpop.f32.mrf.mxu0 }
 0xef1   : > { %v2021_v61 = vpop.f32.mrf.mxu0 }
 0xef3   : > { %v1478_v63 = vpop.f32.mrf.mxu1 }
 0xef4   : > { %v1522_v0 = vadd.f32 %v1521_v58, %v1478_v63 }
 0xef5   : > { %v2014_v1 = vpop.f32.mrf.mxu1 }
 0xef6   : > { %v1533_v2 = vadd.f32 %v1839_v62, %v1522_v0 }
 0xef7   : > { %v1481_v3 = vpop.f32.mrf.mxu1 }
 0xef8   : > { %v1534_v4 = vadd.f32 %v1533_v2, %v2386_v54  ;;  %v1573_v54 = vpack.c.bf16 %v1847_v14, %v1846_v13 }
 0xef9   : > { %v2015_v5 = vpop.f32.mrf.mxu1 }
 0xefa   : > { %v1539_v6 = vsel %vm536_vm0, %v1534_v4, 0.0  ;;  %2023 = vmatpush3.bf16.msra.mxu1 %v1573_v54 }
 0xefb   : > { %1540 = vadd.xlane.f32.xlu1 %v1539_v6  ;;  %2024 = vmatprep.subr.bf16.mxu1 %v2095_v10 }
 0xefe   : > { %2025 = vmatpush3.bf16.msra.mxu1 %v1572_v17 }
 0xf84   : > { %v1541_v7 = vpop.xlane.xlu1 %1540 }
 0xf85   : > { %v1542_v8 = vmul.f32 0.03125, %v1541_v7 }
 0xf87   : > { %v1543_v9 = vsub.f32 %v1534_v4, %v1542_v8 }
 0xf89   : > { %v1544_v11 = vmul.f32 %v1543_v9, %v1543_v9 }
 0xf8b   : > { %v1545_v12 = vsel %vm536_vm0, %v1544_v11, 0.0 }
 0xf8c   : > { %1546 = vadd.xlane.f32.xlu0 %v1545_v12  ;;  %v1865_v12 = vld [vmem:[%s2539_s15 + $0x1] ss:$0 sm:$0xff] }
0x1015   : > { %v1547_v18 = vpop.xlane.xlu0 %1546 }
0x1016   : > { %v1548_v19 = vmul.f32 0.03125, %v1547_v18 }
0x1018   : > { %v1549_v20 = vadd.f32 1e-05, %v1548_v19 }
0x101a   : > { %2081 = vrsqrt.f32 %v1549_v20 }
0x1027   : > { %v2082_v21 = vpop.eup %2081 }
0x1028   : > { %v1551_v24 = vmul.f32 %v2082_v21, %v1543_v9  ;;  %v1864_v9 = vld [vmem:[%s2538_s14 + $0x1] ss:$0 sm:$0xff] }
0x102a   : > { %v1558_v26 = vmul.f32 %v1842_v23, %v1551_v24 }
0x102c   : > { %v1565_v27 = vadd.f32 %v1843_v25, %v1558_v26 }
0x102e   : > { %v1571_v28 = vpack.c.bf16 %v1565_v27, %v1565_v27 }
0x1030   : > { %2027 = vmatmul.mubr.msk.bf16.vlgmr.msra.gmra.mxu1 %vm536_vm0, %v1571_v28 }
0x10f0   : > { %v1619_v42 = vpop.f32.mrf.mxu1 }
0x10f1   : > { %v1620_v43 = vadd.f32 %v1849_v41, %v1619_v42 }
0x10f2   : > { %v2028_v44 = vpop.f32.mrf.mxu1 }
0x10f3   : > { %v1626_v45 = vmul.f32 0.044715, %v1620_v43  ;;  %v1625_v52 = vmul.f32 0.5, %v1620_v43 }
0x10f4   : > { %v1622_v46 = vpop.f32.mrf.mxu1 }
0x10f5   : > { %v1627_v47 = vmul.f32 %v1626_v45, %v1620_v43 }
0x10f6   : > { %v2029_v22 = vpop.f32.mrf.mxu1 }
0x10f7   : > { %v1628_v48 = vmul.f32 %v1627_v47, %v1620_v43 }
0x10f9   : > { %v1629_v49 = vadd.f32 %v1628_v48, %v1620_v43 }
0x10fb   : > { %v1630_v50 = vmul.f32 0.7978846, %v1629_v49 }
0x10fd   : > { %2083 = vtanh.f32 %v1630_v50 }
0x110a   : > { %v2084_v51 = vpop.eup %2083 }
0x110b   : > { %v1632_v53 = vadd.f32 1.0, %v2084_v51 }
0x110d   : > { %v1633_v10 = vmul.f32 %v1632_v53, %v1625_v52 }
0x110f   : > { %v1643_v55 = vpack.c.bf16 %v1633_v10, %v1633_v10 }
0x1111   : > { %2039 = vmatmul.mubr.msk.bf16.vlgmr.msra.gmra.mxu0 %vm1073_vm5, %v1643_v55 }
0x11d1   : > { %v1693_v57 = vpop.f32.mrf.mxu0 }
0x11d2   : > { %v1694_v58 = vadd.f32 %v1860_v56, %v1693_v57 }
0x11d3   : > { %v2040_v59 = vpop.f32.mrf.mxu0 }
0x11d4   : > { %v1699_v60 = vadd.f32 %v1694_v58, %v1565_v27 }
0x11d5   : > { %v1696_v61 = vpop.f32.mrf.mxu0 }
0x11d6   : > { %v1704_v62 = vsel %vm536_vm0, %v1699_v60, 0.0 }
0x11d7   : > { %1705 = vadd.xlane.f32.xlu0 %v1704_v62  ;;  %v2041_v63 = vpop.f32.mrf.mxu0 }
0x1260   : > { %v1706_v0 = vpop.xlane.xlu0 %1705 }
0x1261   : > { %v1707_v1 = vmul.f32 0.03125, %v1706_v0 }
0x1263   : > { %v1708_v2 = vsub.f32 %v1699_v60, %v1707_v1 }
0x1265   : > { %v1709_v3 = vmul.f32 %v1708_v2, %v1708_v2 }
0x1267   : > { %v1710_v4 = vsel %vm536_vm0, %v1709_v3, 0.0 }
0x1268   : > { %1711 = vadd.xlane.f32.xlu1 %v1710_v4 }
0x12f1   : > { %v1712_v5 = vpop.xlane.xlu1 %1711 }
0x12f2   : > { %v1713_v6 = vmul.f32 0.03125, %v1712_v5 }
0x12f4   : > { %v1714_v7 = vadd.f32 1e-05, %v1713_v6 }
0x12f6   : > { %2085 = vrsqrt.f32 %v1714_v7 }
0x1303   : > { %v2086_v8 = vpop.eup %2085 }
0x1304   : > { %v1716_v11 = vmul.f32 %v2086_v8, %v1708_v2 }
0x1306   : > { %v1723_v13 = vmul.f32 %v1864_v9, %v1716_v11 }
0x1308   : > { %v1730_v14 = vadd.f32 %v1865_v12, %v1723_v13 }
0x130a   : > { %1731 = vst.msk [vmem:[%s530_s28] sm:$0xff] %vm536_vm0, %v1730_v14 }
0x130b PF: > { %s26_s21 = sadd.s32 1, %s2093_s21  }
0x130c   : > { %p23_p4 = scmp.ge.s32.totalorder %s26_s21, 4  }
0x130e   :  { %25 = sbr.rel (!%p23_p4) target bundleno = 2 (0x2), region = 129 }

// kernel: _lambda_.3
= control target key start
LH: loop header
LB: loop body
LE: loop exit
PB: predicated region body
PF: predicated region fallthrough
CT: control target
= control target key end

     0   :  { %s4626_s0 = inlined_call_operand.vmem [shape: f32[2,8,32], index: 0, kind: input, shape index: {}]   ;;  %s4627_s1 = inlined_call_operand.vmem [shape: f32[2,8,32], index: 1, kind: input, shape index: {}]   ;;  %s4628_s2 = inlined_call_operand.vmem [shape: f32[2,1,8], index: 2, kind: input, shape index: {}]   ;;  %s4629_s3 = inlined_call_operand.vmem [shape: f32[1,32], index: 3, kind: input, shape index: {}]   ;;  %s4630_s4 = inlined_call_operand.vmem [shape: f32[1,32], index: 4, kind: input, shape index: {}]   ;;  %s4631_s5 = inlined_call_operand.vmem [shape: f32[2,32,96], index: 5, kind: input, shape index: {}]   ;;  %s4632_s6 = inlined_call_operand.vmem [shape: f32[2,1,96], index: 6, kind: input, shape index: {}]   ;;  %s4633_s7 = inlined_call_operand.vmem [shape: f32[2,32,32], index: 7, kind: input, shape index: {}]   ;;  %s4634_s8 = inlined_call_operand.vmem [shape: f32[2,1,32], index: 8, kind: input, shape index: {}, may-alias: {8,10,12,16,18,22,24}]   ;;  %s4635_s9 = inlined_call_operand.vmem [shape: f32[2,1,32], index: 9, kind: input, shape index: {}, may-alias: {9,17,23}]   ;;  %s4636_s10 = inlined_call_operand.vmem [shape: f32[2,1,32], index: 10, kind: input, shape index: {}, may-alias: {8,10,12,16,18,22,24}]   ;;  %s4637_s11 = inlined_call_operand.vmem [shape: f32[2,32,32], index: 11, kind: input, shape index: {}]   ;;  %s4638_s12 = inlined_call_operand.vmem [shape: f32[2,1,32], index: 12, kind: input, shape index: {}, may-alias: {8,10,12,16,18,22,24}]   ;;  %s4639_s13 = inlined_call_operand.vmem [shape: f32[2,32,64], index: 13, kind: input, shape index: {}]   ;;  %s4640_s14 = inlined_call_operand.vmem [shape: f32[2,1,64], index: 14, kind: input, shape index: {}, may-alias: {14,20}]   ;;  %s4641_s15 = inlined_call_operand.vmem [shape: f32[2,32,32], index: 15, kind: input, shape index: {}]   ;;  %s4642_s16 = inlined_call_operand.vmem [shape: f32[2,1,32], index: 16, kind: input, shape index: {}, may-alias: {8,10,12,16,18,22,24}]   ;;  %s4643_s17 = inlined_call_operand.vmem [shape: f32[2,1,32], index: 17, kind: input, shape index: {}, may-alias: {9,17,23}]   ;;  %s4644_s18 = inlined_call_operand.vmem [shape: f32[2,1,32], index: 18, kind: input, shape index: {}, may-alias: {8,10,12,16,18,22,24}]   ;;  %s4645_s19 = inlined_call_operand.hbm [shape: f32[2,32,64], index: 19, kind: input, shape index: {}]   ;;  %s4646_s20 = inlined_call_operand.vmem [shape: f32[2,1,64], index: 20, kind: input, shape index: {}, may-alias: {14,20}]   ;;  %s4647_s21 = inlined_call_operand.vmem [shape: f32[2,64,32], index: 21, kind: input, shape index: {}]   ;;  %s4648_s22 = inlined_call_operand.vmem [shape: f32[2,1,32], index: 22, kind: input, shape index: {}, may-alias: {8,10,12,16,18,22,24}]   ;;  %s4649_s23 = inlined_call_operand.vmem [shape: f32[2,1,32], index: 23, kind: input, shape index: {}, may-alias: {9,17,23}]   ;;  %s4650_s24 = inlined_call_operand.vmem [shape: f32[2,1,32], index: 24, kind: input, shape index: {}, may-alias: {8,10,12,16,18,22,24}]   ;;  %s4651_s25 = inlined_call_operand.vmem [shape: f32[32,128], index: 25, kind: input, shape index: {}]   ;;  %s4652_s26 = inlined_call_operand.vmem [shape: f32[1,128], index: 26, kind: input, shape index: {}]   ;;  %s4653_s27 = inlined_call_operand.hbm [shape: f32[2,8,128], index: 27, kind: output, shape index: {}]  }
   0x1   :  { %4686 = sst [smem:[#allocation17_spill]] %s4626_s0 }
   0x2   :  { %4687 = sst [smem:[#allocation18_spill]] %s4627_s1 }
   0x3   :  { %4688 = sst [smem:[#allocation19_spill]] %s4628_s2 }
   0x4   :  { %4689 = sst [smem:[#allocation20_spill]] %s4629_s3 }
   0x5   :  { %4690 = sst [smem:[#allocation21_spill]] %s4630_s4 }
   0x6   :  { %4691 = sst [smem:[#allocation22_spill]] %s4631_s5 }
   0x7   :  { %4692 = sst [smem:[#allocation23_spill]] %s4632_s6 }
   0x8   :  { %4693 = sst [smem:[#allocation24_spill]] %s4633_s7 }
   0x9   :  { %4694 = sst [smem:[#allocation25_spill]] %s4634_s8 }
   0xa   :  { %4695 = sst [smem:[#allocation26_spill]] %s4635_s9 }
   0xb   :  { %4696 = sst [smem:[#allocation27_spill]] %s4636_s10 }
   0xc   :  { %4697 = sst [smem:[#allocation28_spill]] %s4637_s11 }
   0xd   :  { %4698 = sst [smem:[#allocation29_spill]] %s4645_s19 }
   0xe   :  { %4699 = sst [smem:[#allocation30_spill]] %s4651_s25 }
   0xf   :  { %4700 = sst [smem:[#allocation31_spill]] %s4652_s26 }
  0x10   :  { %4701 = sst [smem:[#allocation32_spill]] %s4653_s27 }
  0x11   :  { %32 = vsyncpa [#allocation3], 0 }
  0x12   :  { %33 = vsyncpa [#allocation4], 0 }
  0x13   :  { %35 = vsyncpa [#allocation4 + $0x1], 0  ;;  %s3973_s7 = smov 0   ;;  %s3975_s4 = smov 0  }
  0x14   :  { %s3977_s8 = smov 0   ;;  %s3979_s30 = smov 0  }
  0x15 LB: > { %4702 = sst [smem:[#allocation8_spill]] %s3807_s7  ;;  %s3994_s9 = sadd.s32 4294967295, %s3819_s30   ;;  %s3819_s30 = sphi %s3979_s30, %s4745_s30   ;;  %s3815_s8 = sphi %s3977_s8, %s4748_s8   ;;  %s3811_s4 = sphi %s3975_s4, %s4747_s4   ;;  %s3807_s7 = sphi %s3973_s7, %s4746_s7  }
  0x16   : > { %4703 = sst [smem:[#allocation9_spill]] %s3811_s4  ;;  %s3175_s5 = sadd.s32 4294967294, %s3819_s30  }
  0x17   : > { %4704 = sst [smem:[#allocation10_spill]] %s3815_s8  ;;  %s3998_s28 = sadd.s32 1, %s3819_s30  }
  0x18   : > { %4705 = sst [smem:[#allocation11_spill]] %s3819_s30  ;;  %s630_s0 = sadd.s32 1, %s3815_s8 }
  0x19   : > { %4706 = sst [smem:[#allocation12_spill]] %s3994_s9  ;;  %s627_s10 = ssub.s32 %s3819_s30, %s3998_s28 }
  0x1a   : > { %4707 = sst [smem:[#allocation13_spill]] %s3998_s28  ;;  %p640_p0 = scmp.ne.s32.totalorder %s3815_s8, %s3811_s4 }
  0x1b   : > { %p628_p1 = scmp.eq.s32.totalorder %s627_s10, 0  ;;  %p641_p2 = scmp.eq.s32.totalorder %s3994_s9, 1 }
  0x1c   : > { %p646_p3 = scmp.ne.s32.totalorder %s3811_s4, %s3807_s7  ;;  %p647_p4 = scmp.eq.s32.totalorder %s3175_s5, 1 }
  0x1d   : > { %s4009_s29 = scalar_select %p628_p1, %s3815_s8, %s630_s0  }
  0x1e   : > { %p4011_p5 = por %p641_p2, %p640_p0  ;;  %p4015_p6 = por %p647_p4, %p646_p3 }
  0x1f   : > { %4708 = sst [smem:[#allocation14_spill]] %s4009_s29  ;;  %p3176_p7 = scmp.ge.s32.totalorder %s3819_s30, 1 }
  0x20   : > { %s4709_s1 = scalar_select %p4011_p5, 1, 0 }
  0x21   : > { %s4711_s6 = scalar_select %p4015_p6, 1, 0 }
  0x22   : > { %4710 = sst [smem:[#allocation15_spill]] %s4709_s1  ;;  %p654_p8 = scmp.lt.s32.totalorder %s3819_s30, 3 }
  0x23   : > { %4712 = sst [smem:[#allocation16_spill]] %s4711_s6  ;;  %p3633_p9 = scmp.eq.s32.totalorder %s3994_s9, 0 }
  0x24   : > { %p4022_p10 = pnand %p3176_p7, %p654_p8  ;;  %s3821_s2 = smov [#allocation2]  }
  0x25   : > { %s714_s3 = sshll.u32 %s3821_s2, 4  ;;  %s715_s3 = int_to_ptr.vmem [resolvable:$true] %s714_s3 }
  0x26   : > { %p3625_p11 = pneg %p4022_p10  ;;  %s3740_s5 = scalar_lea.vmem %s715_s3, 1024 }
  0x27   : > { %p3741_p0 = scmp.ne.s32.totalorder %s715_s3, %s3740_s5  ;;  %p3748_p3 = scmp.lt.s32.totalorder %s715_s3, %s715_s3 }
  0x28   : > { %p3626_p12 = pnand %p3633_p9, %p3625_p11  ;;  %p3749_p4 = scmp.lt.s32.totalorder %s3740_s5, %s3740_s5 }
  0x2a   : > { %p3731_p13 = pneg %p3626_p12  ;;  %p3750_p6 = por %p3749_p4, %p3748_p3 }
  0x2c   : > { %p3743_p1 = pnand %p3741_p0, %p3731_p13 }
  0x2e   : > { %p3744_p2 = pneg %p3743_p1 }
  0x30   : > { %p3751_p7 = pnand %p3750_p6, %p3744_p2 }
  0x32   : > { %3754 = shalt.err (!%p3751_p7)
}
  0x33   : > { %s3822_s0 = smov 128   ;;  %s3823_s10 = smov 8  }
  0x34   : > { %s4714_s19 = sld [smem:[#allocation29_spill]] }
  0x36   : > { %771 = sbr.rel (%p4022_p10) target bundleno = 8191 (0x1fff), region = 128 }
  0x3a   : > { %3628 = dma.hbm_to_vmem [thread:$0]  (!%p3626_p12), %s4714_s19, 1024, %s715_s3, [#allocation3], %s3822_s0, %s3822_s0, %s3823_s10  }
  0x3b   : > { %3798 = dma.done.wait (%p3633_p9), [#allocation3], 1024  }
  0x3c   : > { %3800 = vsyncadd (%p3633_p9), [#allocation3], 4294966272  ;;  %p849_p8 = scmp.lt.s32.totalorder %s3994_s9, 1  ;;  %s4715_s3 = sld [smem:[#allocation17_spill]]  ;;  %vm872_vm0 = vcmask 261120   ;;  %v3824_v10 = vmov 0.0   ;;  %v864_v36 = vlaneseq }
  0x3d   : > { %s4716_s19 = sld [smem:[#allocation22_spill]]  ;;  %3379 = vmatprep.subr.bf16.mxu0 %v3824_v10  ;;  %vm3825_vm1 = vmmov 0   ;;  %3387 = vmatprep.subr.bf16.mxu1 %v3824_v10  ;;  %s4671_s6 = smov 112   ;;  %vm967_vm2 = vcmask 130048   ;;  %v3829_v40 = vmov -1e+09  }
  0x3e   : > { %s4041_s2 = scalar_select %p849_p8, %s3994_s9, 1  ;;  %3383 = vmatprep.mubr.msk.bf16.mxu0 %vm3825_vm1, %v3824_v10  ;;  %3389 = vmatprep.mubr.msk.bf16.mxu1 %vm3825_vm1, %v3824_v10  ;;  %v865_v37 = vshrl.u32 %v864_v36, 7  ;;  %v867_v38 = vand.u32 127, %v864_v36  ;;  %vm1016_vm4 = vcmask 64512   ;;  %vm1034_vm5 = vcmask 1043456  }
  0x3f   : > { %s4717_s0 = sld [smem:[#allocation20_spill]]  ;;  %s4669_s10 = smov 80   ;;  %vm1879_vm6 = vcmask 523264  }
  0x40   : > { %s4673_s5 = sshll.u32 %s4041_s2, 3  ;;  %s4718_s29 = sld [smem:[#allocation21_spill]]  ;;  %vm868_vm3 = vcmp.ge.s32.totalorder %v865_v37, %v867_v38 }
  0x41   : > { %s4719_s28 = sld [smem:[#allocation23_spill]]  ;;  %v4100_v41 = vsel %vm868_vm3, 0.0, %v3829_v40  ;;  %s4665_s8 = smov 48  }
  0x42   : > { %s852_s11 = scalar_lea.vmem %s4715_s3, %s4673_s5  ;;  %s4722_s5 = sld [smem:[#allocation25_spill]] }
  0x43   : > { %v861_v0 = vld [vmem:[%s852_s11] sm:$0xff]  ;;  %v903_v7 = vld [vmem:[%s4716_s19 + $0x10] sm:$0xff]  ;;  %v904_v8 = vld [vmem:[%s4716_s19 + $0x18] sm:$0xff]  ;;  %s4725_s26 = sld [smem:[#allocation28_spill]]  ;;  %s4732_s25 = smov 64  }
  0x44   : > { %v873_v1 = vsel %vm872_vm0, %v861_v0, 0.0  ;;  %v901_v9 = vld [vmem:[%s4716_s19] sm:$0xff]  ;;  %v907_v11 = vpack.c.bf16 %v904_v8, %v903_v7  ;;  %v902_v12 = vld [vmem:[%s4716_s19 + $0x8] sm:$0xff]  ;;  %s4727_s1 = sld [smem:[#allocation27_spill]]  ;;  %s4733_s30 = smov 48  }
  0x45   : > { %874 = vadd.xlane.f32.xlu0 %v873_v1  ;;  %v906_v13 = vpack.c.bf16 %v902_v12, %v901_v9  ;;  %v3184_v18 = vld [vmem:[%s4717_s0] ss:$0 sm:$0xff]  ;;  %s4667_s0 = smov 96   ;;  %s4729_s27 = sld [smem:[#allocation19_spill]] }
  0x46   : > { %3380 = vmatpush3.bf16.msra.mxu0 %v907_v11  ;;  %v3185_v20 = vld [vmem:[%s4718_s29] ss:$0 sm:$0xff]  ;;  %s4666_s29 = smov 64   ;;  %s4736_s9 = sld [smem:[#allocation9_spill]] }
  0x47   : > { %3381 = vmatprep.subr.bf16.mxu0 %v3824_v10  ;;  %v3186_v24 = vld [vmem:[%s4719_s28] ss:$0 sm:$0xff] }
  0x4a   : > { %3382 = vmatpush3.bf16.msra.mxu0 %v906_v13 }
  0x4b   : > { %3393 = vmatprep.subr.bf16.mxu0 %v3824_v10 }
  0xce   : > { %v875_v2 = vpop.xlane.xlu0 %874 }
  0xcf   : > { %v877_v3 = vmul.f32 0.03125, %v875_v2 }
  0xd1   : > { %v878_v4 = vsub.f32 %v861_v0, %v877_v3 }
  0xd3   : > { %v879_v5 = vmul.f32 %v878_v4, %v878_v4 }
  0xd5   : > { %v880_v6 = vsel %vm872_vm0, %v879_v5, 0.0 }
  0xd6   : > { %881 = vadd.xlane.f32.xlu0 %v880_v6 }
 0x15f   : > { %v882_v14 = vpop.xlane.xlu0 %881 }
 0x160   : > { %v883_v15 = vmul.f32 0.03125, %v882_v14 }
 0x162   : > { %v884_v16 = vadd.f32 1e-05, %v883_v15 }
 0x164   : > { %3679 = vrsqrt.f32 %v884_v16 }
 0x171   : > { %v3680_v17 = vpop.eup %3679 }
 0x172   : > { %v886_v19 = vmul.f32 %v3680_v17, %v878_v4 }
 0x174   : > { %v893_v21 = vmul.f32 %v3184_v18, %v886_v19 }
 0x176   : > { %v4077_v22 = vadd.f32 %v3185_v20, %v893_v21 }
 0x178   : > { %v905_v23 = vpack.c.bf16 %v4077_v22, %v4077_v22 }
 0x17a   : > { %3384 = vmatmul.mubr.msk.bf16.vlgmr.msra.gmra.mxu0 %vm872_vm0, %v905_v23 }
 0x17b   : > { %3395 = vmatprep.mubr.msk.bf16.mxu0 %vm3825_vm1, %v3824_v10 }
 0x23a   : > { %v952_v25 = vpop.f32.mrf.mxu0 }
 0x23b   : > { %v953_v26 = vadd.f32 %v3186_v24, %v952_v25 }
 0x23c   : > { %v3385_v27 = vpop.f32.mrf.mxu0 }
 0x23d   : > { %v963_v28 = vpack.c.bf16 %v953_v26, %v953_v26 }
 0x23e   : > { %v955_v29 = vpop.f32.mrf.mxu0 }
 0x23f   : > { %1080 = vrot.lane.b32.xlu0 %v963_v28, %s4671_s6  ;;  %965 = vrot.lane.b32.xlu1 %v963_v28, %s4667_s0  ;;  %s4723_s6 = sshll.u32 %s4041_s2, 3  ;;  %s4726_s0 = sld [smem:[#allocation26_spill]] }
 0x240   : > { %v3386_v30 = vpop.f32.mrf.mxu0 }
 0x243   : > { %1082 = vrot.lane.b32.xlu1 %v963_v28, %s4669_s10  ;;  %s4731_s10 = smov 96  }
 0x2b1   : > { %v966_v31 = vpop.permute.xlu1 %965  ;;  %v1081_v35 = vpop.permute.xlu0 %1080 }
 0x2b2   : > { %v972_v32 = vsel %vm967_vm2, %v966_v31, 0 }
 0x2b3   : > { %3388 = vmatpush3.bf16.xpose.msra.mxu1 %v972_v32 }
 0x2b4   : > { %3399 = vmatprep.subr.bf16.mxu1 %v3824_v10 }
 0x2b5   : > { %v1083_v33 = vpop.permute.xlu1 %1082 }
 0x2b6   : > { %v1088_v34 = vsel %vm967_vm2, %v1083_v33, 0 }
 0x2ba   : > { %3390 = vmatmul.mubr.msk.bf16.vlgmr.msra.gmra.mxu1 %vm967_vm2, %v963_v28 }
 0x2bb   : > { %3400 = vmatpush3.bf16.xpose.msra.mxu1 %v1088_v34  ;;  %3401 = vmatprep.mubr.msk.bf16.mxu1 %vm3825_vm1, %v3824_v10 }
 0x2bc   : > { %3411 = vmatprep.subr.bf16.mxu1 %v3824_v10 }
 0x2c2   : > { %3402 = vmatmul.mubr.msk.bf16.vlgmr.msra.gmra.mxu1 %vm967_vm2, %v1081_v35  ;;  %v3194_v35 = vld [vmem:[%s4722_s5] ss:$0 sm:$0xff] }
 0x2c3   : > { %3413 = vmatprep.mubr.msk.bf16.mxu1 %vm3825_vm1, %v3824_v10 }
 0x37a   : > { %v1008_v39 = vpop.f32.mrf.mxu1 }
 0x37b   : > { %v1014_v42 = vmul.f32 0.25, %v1008_v39 }
 0x37c   : > { %v3391_v43 = vpop.f32.mrf.mxu1 }
 0x37d   : > { %v1015_v44 = vadd.f32 %v1014_v42, %v4100_v41 }
 0x37e   : > { %v1011_v45 = vpop.f32.mrf.mxu1 }
 0x37f   : > { %v1017_v46 = vsel %vm1016_vm4, %v1015_v44, -inf }
 0x380   : > { %1018 = vmax.xlane.f32.xlu1 %v1017_v46  ;;  %v3392_v47 = vpop.f32.mrf.mxu1 }
 0x382   : > { %v1124_v48 = vpop.f32.mrf.mxu1 }
 0x383   : > { %v1130_v49 = vmul.f32 0.25, %v1124_v48 }
 0x384   : > { %v3403_v50 = vpop.f32.mrf.mxu1 }
 0x385   : > { %v1131_v51 = vadd.f32 %v1130_v49, %v4100_v41  ;;  %v1377_v50 = vld [vmem:[%s4639_s13 + $0x18] sm:$0xff] }
 0x386   : > { %v1127_v52 = vpop.f32.mrf.mxu1 }
 0x387   : > { %v1132_v53 = vsel %vm1016_vm4, %v1131_v51, -inf }
 0x388   : > { %1133 = vmax.xlane.f32.xlu0 %v1132_v53  ;;  %v3404_v54 = vpop.f32.mrf.mxu1  ;;  %v1374_v53 = vld [vmem:[%s4639_s13] sm:$0xff] }
 0x389   : > { %v1375_v54 = vld [vmem:[%s4639_s13 + $0x8] sm:$0xff] }
 0x39e   : > { %1144 = vrot.lane.b32.xlu0 %v963_v28, %s4665_s8  ;;  %s4720_s8 = sld [smem:[#allocation24_spill]] }
 0x3a4   : > { %v958_v14 = vld [vmem:[%s4720_s8] sm:$0xff] }
 0x409   : > { %v1019_v55 = vpop.xlane.xlu1 %1018 }
 0x40a   : > { %v1020_v56 = vsub.f32 %v1015_v44, %v1019_v55  ;;  %v1379_v55 = vpack.c.bf16 %v1375_v54, %v1374_v53 }
 0x40c   : > { %v1021_v57 = vmul.f32 1.442695, %v1020_v56 }
 0x40e   : > { %3681 = vpow2.f32 %v1021_v57  ;;  %v1319_v57 = vld [vmem:[%s4725_s26 + $0x10] sm:$0xff] }
 0x411   : > { %v1134_v58 = vpop.xlane.xlu0 %1133 }
 0x412   : > { %v1135_v59 = vsub.f32 %v1131_v51, %v1134_v58  ;;  %v1320_v58 = vld [vmem:[%s4725_s26 + $0x18] sm:$0xff] }
 0x414   : > { %v1136_v60 = vmul.f32 1.442695, %v1135_v59  ;;  %v1323_v59 = vpack.c.bf16 %v1320_v58, %v1319_v57 }
 0x415   : > { %v1145_v7 = vpop.permute.xlu0 %1144 }
 0x416   : > { %3683 = vpow2.f32 %v1136_v60  ;;  %v1150_v9 = vsel %vm1034_vm5, %v1145_v7, 0  ;;  %v1317_v60 = vld [vmem:[%s4725_s26] sm:$0xff] }
 0x41b   : > { %v3682_v61 = vpop.eup %3681 }
 0x41c   : > { %v1023_v62 = vsel %vm1016_vm4, %v3682_v61, 0.0 }
 0x41d   : > { %1024 = vadd.xlane.f32.xlu1 %v1023_v62 }
 0x423   : > { %v3684_v63 = vpop.eup %3683 }
 0x424   : > { %v1138_v0 = vsel %vm1016_vm4, %v3684_v63, 0.0 }
 0x425   : > { %1139 = vadd.xlane.f32.xlu1 %v1138_v0 }
 0x436   : > { %1029 = vrot.lane.b32.xlu1 %v963_v28, %s4666_s29  ;;  %s4721_s29 = smov %s4720_s8  ;;  %s4724_s8 = sld [smem:[#allocation18_spill]] }
 0x437   : > { %v959_v15 = vld [vmem:[%s4721_s29 + $0x8] sm:$0xff]  ;;  %v960_v17 = vld [vmem:[%s4721_s29 + $0x10] sm:$0xff]  ;;  %v961_v18 = vld [vmem:[%s4721_s29 + $0x18] sm:$0xff] }
 0x438   : > { %v1079_v16 = vpack.c.bf16 %v959_v15, %v958_v14  ;;  %v1193_v19 = vpack.c.bf16 %v961_v18, %v960_v17  ;;  %v3197_v18 = vld [vmem:[%s4638_s12] ss:$0 sm:$0xff] }
 0x43a   : > { %3412 = vmatpush3.bf16.msra.mxu1 %v1193_v19 }
 0x43b   : > { %3423 = vmatprep.subr.bf16.mxu1 %v3824_v10 }
 0x43c   : > { %s856_s3 = scalar_lea.vmem %s4724_s8, %s4723_s6  ;;  %s4728_s8 = smov 112  }
 0x43d   : > { %v862_v52 = vld [vmem:[%s856_s3] sm:$0xff]  ;;  %s859_s6 = scalar_lea.vmem %s4729_s27, %s4041_s2  ;;  %s4730_s2 = smov 80  }
 0x43e   : > { %v4164_v56 = vpack.c.bf16 %v862_v52, %v862_v52  ;;  %s4737_s3 = sld [smem:[#allocation12_spill]] }
 0x4a6   : > { %v1025_v1 = vpop.xlane.xlu1 %1024 }
 0x4a7   : > { %3685 = vrcp.f32 %v1025_v1 }
 0x4ae   : > { %v1140_v2 = vpop.xlane.xlu1 %1139 }
 0x4af   : > { %3687 = vrcp.f32 %v1140_v2 }
 0x4b2   : > { %v1030_v3 = vpop.permute.xlu1 %1029 }
 0x4b3   : > { %v1036_v4 = vsel %vm1034_vm5, %v1030_v3, 0  ;;  %v3195_v3 = vld [vmem:[%s4726_s0] ss:$0 sm:$0xff] }
 0x4b4   : > { %v3686_v5 = vpop.eup %3685  ;;  %3394 = vmatpush3.bf16.msra.mxu0 %v1036_v4 }
 0x4b5   : > { %3405 = vmatprep.subr.bf16.mxu0 %v3824_v10  ;;  %v1027_v6 = vmul.f32 %v3686_v5, %v3682_v61  ;;  %v1318_v61 = vld [vmem:[%s4725_s26 + $0x8] sm:$0xff]  ;;  %v3196_v5 = vld [vmem:[%s4727_s1] ss:$0 sm:$0xff] }
 0x4b6   : > { %v1322_v62 = vpack.c.bf16 %v1318_v61, %v1317_v60 }
 0x4b7   : > { %v1028_v8 = vpack.c.bf16 %v1027_v6, %v1027_v6 }
 0x4b9   : > { %3396 = vmatmul.mubr.msk.bf16.vlgmr.msra.gmra.mxu0 %vm1016_vm4, %v1028_v8 }
 0x4ba   : > { %3406 = vmatpush3.bf16.msra.mxu0 %v1150_v9  ;;  %3407 = vmatprep.mubr.msk.bf16.mxu0 %vm3825_vm1, %v3824_v10  ;;  %v3199_v9 = vld [vmem:[%s4640_s14] ss:$0 sm:$0xff] }
 0x4bb   : > { %3417 = vmatprep.subr.bf16.mxu0 %v3824_v10 }
 0x4bc   : > { %v3688_v11 = vpop.eup %3687 }
 0x4bd   : > { %v1142_v12 = vmul.f32 %v3688_v11, %v3684_v63 }
 0x4bf   : > { %v1143_v13 = vpack.c.bf16 %v1142_v12, %v1142_v12 }
 0x4c1   : > { %3408 = vmatmul.mubr.msk.bf16.vlgmr.msra.gmra.mxu0 %vm1016_vm4, %v1143_v13 }
 0x4c2   : > { %3419 = vmatprep.mubr.msk.bf16.mxu0 %vm3825_vm1, %v3824_v10  ;;  %3418 = vmatpush3.bf16.msra.mxu0 %v1079_v16 }
 0x4c3   : > { %3431 = vmatprep.subr.bf16.mxu0 %v3824_v10 }
 0x579   : > { %v1072_v20 = vpop.f32.mrf.mxu0 }
 0x57a   : > { %v1078_v21 = vpack.c.bf16 %v1072_v20, %v1072_v20 }
 0x57b   : > { %v3397_v23 = vpop.f32.mrf.mxu0 }
 0x57c   : > { %3420 = vmatmul.mubr.msk.bf16.vlgmr.msra.gmra.mxu0 %vm967_vm2, %v1078_v21 }
 0x57d   : > { %v1075_v24 = vpop.f32.mrf.mxu0  ;;  %3435 = vmatprep.mubr.msk.bf16.mxu0 %vm3825_vm1, %v3824_v10 }
 0x57f   : > { %v3398_v25 = vpop.f32.mrf.mxu0 }
 0x581   : > { %v1186_v26 = vpop.f32.mrf.mxu0 }
 0x582   : > { %v1192_v27 = vpack.c.bf16 %v1186_v26, %v1186_v26 }
 0x583   : > { %v3409_v28 = vpop.f32.mrf.mxu0 }
 0x584   : > { %3414 = vmatmul.mubr.msk.bf16.vlgmr.msra.gmra.mxu1 %vm967_vm2, %v1192_v27 }
 0x585   : > { %v1189_v29 = vpop.f32.mrf.mxu0  ;;  %3427 = vmatprep.mubr.msk.bf16.mxu1 %vm3825_vm1, %v3824_v10  ;;  %3424 = vmatpush3.bf16.msra.mxu1 %v1323_v59 }
 0x586   : > { %3425 = vmatprep.subr.bf16.mxu1 %v3824_v10 }
 0x587   : > { %v3410_v30 = vpop.f32.mrf.mxu0 }
 0x588   : > { %v4220_v30 = vld [vmem:[%s859_s6] ss:$0 sm:$0xff] }
 0x589   : > { %3426 = vmatpush3.bf16.msra.mxu1 %v1322_v62 }
 0x58a   : > { %3439 = vmatprep.subr.bf16.mxu1 %v3824_v10 }
 0x63c   : > { %v1274_v31 = vpop.f32.mrf.mxu0 }
 0x63e   : > { %v3421_v32 = vpop.f32.mrf.mxu0 }
 0x640   : > { %v1277_v33 = vpop.f32.mrf.mxu0 }
 0x642   : > { %v3422_v34 = vpop.f32.mrf.mxu0 }
 0x644   : > { %v1231_v36 = vpop.f32.mrf.mxu1 }
 0x645   : > { %v1275_v37 = vadd.f32 %v1274_v31, %v1231_v36 }
 0x646   : > { %v3415_v38 = vpop.f32.mrf.mxu1 }
 0x647   : > { %v1286_v39 = vadd.f32 %v3194_v35, %v1275_v37 }
 0x648   : > { %v1234_v40 = vpop.f32.mrf.mxu1 }
 0x649   : > { %v1287_v42 = vadd.f32 %v1286_v39, %v4077_v22  ;;  %v1376_v22 = vld [vmem:[%s4639_s13 + $0x10] sm:$0xff] }
 0x64a   : > { %v3416_v43 = vpop.f32.mrf.mxu1  ;;  %v1380_v51 = vpack.c.bf16 %v1377_v50, %v1376_v22 }
 0x64b   : > { %v1290_v44 = vsel %vm872_vm0, %v1287_v42, 0.0 }
 0x64c   : > { %1291 = vadd.xlane.f32.xlu1 %v1290_v44  ;;  %3432 = vmatpush3.bf16.msra.mxu0 %v1380_v51 }
 0x64d   : > { %3433 = vmatprep.subr.bf16.mxu0 %v3824_v10 }
 0x650   : > { %3434 = vmatpush3.bf16.msra.mxu0 %v1379_v55 }
 0x651   : > { %3445 = vmatprep.subr.bf16.mxu0 %v3824_v10 }
 0x653   : > { %3436 = vmatmul.mubr.msk.bf16.vlgmr.msra.gmra.mxu0 %vm872_vm0, %v4164_v56 }
 0x654   : > { %3447 = vmatprep.mubr.msk.bf16.mxu0 %vm3825_vm1, %v3824_v10 }
 0x6d5   : > { %v1292_v45 = vpop.xlane.xlu1 %1291 }
 0x6d6   : > { %v1293_v46 = vmul.f32 0.03125, %v1292_v45 }
 0x6d8   : > { %v1294_v47 = vsub.f32 %v1287_v42, %v1293_v46 }
 0x6da   : > { %v1295_v48 = vmul.f32 %v1294_v47, %v1294_v47 }
 0x6dc   : > { %v1296_v49 = vsel %vm872_vm0, %v1295_v48, 0.0 }
 0x6dd   : > { %1297 = vadd.xlane.f32.xlu0 %v1296_v49 }
 0x713   : > { %v1425_v11 = vpop.f32.mrf.mxu0 }
 0x714   : > { %v1426_v12 = vadd.f32 %v3199_v9, %v1425_v11 }
 0x715   : > { %v3437_v13 = vpop.f32.mrf.mxu0 }
 0x716   : > { %v1437_v14 = vpack.c.bf16 %v1426_v12, %v1426_v12 }
 0x717   : > { %v1428_v15 = vpop.f32.mrf.mxu0 }
 0x718   : > { %1558 = vrot.lane.b32.xlu1 %v1437_v14, %s4728_s8  ;;  %v1442_v16 = vsel %vm967_vm2, %v1437_v14, 0 }
 0x719   : > { %v3438_v17 = vpop.f32.mrf.mxu0 }
 0x766   : > { %v1298_v63 = vpop.xlane.xlu0 %1297 }
 0x767   : > { %v1299_v0 = vmul.f32 0.03125, %v1298_v63 }
 0x769   : > { %v1300_v1 = vadd.f32 1e-05, %v1299_v0 }
 0x76b   : > { %3689 = vrsqrt.f32 %v1300_v1 }
 0x778   : > { %v3690_v2 = vpop.eup %3689 }
 0x779   : > { %v1302_v4 = vmul.f32 %v3690_v2, %v1294_v47 }
 0x77b   : > { %v1309_v6 = vmul.f32 %v3195_v3, %v1302_v4  ;;  %v1431_v3 = vld [vmem:[%s4641_s15] sm:$0xff]  ;;  %v1432_v4 = vld [vmem:[%s4641_s15 + $0x8] sm:$0xff] }
 0x77d   : > { %v4191_v7 = vadd.f32 %v3196_v5, %v1309_v6  ;;  %v1554_v5 = vpack.c.bf16 %v1432_v4, %v1431_v3  ;;  %v1433_v6 = vld [vmem:[%s4641_s15 + $0x10] sm:$0xff]  ;;  %v1860_v3 = vld [vmem:[%s4647_s21 + $0x8] sm:$0xff] }
 0x77f   : > { %v1321_v8 = vpack.c.bf16 %v4191_v7, %v4191_v7 }
 0x781   : > { %3428 = vmatmul.mubr.msk.bf16.vlgmr.msra.gmra.mxu1 %vm872_vm0, %v1321_v8  ;;  %v1434_v8 = vld [vmem:[%s4641_s15 + $0x18] sm:$0xff] }
 0x782   : > { %3441 = vmatprep.mubr.msk.bf16.mxu1 %vm3825_vm1, %v3824_v10  ;;  %3440 = vmatpush3.bf16.xpose.msra.mxu1 %v1442_v16  ;;  %v1669_v9 = vpack.c.bf16 %v1434_v8, %v1433_v6 }
 0x783   : > { %3451 = vmatprep.subr.bf16.mxu1 %v3824_v10 }
 0x78a   : > { %v1559_v20 = vpop.permute.xlu1 %1558 }
 0x78b   : > { %v1564_v25 = vsel %vm967_vm2, %v1559_v20, 0 }
 0x841   : > { %v1368_v19 = vpop.f32.mrf.mxu1 }
 0x842   : > { %v1369_v21 = vadd.f32 %v3197_v18, %v1368_v19 }
 0x843   : > { %v3429_v23 = vpop.f32.mrf.mxu1 }
 0x844   : > { %v1436_v24 = vpack.c.bf16 %v1369_v21, %v1369_v21 }
 0x845   : > { %v1371_v26 = vpop.f32.mrf.mxu1 }
 0x846   : > { %1556 = vrot.lane.b32.xlu0 %v1436_v24, %s4728_s8  ;;  %3442 = vmatmul.mubr.msk.bf16.vlgmr.msra.gmra.mxu1 %vm967_vm2, %v1436_v24  ;;  %v3208_v26 = vld [vmem:[%s4642_s16] ss:$0 sm:$0xff] }
 0x847   : > { %v3430_v27 = vpop.f32.mrf.mxu1  ;;  %3452 = vmatpush3.bf16.xpose.msra.mxu1 %v1564_v25  ;;  %3453 = vmatprep.mubr.msk.bf16.mxu1 %vm3825_vm1, %v3824_v10 }
 0x848   : > { %3463 = vmatprep.subr.bf16.mxu1 %v3824_v10 }
 0x8b8   : > { %v1557_v28 = vpop.permute.xlu0 %1556 }
 0x8b9   : > { %3454 = vmatmul.mubr.msk.bf16.vlgmr.msra.gmra.mxu1 %vm967_vm2, %v1557_v28 }
 0x8ba   : > { %3465 = vmatprep.mubr.msk.bf16.mxu1 %vm3825_vm1, %v3824_v10  ;;  %3464 = vmatpush3.bf16.msra.mxu1 %v1669_v9 }
 0x8bb   : > { %3475 = vmatprep.subr.bf16.mxu1 %v3824_v10 }
 0x906   : > { %v1478_v29 = vpop.f32.mrf.mxu1 }
 0x907   : > { %v1484_v31 = vmul.f32 0.25, %v1478_v29 }
 0x908   : > { %v3443_v32 = vpop.f32.mrf.mxu1 }
 0x909   : > { %v1491_v33 = vadd.f32 %v4220_v30, %v1484_v31 }
 0x90a   : > { %v1481_v34 = vpop.f32.mrf.mxu1 }
 0x90b   : > { %v1492_v35 = vsel %vm1016_vm4, %v1491_v33, -inf }
 0x90c   : > { %1493 = vmax.xlane.f32.xlu1 %v1492_v35  ;;  %v3444_v36 = vpop.f32.mrf.mxu1 }
 0x979   : > { %v1600_v37 = vpop.f32.mrf.mxu1 }
 0x97a   : > { %v1606_v38 = vmul.f32 0.25, %v1600_v37 }
 0x97b   : > { %v3455_v39 = vpop.f32.mrf.mxu1 }
 0x97c   : > { %v1607_v40 = vadd.f32 %v4220_v30, %v1606_v38 }
 0x97d   : > { %v1603_v42 = vpop.f32.mrf.mxu1 }
 0x97e   : > { %v1608_v43 = vsel %vm1016_vm4, %v1607_v40, -inf  ;;  %v1795_v42 = vld [vmem:[#allocation2 + $0x10] sm:$0xff] }
 0x97f   : > { %1609 = vmax.xlane.f32.xlu0 %v1608_v43  ;;  %v3456_v44 = vpop.f32.mrf.mxu1  ;;  %v1796_v43 = vld [vmem:[#allocation2 + $0x18] sm:$0xff] }
 0x980   : > { %v1799_v44 = vpack.c.bf16 %v1796_v43, %v1795_v42  ;;  %v3217_v42 = vld [vmem:[%s4716_s19 + $0x20] sm:$0xff]  ;;  %v3218_v43 = vld [vmem:[%s4716_s19 + $0x28] sm:$0xff] }
 0x995   : > { %v1494_v45 = vpop.xlane.xlu1 %1493  ;;  %1620 = vrot.lane.b32.xlu0 %v1437_v14, %s4730_s2 }
 0x996   : > { %v1495_v46 = vsub.f32 %v1491_v33, %v1494_v45  ;;  %v1793_v45 = vld [vmem:[#allocation2] sm:$0xff] }
 0x998   : > { %v1496_v47 = vmul.f32 1.442695, %v1495_v46  ;;  %v1794_v46 = vld [vmem:[#allocation2 + $0x8] sm:$0xff] }
 0x99a   : > { %3691 = vpow2.f32 %v1496_v47  ;;  %v1798_v47 = vpack.c.bf16 %v1794_v46, %v1793_v45 }
 0x9a7   : > { %v3692_v48 = vpop.eup %3691 }
 0x9a8   : > { %v1498_v49 = vsel %vm1016_vm4, %v3692_v48, 0.0 }
 0x9a9   : > { %1499 = vadd.xlane.f32.xlu1 %v1498_v49 }
 0xa08   : > { %v1610_v22 = vpop.xlane.xlu0 %1609 }
 0xa09   : > { %v1611_v50 = vsub.f32 %v1607_v40, %v1610_v22 }
 0xa0b   : > { %v1612_v51 = vmul.f32 1.442695, %v1611_v50  ;;  %v3209_v50 = vld [vmem:[%s4643_s17] ss:$0 sm:$0xff] }
 0xa0c   : > { %v1621_v61 = vpop.permute.xlu0 %1620 }
 0xa0d   : > { %3693 = vpow2.f32 %v1612_v51  ;;  %v1626_v63 = vsel %vm1034_vm5, %v1621_v61, 0  ;;  %v1864_v61 = vld [vmem:[%s4647_s21 + $0x28] sm:$0xff] }
 0xa1a   : > { %v3694_v52 = vpop.eup %3693 }
 0xa1b   : > { %v1614_v53 = vsel %vm1016_vm4, %v3694_v52, 0.0 }
 0xa1c   : > { %1615 = vadd.xlane.f32.xlu1 %v1614_v53 }
 0xa2d   : > { %1505 = vrot.lane.b32.xlu1 %v1437_v14, %s4731_s10 }
 0xa32   : > { %v1500_v54 = vpop.xlane.xlu1 %1499 }
 0xa33   : > { %3695 = vrcp.f32 %v1500_v54 }
 0xa40   : > { %v3696_v55 = vpop.eup %3695 }
 0xa41   : > { %v1502_v58 = vmul.f32 %v3696_v55, %v3692_v48 }
 0xa43   : > { %v1503_v62 = vpack.c.bf16 %v1502_v58, %v1502_v58  ;;  %v1866_v58 = vld [vmem:[%s4647_s21 + $0x38] sm:$0xff] }
 0xaa5   : > { %v1616_v57 = vpop.xlane.xlu1 %1615 }
 0xaa6   : > { %3697 = vrcp.f32 %v1616_v57  ;;  %v1865_v57 = vld [vmem:[%s4647_s21 + $0x30] sm:$0xff] }
 0xaa9   : > { %v1506_v59 = vpop.permute.xlu1 %1505 }
 0xaaa   : > { %v1511_v60 = vsel %vm1034_vm5, %v1506_v59, 0  ;;  %v1863_v59 = vld [vmem:[%s4647_s21 + $0x20] sm:$0xff] }
 0xaab   : > { %3446 = vmatpush3.bf16.msra.mxu0 %v1511_v60  ;;  %v1871_v60 = vpack.c.bf16 %v1866_v58, %v1865_v57 }
 0xaac   : > { %3457 = vmatprep.subr.bf16.mxu0 %v3824_v10 }
 0xaae   : > { %3448 = vmatmul.mubr.msk.bf16.vlgmr.msra.gmra.mxu0 %vm1016_vm4, %v1503_v62  ;;  %v1870_v62 = vpack.c.bf16 %v1864_v61, %v1863_v59 }
 0xaaf   : > { %3458 = vmatpush3.bf16.msra.mxu0 %v1626_v63  ;;  %3459 = vmatprep.mubr.msk.bf16.mxu0 %vm3825_vm1, %v3824_v10  ;;  %v1861_v63 = vld [vmem:[%s4647_s21 + $0x10] sm:$0xff] }
 0xab0   : > { %3469 = vmatprep.subr.bf16.mxu0 %v3824_v10 }
 0xab3   : > { %v3698_v0 = vpop.eup %3697 }
 0xab4   : > { %v1618_v1 = vmul.f32 %v3698_v0, %v3694_v52  ;;  %v3210_v52 = vld [vmem:[%s4644_s18] ss:$0 sm:$0xff]  ;;  %v1862_v0 = vld [vmem:[%s4647_s21 + $0x18] sm:$0xff] }
 0xab6   : > { %v1619_v2 = vpack.c.bf16 %v1618_v1, %v1618_v1  ;;  %v1869_v1 = vpack.c.bf16 %v1862_v0, %v1861_v63 }
 0xab8   : > { %3460 = vmatmul.mubr.msk.bf16.vlgmr.msra.gmra.mxu0 %vm1016_vm4, %v1619_v2  ;;  %v1859_v2 = vld [vmem:[%s4647_s21] sm:$0xff] }
 0xab9   : > { %3471 = vmatprep.mubr.msk.bf16.mxu0 %vm3825_vm1, %v3824_v10  ;;  %3470 = vmatpush3.bf16.msra.mxu0 %v1554_v5  ;;  %v1868_v4 = vpack.c.bf16 %v1860_v3, %v1859_v2  ;;  %v3211_v5 = vld [vmem:[%s4646_s20] ss:$0 sm:$0xff] }
 0xaba   : > { %3483 = vmatprep.subr.bf16.mxu0 %v3824_v10 }
 0xb6e   : > { %v1547_v11 = vpop.f32.mrf.mxu0 }
 0xb6f   : > { %v1553_v12 = vpack.c.bf16 %v1547_v11, %v1547_v11 }
 0xb70   : > { %v3449_v13 = vpop.f32.mrf.mxu0 }
 0xb71   : > { %3472 = vmatmul.mubr.msk.bf16.vlgmr.msra.gmra.mxu0 %vm967_vm2, %v1553_v12 }
 0xb72   : > { %v1550_v14 = vpop.f32.mrf.mxu0  ;;  %3491 = vmatprep.mubr.msk.bf16.mxu0 %vm3825_vm1, %v3824_v10  ;;  %3484 = vmatpush3.bf16.msra.mxu0 %v1871_v60 }
 0xb73   : > { %3485 = vmatprep.subr.bf16.mxu0 %v3824_v10 }
 0xb74   : > { %v3450_v15 = vpop.f32.mrf.mxu0 }
 0xb76   : > { %3486 = vmatpush3.bf16.msra.mxu0 %v1870_v62 }
 0xb77   : > { %3487 = vmatprep.subr.bf16.mxu0 %v3824_v10 }
 0xb78   : > { %v1662_v16 = vpop.f32.mrf.mxu0 }
 0xb79   : > { %v1668_v17 = vpack.c.bf16 %v1662_v16, %v1662_v16 }
 0xb7a   : > { %v3461_v18 = vpop.f32.mrf.mxu0  ;;  %3488 = vmatpush3.bf16.msra.mxu0 %v1869_v1 }
 0xb7b   : > { %3466 = vmatmul.mubr.msk.bf16.vlgmr.msra.gmra.mxu1 %vm967_vm2, %v1668_v17  ;;  %3489 = vmatprep.subr.bf16.mxu0 %v3824_v10 }
 0xb7c   : > { %v1665_v19 = vpop.f32.mrf.mxu0  ;;  %3479 = vmatprep.mubr.msk.bf16.mxu1 %vm3825_vm1, %v3824_v10  ;;  %3476 = vmatpush3.bf16.msra.mxu1 %v1799_v44  ;;  %v1959_v44 = vpack.c.bf16 %v3218_v43, %v3217_v42  ;;  %v3224_v42 = vld [vmem:[%s4721_s29 + $0x20] sm:$0xff]  ;;  %v3225_v43 = vld [vmem:[%s4721_s29 + $0x28] sm:$0xff] }
 0xb7d   : > { %3477 = vmatprep.subr.bf16.mxu1 %v3824_v10 }
 0xb7e   : > { %v3462_v20 = vpop.f32.mrf.mxu0  ;;  %3490 = vmatpush3.bf16.msra.mxu0 %v1868_v4 }
 0xb7f   : > { %3509 = vmatprep.subr.bf16.mxu0 %v3824_v10 }
 0xb80   : > { %3478 = vmatpush3.bf16.msra.mxu1 %v1798_v47 }
 0xb81   : > { %3495 = vmatprep.subr.bf16.mxu1 %v3824_v10 }
 0xc31   : > { %v1750_v21 = vpop.f32.mrf.mxu0 }
 0xc33   : > { %v3473_v23 = vpop.f32.mrf.mxu0 }
 0xc35   : > { %v1753_v24 = vpop.f32.mrf.mxu0 }
 0xc36   : > { %v3213_v24 = vld [vmem:[%s4648_s22] ss:$0 sm:$0xff] }
 0xc37   : > { %v3474_v25 = vpop.f32.mrf.mxu0 }
 0xc3b   : > { %v1707_v27 = vpop.f32.mrf.mxu1 }
 0xc3c   : > { %v1751_v28 = vadd.f32 %v1750_v21, %v1707_v27 }
 0xc3d   : > { %v3467_v29 = vpop.f32.mrf.mxu1 }
 0xc3e   : > { %v1762_v31 = vadd.f32 %v3208_v26, %v1751_v28 }
 0xc3f   : > { %v1710_v32 = vpop.f32.mrf.mxu1 }
 0xc40   : > { %v1763_v33 = vadd.f32 %v1762_v31, %v4191_v7 }
 0xc41   : > { %v3468_v34 = vpop.f32.mrf.mxu1 }
 0xc42   : > { %v1766_v35 = vsel %vm872_vm0, %v1763_v33, 0.0 }
 0xc43   : > { %1767 = vadd.xlane.f32.xlu1 %v1766_v35 }
 0xccc   : > { %v1768_v36 = vpop.xlane.xlu1 %1767 }
 0xccd   : > { %v1769_v37 = vmul.f32 0.03125, %v1768_v36 }
 0xccf   : > { %v1770_v38 = vsub.f32 %v1763_v33, %v1769_v37 }
 0xcd1   : > { %v1771_v39 = vmul.f32 %v1770_v38, %v1770_v38 }
 0xcd3   : > { %v1772_v40 = vsel %vm872_vm0, %v1771_v39, 0.0  ;;  %v3220_v39 = vld [vmem:[%s4716_s19 + $0x38] sm:$0xff] }
 0xcd4   : > { %1773 = vadd.xlane.f32.xlu0 %v1772_v40 }
 0xd5d   : > { %v1774_v7 = vpop.xlane.xlu0 %1773 }
 0xd5e   : > { %v1775_v48 = vmul.f32 0.03125, %v1774_v7 }
 0xd60   : > { %v1776_v49 = vadd.f32 1e-05, %v1775_v48  ;;  %v3215_v48 = vld [vmem:[%s4649_s23] ss:$0 sm:$0xff] }
 0xd62   : > { %3699 = vrsqrt.f32 %v1776_v49 }
 0xd6f   : > { %v3700_v22 = vpop.eup %3699 }
 0xd70   : > { %v1778_v51 = vmul.f32 %v3700_v22, %v1770_v38  ;;  %v3219_v38 = vld [vmem:[%s4716_s19 + $0x30] sm:$0xff]  ;;  %v3216_v22 = vld [vmem:[%s4650_s24] ss:$0 sm:$0xff] }
 0xd71   : > { %v1960_v40 = vpack.c.bf16 %v3220_v39, %v3219_v38 }
 0xd72   : > { %v1785_v53 = vmul.f32 %v3209_v50, %v1778_v51 }
 0xd74   : > { %v1792_v54 = vadd.f32 %v3210_v52, %v1785_v53  ;;  %v3222_v53 = vld [vmem:[%s4719_s28 + $0x1] ss:$0 sm:$0xff] }
 0xd76   : > { %v1797_v55 = vpack.c.bf16 %v1792_v54, %v1792_v54 }
 0xd78   : > { %3480 = vmatmul.mubr.msk.bf16.vlgmr.msra.gmra.mxu1 %vm872_vm0, %v1797_v55 }
 0xd79   : > { %3499 = vmatprep.mubr.msk.bf16.mxu1 %vm3825_vm1, %v3824_v10  ;;  %3496 = vmatpush3.bf16.msra.mxu1 %v1960_v40 }
 0xd7a   : > { %3497 = vmatprep.subr.bf16.mxu1 %v3824_v10 }
 0xd7d   : > { %3498 = vmatpush3.bf16.msra.mxu1 %v1959_v44  ;;  %v2132_v44 = vpack.c.bf16 %v3225_v43, %v3224_v42 }
 0xd7e   : > { %3503 = vmatprep.subr.bf16.mxu1 %v3824_v10 }
 0xe38   : > { %v1844_v6 = vpop.f32.mrf.mxu1 }
 0xe39   : > { %v1845_v8 = vadd.f32 %v3211_v5, %v1844_v6 }
 0xe3a   : > { %v3481_v9 = vpop.f32.mrf.mxu1 }
 0xe3b   : > { %v1851_v11 = vmul.f32 0.044715, %v1845_v8  ;;  %v1850_v19 = vmul.f32 0.5, %v1845_v8 }
 0xe3c   : > { %v1847_v12 = vpop.f32.mrf.mxu1 }
 0xe3d   : > { %v1852_v13 = vmul.f32 %v1851_v11, %v1845_v8 }
 0xe3e   : > { %v3482_v14 = vpop.f32.mrf.mxu1 }
 0xe3f   : > { %v1853_v15 = vmul.f32 %v1852_v13, %v1845_v8 }
 0xe41   : > { %v1854_v16 = vadd.f32 %v1853_v15, %v1845_v8 }
 0xe43   : > { %v1855_v17 = vmul.f32 0.7978846, %v1854_v16 }
 0xe45   : > { %3701 = vtanh.f32 %v1855_v17 }
 0xe52   : > { %v3702_v18 = vpop.eup %3701 }
 0xe53   : > { %v1857_v20 = vadd.f32 1.0, %v3702_v18 }
 0xe55   : > { %v1858_v21 = vmul.f32 %v1857_v20, %v1850_v19 }
 0xe57   : > { %v1867_v23 = vpack.c.bf16 %v1858_v21, %v1858_v21 }
 0xe59   : > { %3492 = vmatmul.mubr.msk.bf16.vlgmr.msra.gmra.mxu0 %vm1879_vm6, %v1867_v23 }
 0xe5a   : > { %3511 = vmatprep.mubr.msk.bf16.mxu0 %vm3825_vm1, %v3824_v10 }
 0xf19   : > { %v1917_v25 = vpop.f32.mrf.mxu0 }
 0xf1a   : > { %v1918_v26 = vadd.f32 %v3213_v24, %v1917_v25 }
 0xf1b   : > { %v3493_v27 = vpop.f32.mrf.mxu0 }
 0xf1c   : > { %v1923_v28 = vadd.f32 %v1918_v26, %v1792_v54 }
 0xf1d   : > { %v1920_v29 = vpop.f32.mrf.mxu0 }
 0xf1e   : > { %v1926_v31 = vsel %vm872_vm0, %v1923_v28, 0.0 }
 0xf1f   : > { %1927 = vadd.xlane.f32.xlu1 %v1926_v31  ;;  %v3494_v32 = vpop.f32.mrf.mxu0 }
 0xfa8   : > { %v1928_v33 = vpop.xlane.xlu1 %1927 }
 0xfa9   : > { %v1929_v34 = vmul.f32 0.03125, %v1928_v33 }
 0xfab   : > { %v1930_v35 = vsub.f32 %v1923_v28, %v1929_v34 }
 0xfad   : > { %v1931_v36 = vmul.f32 %v1930_v35, %v1930_v35 }
 0xfaf   : > { %v1932_v37 = vsel %vm872_vm0, %v1931_v36, 0.0 }
 0xfb0   : > { %1933 = vadd.xlane.f32.xlu0 %v1932_v37 }
0x1039   : > { %v1934_v45 = vpop.xlane.xlu0 %1933 }
0x103a   : > { %v1935_v46 = vmul.f32 0.03125, %v1934_v45  ;;  %v3226_v45 = vld [vmem:[%s4721_s29 + $0x30] sm:$0xff] }
0x103c   : > { %v1936_v47 = vadd.f32 1e-05, %v1935_v46  ;;  %v3227_v46 = vld [vmem:[%s4721_s29 + $0x38] sm:$0xff] }
0x103e   : > { %3703 = vrsqrt.f32 %v1936_v47  ;;  %v2246_v47 = vpack.c.bf16 %v3227_v46, %v3226_v45 }
0x104b   : > { %v3704_v7 = vpop.eup %3703 }
0x104c   : > { %v1938_v49 = vmul.f32 %v3704_v7, %v1930_v35 }
0x104e   : > { %v1945_v50 = vmul.f32 %v3215_v48, %v1938_v49 }
0x1050   : > { %v4336_v51 = vadd.f32 %v3216_v22, %v1945_v50 }
0x1052   : > { %v1958_v52 = vpack.c.bf16 %v4336_v51, %v4336_v51 }
0x1054   : > { %3500 = vmatmul.mubr.msk.bf16.vlgmr.msra.gmra.mxu1 %vm872_vm0, %v1958_v52 }
0x1055   : > { %3505 = vmatprep.mubr.msk.bf16.mxu1 %vm3825_vm1, %v3824_v10 }
0x1114   : > { %v2006_v54 = vpop.f32.mrf.mxu1 }
0x1115   : > { %v2007_v55 = vadd.f32 %v3222_v53, %v2006_v54 }
0x1116   : > { %v3501_v57 = vpop.f32.mrf.mxu1 }
0x1117   : > { %v2019_v58 = vpack.c.bf16 %v2007_v55, %v2007_v55 }
0x1118   : > { %v2009_v59 = vpop.f32.mrf.mxu1 }
0x1119   : > { %2135 = vrot.lane.b32.xlu0 %v2019_v58, %s4730_s2  ;;  %2021 = vrot.lane.b32.xlu1 %v2019_v58, %s4731_s10 }
0x111a   : > { %v3502_v60 = vpop.f32.mrf.mxu1 }
0x111d   : > { %2133 = vrot.lane.b32.xlu1 %v2019_v58, %s4728_s8 }
0x118b   : > { %v2022_v61 = vpop.permute.xlu1 %2021  ;;  %v2136_v63 = vpop.permute.xlu0 %2135 }
0x118c   : > { %v2027_v62 = vsel %vm967_vm2, %v2022_v61, 0  ;;  %v2141_v0 = vsel %vm967_vm2, %v2136_v63, 0 }
0x118d   : > { %3504 = vmatpush3.bf16.xpose.msra.mxu1 %v2027_v62  ;;  %v3235_v62 = vld [vmem:[%s4722_s5 + $0x1] ss:$0 sm:$0xff] }
0x118e   : > { %3515 = vmatprep.subr.bf16.mxu1 %v3824_v10 }
0x118f   : > { %v2134_v1 = vpop.permute.xlu1 %2133 }
0x1194   : > { %3506 = vmatmul.mubr.msk.bf16.vlgmr.msra.gmra.mxu1 %vm967_vm2, %v2019_v58 }
0x1195   : > { %3516 = vmatpush3.bf16.xpose.msra.mxu1 %v2141_v0  ;;  %3517 = vmatprep.mubr.msk.bf16.mxu1 %vm3825_vm1, %v3824_v10 }
0x1196   : > { %3527 = vmatprep.subr.bf16.mxu1 %v3824_v10 }
0x119c   : > { %3518 = vmatmul.mubr.msk.bf16.vlgmr.msra.gmra.mxu1 %vm967_vm2, %v2134_v1 }
0x119d   : > { %3529 = vmatprep.mubr.msk.bf16.mxu1 %vm3825_vm1, %v3824_v10  ;;  %3528 = vmatpush3.bf16.msra.mxu1 %v2246_v47 }
0x119e   : > { %3539 = vmatprep.subr.bf16.mxu1 %v3824_v10 }
0x1254   : > { %v2063_v2 = vpop.f32.mrf.mxu1 }
0x1255   : > { %v2069_v3 = vmul.f32 0.25, %v2063_v2 }
0x1256   : > { %v3507_v4 = vpop.f32.mrf.mxu1 }
0x1257   : > { %v2070_v5 = vadd.f32 %v2069_v3, %v4100_v41 }
0x1258   : > { %v2066_v6 = vpop.f32.mrf.mxu1 }
0x1259   : > { %v2071_v8 = vsel %vm1016_vm4, %v2070_v5, -inf }
0x125a   : > { %2072 = vmax.xlane.f32.xlu1 %v2071_v8  ;;  %v3508_v9 = vpop.f32.mrf.mxu1 }
0x125c   : > { %v2177_v11 = vpop.f32.mrf.mxu1 }
0x125d   : > { %v2183_v12 = vmul.f32 0.25, %v2177_v11 }
0x125e   : > { %v3519_v13 = vpop.f32.mrf.mxu1 }
0x125f   : > { %v2184_v14 = vadd.f32 %v2183_v12, %v4100_v41 }
0x1260   : > { %v2180_v15 = vpop.f32.mrf.mxu1 }
0x1261   : > { %v2185_v16 = vsel %vm1016_vm4, %v2184_v14, -inf  ;;  %v3250_v15 = vld [vmem:[%s4639_s13 + $0x38] sm:$0xff] }
0x1262   : > { %2186 = vmax.xlane.f32.xlu0 %v2185_v16  ;;  %v3520_v17 = vpop.f32.mrf.mxu1  ;;  %v3247_v16 = vld [vmem:[%s4639_s13 + $0x20] sm:$0xff] }
0x1263   : > { %v3248_v17 = vld [vmem:[%s4639_s13 + $0x28] sm:$0xff] }
0x12e3   : > { %v2073_v18 = vpop.xlane.xlu1 %2072 }
0x12e4   : > { %v2074_v19 = vsub.f32 %v2070_v5, %v2073_v18  ;;  %v2436_v18 = vpack.c.bf16 %v3248_v17, %v3247_v16 }
0x12e6   : > { %v2075_v20 = vmul.f32 1.442695, %v2074_v19  ;;  %v3242_v19 = vld [vmem:[%s4725_s26 + $0x30] sm:$0xff] }
0x12e8   : > { %3705 = vpow2.f32 %v2075_v20  ;;  %v3243_v20 = vld [vmem:[%s4725_s26 + $0x38] sm:$0xff] }
0x12eb   : > { %v2187_v21 = vpop.xlane.xlu0 %2186 }
0x12ec   : > { %v2188_v23 = vsub.f32 %v2184_v14, %v2187_v21  ;;  %v3249_v14 = vld [vmem:[%s4639_s13 + $0x30] sm:$0xff]  ;;  %v2379_v21 = vpack.c.bf16 %v3243_v20, %v3242_v19 }
0x12ed   : > { %v3256_v20 = vld [vmem:[%s4641_s15 + $0x30] sm:$0xff] }
0x12ee   : > { %v2189_v24 = vmul.f32 1.442695, %v2188_v23  ;;  %v3240_v23 = vld [vmem:[%s4725_s26 + $0x20] sm:$0xff] }
0x12f0   : > { %3707 = vpow2.f32 %v2189_v24 }
0x12f5   : > { %v3706_v25 = vpop.eup %3705 }
0x12f6   : > { %v2077_v26 = vsel %vm1016_vm4, %v3706_v25, 0.0 }
0x12f7   : > { %2078 = vadd.xlane.f32.xlu0 %v2077_v26 }
0x12fd   : > { %v3708_v27 = vpop.eup %3707 }
0x12fe   : > { %v2191_v41 = vsel %vm1016_vm4, %v3708_v27, 0.0 }
0x12ff   : > { %2192 = vadd.xlane.f32.xlu1 %v2191_v41 }
0x130d   : > { %2083 = vrot.lane.b32.xlu0 %v2019_v58, %s4732_s25  ;;  %s846_s25 = sand.u32 1, %s4736_s9  }
0x130e   : > { %s3181_s27 = sshll.u32 %s846_s25, 3  ;;  %s3070_s9 = scalar_lea.sflag [#allocation4], %s846_s25 }
0x130f   : > { %s848_s11 = scalar_lea.vmem [#allocation5], %s3181_s27 }
0x1310   : > { %2197 = vrot.lane.b32.xlu1 %v2019_v58, %s4733_s30  ;;  %s3083_s7 = sshll.u32 %s848_s11, 4  ;;  %s4587_s7 = int_to_ptr.vmem [resolvable:$true] %s3083_s7 }
0x1380   : > { %v2079_v28 = vpop.xlane.xlu0 %2078 }
0x1381   : > { %3709 = vrcp.f32 %v2079_v28  ;;  %v3238_v28 = vld [vmem:[%s4726_s0 + $0x1] ss:$0 sm:$0xff]  ;;  %s4739_s0 = sld [smem:[#allocation31_spill]] }
0x1384   : > { %v2084_v29 = vpop.permute.xlu0 %2083 }
0x1385   : > { %v2089_v31 = vsel %vm1034_vm5, %v2084_v29, 0 }
0x1386   : > { %3510 = vmatpush3.bf16.msra.mxu0 %v2089_v31  ;;  %v3239_v31 = vld [vmem:[%s4727_s1 + $0x1] ss:$0 sm:$0xff]  ;;  %s3291_s1 = sshll.u32 %s4737_s3, 7  ;;  %s3832_s3 = smov [#allocation5]  }
0x1387   : > { %3521 = vmatprep.subr.bf16.mxu0 %v3824_v10  ;;  %s3759_s27 = sshll.u32 %s3832_s3, 4  ;;  %s3760_s27 = int_to_ptr.vmem [resolvable:$false] %s3759_s27 }
0x1388   : > { %v2193_v32 = vpop.xlane.xlu1 %2192  ;;  %s3761_s5 = scalar_lea.vmem %s3760_s27, 256  ;;  %p3762_p11 = scmp.lt.s32.totalorder %s4587_s7, %s3760_s27 }
0x1389   : > { %3711 = vrcp.f32 %v2193_v32 }
0x138c   : > { %v2198_v35 = vpop.permute.xlu1 %2197 }
0x138d   : > { %v2203_v37 = vsel %vm1034_vm5, %v2198_v35, 0  ;;  %v3252_v35 = vld [vmem:[%s4640_s14 + $0x1] ss:$0 sm:$0xff] }
0x138e   : > { %v3710_v33 = vpop.eup %3709 }
0x138f   : > { %v2081_v34 = vmul.f32 %v3710_v33, %v3706_v25 }
0x1391   : > { %v2082_v36 = vpack.c.bf16 %v2081_v34, %v2081_v34 }
0x1393   : > { %3512 = vmatmul.mubr.msk.bf16.vlgmr.msra.gmra.mxu0 %vm1016_vm4, %v2082_v36 }
0x1394   : > { %3522 = vmatpush3.bf16.msra.mxu0 %v2203_v37  ;;  %3523 = vmatprep.mubr.msk.bf16.mxu0 %vm3825_vm1, %v3824_v10 }
0x1395   : > { %3533 = vmatprep.subr.bf16.mxu0 %v3824_v10 }
0x1396   : > { %v3712_v38 = vpop.eup %3711 }
0x1397   : > { %v2195_v39 = vmul.f32 %v3712_v38, %v3708_v27 }
0x1399   : > { %v2196_v40 = vpack.c.bf16 %v2195_v39, %v2195_v39 }
0x139b   : > { %3524 = vmatmul.mubr.msk.bf16.vlgmr.msra.gmra.mxu0 %vm1016_vm4, %v2196_v40 }
0x139c   : > { %3535 = vmatprep.mubr.msk.bf16.mxu0 %vm3825_vm1, %v3824_v10  ;;  %3534 = vmatpush3.bf16.msra.mxu0 %v2132_v44  ;;  %v3245_v44 = vld [vmem:[%s4638_s12 + $0x1] ss:$0 sm:$0xff] }
0x139d   : > { %3547 = vmatprep.subr.bf16.mxu0 %v3824_v10 }
0x1453   : > { %v2125_v7 = vpop.f32.mrf.mxu0 }
0x1454   : > { %v2131_v48 = vpack.c.bf16 %v2125_v7, %v2125_v7 }
0x1455   : > { %v3513_v49 = vpop.f32.mrf.mxu0 }
0x1456   : > { %3536 = vmatmul.mubr.msk.bf16.vlgmr.msra.gmra.mxu0 %vm967_vm2, %v2131_v48 }
0x1457   : > { %v2128_v22 = vpop.f32.mrf.mxu0  ;;  %3551 = vmatprep.mubr.msk.bf16.mxu0 %vm3825_vm1, %v3824_v10 }
0x1459   : > { %v3514_v50 = vpop.f32.mrf.mxu0 }
0x145b   : > { %v2239_v52 = vpop.f32.mrf.mxu0 }
0x145c   : > { %v2245_v53 = vpack.c.bf16 %v2239_v52, %v2239_v52 }
0x145d   : > { %v3525_v54 = vpop.f32.mrf.mxu0 }
0x145e   : > { %3530 = vmatmul.mubr.msk.bf16.vlgmr.msra.gmra.mxu1 %vm967_vm2, %v2245_v53 }
0x145f   : > { %v2242_v55 = vpop.f32.mrf.mxu0  ;;  %3543 = vmatprep.mubr.msk.bf16.mxu1 %vm3825_vm1, %v3824_v10  ;;  %3540 = vmatpush3.bf16.msra.mxu1 %v2379_v21  ;;  %v3257_v21 = vld [vmem:[%s4641_s15 + $0x38] sm:$0xff] }
0x1460   : > { %3541 = vmatprep.subr.bf16.mxu1 %v3824_v10 }
0x1461   : > { %v3526_v57 = vpop.f32.mrf.mxu0 }
0x1516   : > { %v2327_v58 = vpop.f32.mrf.mxu0 }
0x1518   : > { %v3537_v59 = vpop.f32.mrf.mxu0 }
0x151a   : > { %v2330_v60 = vpop.f32.mrf.mxu0 }
0x151c   : > { %v3538_v61 = vpop.f32.mrf.mxu0 }
0x151e   : > { %v2284_v63 = vpop.f32.mrf.mxu1 }
0x151f   : > { %v2328_v0 = vadd.f32 %v2327_v58, %v2284_v63 }
0x1520   : > { %v3531_v1 = vpop.f32.mrf.mxu1 }
0x1521   : > { %v2339_v2 = vadd.f32 %v3235_v62, %v2328_v0 }
0x1522   : > { %v2287_v3 = vpop.f32.mrf.mxu1 }
0x1523   : > { %v2340_v4 = vadd.f32 %v2339_v2, %v4336_v51  ;;  %v2437_v51 = vpack.c.bf16 %v3250_v15, %v3249_v14 }
0x1524   : > { %v3532_v5 = vpop.f32.mrf.mxu1 }
0x1525   : > { %v2345_v6 = vsel %vm872_vm0, %v2340_v4, 0.0  ;;  %3548 = vmatpush3.bf16.msra.mxu0 %v2437_v51 }
0x1526   : > { %2346 = vadd.xlane.f32.xlu1 %v2345_v6  ;;  %3549 = vmatprep.subr.bf16.mxu0 %v3824_v10 }
0x1529   : > { %3550 = vmatpush3.bf16.msra.mxu0 %v2436_v18 }
0x152a   : > { %3561 = vmatprep.subr.bf16.mxu0 %v3824_v10 }
0x152c   : > { %3552 = vmatmul.mubr.msk.bf16.vlgmr.msra.gmra.mxu0 %vm872_vm0, %v4164_v56  ;;  %v3241_v56 = vld [vmem:[%s4725_s26 + $0x28] sm:$0xff] }
0x152d   : > { %3563 = vmatprep.mubr.msk.bf16.mxu0 %vm3825_vm1, %v3824_v10  ;;  %v2378_v24 = vpack.c.bf16 %v3241_v56, %v3240_v23  ;;  %v2720_v23 = vpack.c.bf16 %v3257_v21, %v3256_v20  ;;  %v3276_v20 = vld [vmem:[%s4647_s21 + $0x58] sm:$0xff] }
0x152f   : > { %3542 = vmatpush3.bf16.msra.mxu1 %v2378_v24 }
0x1530   : > { %3555 = vmatprep.subr.bf16.mxu1 %v3824_v10 }
0x15af   : > { %v2347_v8 = vpop.xlane.xlu1 %2346 }
0x15b0   : > { %v2348_v9 = vmul.f32 0.03125, %v2347_v8 }
0x15b2   : > { %v2349_v11 = vsub.f32 %v2340_v4, %v2348_v9 }
0x15b4   : > { %v2350_v12 = vmul.f32 %v2349_v11, %v2349_v11 }
0x15b6   : > { %v2351_v13 = vsel %vm872_vm0, %v2350_v12, 0.0 }
0x15b7   : > { %2352 = vadd.xlane.f32.xlu0 %v2351_v13 }
0x15ec   : > { %v2480_v36 = vpop.f32.mrf.mxu0 }
0x15ed   : > { %v2481_v37 = vadd.f32 %v3252_v35, %v2480_v36 }
0x15ee   : > { %v3553_v38 = vpop.f32.mrf.mxu0 }
0x15ef   : > { %v2494_v39 = vpack.c.bf16 %v2481_v37, %v2481_v37 }
0x15f0   : > { %v2483_v40 = vpop.f32.mrf.mxu0 }
0x15f1   : > { %2609 = vrot.lane.b32.xlu0 %v2494_v39, %s4728_s8  ;;  %v2499_v42 = vsel %vm967_vm2, %v2494_v39, 0 }
0x15f2   : > { %v3554_v43 = vpop.f32.mrf.mxu0 }
0x1640   : > { %v2353_v25 = vpop.xlane.xlu0 %2352 }
0x1641   : > { %v2354_v26 = vmul.f32 0.03125, %v2353_v25 }
0x1643   : > { %v2355_v27 = vadd.f32 1e-05, %v2354_v26  ;;  %v3254_v26 = vld [vmem:[%s4641_s15 + $0x20] sm:$0xff] }
0x1645   : > { %3713 = vrsqrt.f32 %v2355_v27  ;;  %v3255_v27 = vld [vmem:[%s4641_s15 + $0x28] sm:$0xff] }
0x1652   : > { %v3714_v41 = vpop.eup %3713 }
0x1653   : > { %v2357_v29 = vmul.f32 %v3714_v41, %v2349_v11 }
0x1655   : > { %v2364_v32 = vmul.f32 %v3238_v28, %v2357_v29  ;;  %v2605_v29 = vpack.c.bf16 %v3255_v27, %v3254_v26 }
0x1657   : > { %v4441_v33 = vadd.f32 %v3239_v31, %v2364_v32 }
0x1659   : > { %v2377_v34 = vpack.c.bf16 %v4441_v33, %v4441_v33 }
0x165b   : > { %3544 = vmatmul.mubr.msk.bf16.vlgmr.msra.gmra.mxu1 %vm872_vm0, %v2377_v34 }
0x165c   : > { %3557 = vmatprep.mubr.msk.bf16.mxu1 %vm3825_vm1, %v3824_v10  ;;  %3556 = vmatpush3.bf16.xpose.msra.mxu1 %v2499_v42 }
0x165d   : > { %3567 = vmatprep.subr.bf16.mxu1 %v3824_v10 }
0x1663   : > { %v2610_v46 = vpop.permute.xlu0 %2609 }
0x1664   : > { %v2615_v49 = vsel %vm967_vm2, %v2610_v46, 0 }
0x171b   : > { %v2425_v45 = vpop.f32.mrf.mxu1 }
0x171c   : > { %v2426_v47 = vadd.f32 %v3245_v44, %v2425_v45 }
0x171d   : > { %v3545_v7 = vpop.f32.mrf.mxu1 }
0x171e   : > { %v2493_v48 = vpack.c.bf16 %v2426_v47, %v2426_v47  ;;  %v3265_v7 = vld [vmem:[%s4642_s16 + $0x1] ss:$0 sm:$0xff] }
0x171f   : > { %v2428_v22 = vpop.f32.mrf.mxu1 }
0x1720   : > { %2607 = vrot.lane.b32.xlu1 %v2493_v48, %s4728_s8  ;;  %3558 = vmatmul.mubr.msk.bf16.vlgmr.msra.gmra.mxu1 %vm967_vm2, %v2493_v48  ;;  %s4734_s8 = sld [smem:[#allocation30_spill]] }
0x1721   : > { %v3546_v50 = vpop.f32.mrf.mxu1  ;;  %3568 = vmatpush3.bf16.xpose.msra.mxu1 %v2615_v49  ;;  %3569 = vmatprep.mubr.msk.bf16.mxu1 %vm3825_vm1, %v3824_v10 }
0x1722   : > { %3579 = vmatprep.subr.bf16.mxu1 %v3824_v10 }
0x1792   : > { %v2608_v52 = vpop.permute.xlu1 %2607 }
0x1793   : > { %3570 = vmatmul.mubr.msk.bf16.vlgmr.msra.gmra.mxu1 %vm967_vm2, %v2608_v52 }
0x1794   : > { %3581 = vmatprep.mubr.msk.bf16.mxu1 %vm3825_vm1, %v3824_v10  ;;  %3580 = vmatpush3.bf16.msra.mxu1 %v2720_v23  ;;  %v3273_v23 = vld [vmem:[%s4647_s21 + $0x40] sm:$0xff] }
0x1795   : > { %3591 = vmatprep.subr.bf16.mxu1 %v3824_v10 }
0x17e0   : > { %v2535_v53 = vpop.f32.mrf.mxu1 }
0x17e1   : > { %v2541_v54 = vmul.f32 0.25, %v2535_v53 }
0x17e2   : > { %v3559_v55 = vpop.f32.mrf.mxu1 }
0x17e3   : > { %v2542_v57 = vadd.f32 %v4220_v30, %v2541_v54 }
0x17e4   : > { %v2538_v58 = vpop.f32.mrf.mxu1 }
0x17e5   : > { %v2543_v59 = vsel %vm1016_vm4, %v2542_v57, -inf }
0x17e6   : > { %2544 = vmax.xlane.f32.xlu1 %v2543_v59  ;;  %v3560_v60 = vpop.f32.mrf.mxu1 }
0x1853   : > { %v2651_v61 = vpop.f32.mrf.mxu1 }
0x1854   : > { %v2657_v62 = vmul.f32 0.25, %v2651_v61 }
0x1855   : > { %v3571_v63 = vpop.f32.mrf.mxu1 }
0x1856   : > { %v2658_v0 = vadd.f32 %v4220_v30, %v2657_v62  ;;  %v2849_v62 = vld [vmem:[#allocation2 + $0x30] sm:$0xff]  ;;  %v2850_v63 = vld [vmem:[#allocation2 + $0x38] sm:$0xff] }
0x1857   : > { %v2654_v1 = vpop.f32.mrf.mxu1 }
0x1858   : > { %v2659_v2 = vsel %vm1016_vm4, %v2658_v0, -inf  ;;  %v2847_v1 = vld [vmem:[#allocation2 + $0x20] sm:$0xff] }
0x1859   : > { %2660 = vmax.xlane.f32.xlu0 %v2659_v2  ;;  %v3572_v3 = vpop.f32.mrf.mxu1  ;;  %v2848_v2 = vld [vmem:[#allocation2 + $0x28] sm:$0xff] }
0x185a   : > { %v2852_v3 = vpack.c.bf16 %v2848_v2, %v2847_v1  ;;  %v3286_v2 = vld [vmem:[%s4649_s23 + $0x1] ss:$0 sm:$0xff] }
0x186f   : > { %v2545_v4 = vpop.xlane.xlu1 %2544 }
0x1870   : > { %v2546_v5 = vsub.f32 %v2542_v57, %v2545_v4 }
0x1872   : > { %v2547_v6 = vmul.f32 1.442695, %v2546_v5 }
0x1874   : > { %3715 = vpow2.f32 %v2547_v6 }
0x1881   : > { %v3716_v8 = vpop.eup %3715 }
0x1882   : > { %v2549_v9 = vsel %vm1016_vm4, %v3716_v8, 0.0 }
0x1883   : > { %2550 = vadd.xlane.f32.xlu0 %v2549_v9 }
0x1899   : > { %2556 = vrot.lane.b32.xlu0 %v2494_v39, %s4731_s10  ;;  %s4735_s10 = smov %s4734_s8 }
0x18e2   : > { %v2661_v11 = vpop.xlane.xlu0 %2660 }
0x18e3   : > { %v2662_v12 = vsub.f32 %v2658_v0, %v2661_v11  ;;  %v2853_v0 = vpack.c.bf16 %v2850_v63, %v2849_v62  ;;  %v3269_v11 = vld [vmem:[%s4644_s18 + $0x1] ss:$0 sm:$0xff] }
0x18e5   : > { %v2663_v13 = vmul.f32 1.442695, %v2662_v12 }
0x18e7   : > { %3717 = vpow2.f32 %v2663_v13 }
0x18f4   : > { %v3718_v30 = vpop.eup %3717 }
0x18f5   : > { %v2665_v14 = vsel %vm1016_vm4, %v3718_v30, 0.0 }
0x18f6   : > { %2666 = vadd.xlane.f32.xlu1 %v2665_v14  ;;  %v3279_v14 = vld [vmem:[%s4647_s21 + $0x70] sm:$0xff] }
0x1907   : > { %2671 = vrot.lane.b32.xlu1 %v2494_v39, %s4730_s2  ;;  %s4740_s2 = sld [smem:[#allocation32_spill]] }
0x190c   : > { %v2551_v15 = vpop.xlane.xlu0 %2550 }
0x190d   : > { %3719 = vrcp.f32 %v2551_v15  ;;  %v3280_v15 = vld [vmem:[%s4647_s21 + $0x78] sm:$0xff] }
0x1910   : > { %v2557_v51 = vpop.permute.xlu0 %2556 }
0x1911   : > { %v2562_v16 = vsel %vm1034_vm5, %v2557_v51, 0  ;;  %v3277_v51 = vld [vmem:[%s4647_s21 + $0x60] sm:$0xff] }
0x1912   : > { %3562 = vmatpush3.bf16.msra.mxu0 %v2562_v16  ;;  %v2927_v16 = vpack.c.bf16 %v3280_v15, %v3279_v14 }
0x1913   : > { %3573 = vmatprep.subr.bf16.mxu0 %v3824_v10 }
0x191a   : > { %v3720_v17 = vpop.eup %3719 }
0x191b   : > { %v2553_v18 = vmul.f32 %v3720_v17, %v3716_v8  ;;  %v3268_v8 = vld [vmem:[%s4643_s17 + $0x1] ss:$0 sm:$0xff]  ;;  %v3278_v17 = vld [vmem:[%s4647_s21 + $0x68] sm:$0xff] }
0x191d   : > { %v2554_v19 = vpack.c.bf16 %v2553_v18, %v2553_v18  ;;  %v2926_v18 = vpack.c.bf16 %v3278_v17, %v3277_v51 }
0x191f   : > { %3564 = vmatmul.mubr.msk.bf16.vlgmr.msra.gmra.mxu0 %vm1016_vm4, %v2554_v19  ;;  %v3275_v19 = vld [vmem:[%s4647_s21 + $0x50] sm:$0xff] }
0x1920   : > { %3575 = vmatprep.mubr.msk.bf16.mxu0 %vm3825_vm1, %v3824_v10  ;;  %v2925_v21 = vpack.c.bf16 %v3276_v20, %v3275_v19 }
0x197f   : > { %v2667_v56 = vpop.xlane.xlu1 %2666 }
0x1980   : > { %3721 = vrcp.f32 %v2667_v56  ;;  %v3274_v56 = vld [vmem:[%s4647_s21 + $0x48] sm:$0xff] }
0x1983   : > { %v2672_v24 = vpop.permute.xlu1 %2671 }
0x1984   : > { %v2677_v25 = vsel %vm1034_vm5, %v2672_v24, 0  ;;  %v2924_v24 = vpack.c.bf16 %v3274_v56, %v3273_v23 }
0x1985   : > { %3574 = vmatpush3.bf16.msra.mxu0 %v2677_v25  ;;  %v3271_v25 = vld [vmem:[%s4646_s20 + $0x1] ss:$0 sm:$0xff] }
0x1986   : > { %3585 = vmatprep.subr.bf16.mxu0 %v3824_v10 }
0x198d   : > { %v3722_v41 = vpop.eup %3721 }
0x198e   : > { %v2669_v28 = vmul.f32 %v3722_v41, %v3718_v30 }
0x1990   : > { %v2670_v31 = vpack.c.bf16 %v2669_v28, %v2669_v28 }
0x1992   : > { %3576 = vmatmul.mubr.msk.bf16.vlgmr.msra.gmra.mxu0 %vm1016_vm4, %v2670_v31 }
0x1993   : > { %3586 = vmatpush3.bf16.msra.mxu0 %v2605_v29  ;;  %3587 = vmatprep.mubr.msk.bf16.mxu0 %vm3825_vm1, %v3824_v10 }
0x1994   : > { %3599 = vmatprep.subr.bf16.mxu0 %v3824_v10 }
0x19df   : > { %v2598_v32 = vpop.f32.mrf.mxu0 }
0x19e0   : > { %v2604_v34 = vpack.c.bf16 %v2598_v32, %v2598_v32 }
0x19e1   : > { %v3565_v35 = vpop.f32.mrf.mxu0 }
0x19e2   : > { %3588 = vmatmul.mubr.msk.bf16.vlgmr.msra.gmra.mxu0 %vm967_vm2, %v2604_v34 }
0x19e3   : > { %v2601_v36 = vpop.f32.mrf.mxu0  ;;  %3607 = vmatprep.mubr.msk.bf16.mxu0 %vm3825_vm1, %v3824_v10  ;;  %3600 = vmatpush3.bf16.msra.mxu0 %v2927_v16 }
0x19e4   : > { %3601 = vmatprep.subr.bf16.mxu0 %v3824_v10 }
0x19e5   : > { %v3566_v37 = vpop.f32.mrf.mxu0 }
0x19e7   : > { %3602 = vmatpush3.bf16.msra.mxu0 %v2926_v18 }
0x19e8   : > { %3603 = vmatprep.subr.bf16.mxu0 %v3824_v10 }
0x19eb   : > { %3604 = vmatpush3.bf16.msra.mxu0 %v2925_v21 }
0x19ec   : > { %3605 = vmatprep.subr.bf16.mxu0 %v3824_v10 }
0x19ef   : > { %3606 = vmatpush3.bf16.msra.mxu0 %v2924_v24 }
0x1a52   : > { %v2713_v38 = vpop.f32.mrf.mxu0 }
0x1a53   : > { %v2719_v39 = vpack.c.bf16 %v2713_v38, %v2713_v38 }
0x1a54   : > { %v3577_v40 = vpop.f32.mrf.mxu0 }
0x1a55   : > { %3582 = vmatmul.mubr.msk.bf16.vlgmr.msra.gmra.mxu1 %vm967_vm2, %v2719_v39 }
0x1a56   : > { %v2716_v42 = vpop.f32.mrf.mxu0  ;;  %3595 = vmatprep.mubr.msk.bf16.mxu1 %vm3825_vm1, %v3824_v10  ;;  %3592 = vmatpush3.bf16.msra.mxu1 %v2853_v0 }
0x1a57   : > { %3593 = vmatprep.subr.bf16.mxu1 %v3824_v10 }
0x1a58   : > { %v3578_v43 = vpop.f32.mrf.mxu0 }
0x1a59   : > { %v3282_v43 = vld [vmem:[%s4648_s22 + $0x1] ss:$0 sm:$0xff] }
0x1a5a   : > { %3594 = vmatpush3.bf16.msra.mxu1 %v2852_v3 }
0x1a5b   : > { %3611 = vmatprep.subr.bf16.mxu1 %v3824_v10 }
0x1aa2   : > { %v2801_v44 = vpop.f32.mrf.mxu0 }
0x1aa4   : > { %v3589_v45 = vpop.f32.mrf.mxu0 }
0x1aa6   : > { %v2804_v46 = vpop.f32.mrf.mxu0 }
0x1aa8   : > { %v3590_v47 = vpop.f32.mrf.mxu0 }
0x1b15   : > { %v2758_v48 = vpop.f32.mrf.mxu1 }
0x1b16   : > { %v2802_v49 = vadd.f32 %v2801_v44, %v2758_v48 }
0x1b17   : > { %v3583_v22 = vpop.f32.mrf.mxu1 }
0x1b18   : > { %v2813_v50 = vadd.f32 %v3265_v7, %v2802_v49 }
0x1b19   : > { %v2761_v52 = vpop.f32.mrf.mxu1 }
0x1b1a   : > { %v2814_v53 = vadd.f32 %v2813_v50, %v4441_v33 }
0x1b1b   : > { %v3584_v54 = vpop.f32.mrf.mxu1 }
0x1b1c   : > { %v2819_v55 = vsel %vm872_vm0, %v2814_v53, 0.0 }
0x1b1d   : > { %2820 = vadd.xlane.f32.xlu1 %v2819_v55  ;;  %v3013_v55 = vld [vmem:[%s4734_s8 + $0x10] sm:$0xff] }
0x1ba6   : > { %v2821_v57 = vpop.xlane.xlu1 %2820 }
0x1ba7   : > { %v2822_v58 = vmul.f32 0.03125, %v2821_v57  ;;  %v3014_v57 = vld [vmem:[%s4735_s10 + $0x18] sm:$0xff] }
0x1ba9   : > { %v2823_v59 = vsub.f32 %v2814_v53, %v2822_v58  ;;  %v3017_v58 = vpack.c.bf16 %v3014_v57, %v3013_v55 }
0x1bab   : > { %v2824_v60 = vmul.f32 %v2823_v59, %v2823_v59 }
0x1bad   : > { %v2825_v61 = vsel %vm872_vm0, %v2824_v60, 0.0  ;;  %v3012_v60 = vld [vmem:[%s4735_s10 + $0x8] sm:$0xff] }
0x1bae   : > { %2826 = vadd.xlane.f32.xlu0 %v2825_v61 }
0x1c37   : > { %v2827_v33 = vpop.xlane.xlu0 %2826 }
0x1c38   : > { %v2828_v4 = vmul.f32 0.03125, %v2827_v33  ;;  %v3287_v33 = vld [vmem:[%s4650_s24 + $0x1] ss:$0 sm:$0xff] }
0x1c3a   : > { %v2829_v5 = vadd.f32 1e-05, %v2828_v4 }
0x1c3c   : > { %3723 = vrsqrt.f32 %v2829_v5 }
0x1c49   : > { %v3724_v6 = vpop.eup %3723 }
0x1c4a   : > { %v2831_v9 = vmul.f32 %v3724_v6, %v2823_v59  ;;  %v3011_v59 = vld [vmem:[%s4735_s10] sm:$0xff]  ;;  %s4585_s10 = scalar_lea.hbm %s4740_s2, %s3291_s1 }
0x1c4b   : > { %v3016_v61 = vpack.c.bf16 %v3012_v60, %v3011_v59 }
0x1c4c   : > { %v2838_v12 = vmul.f32 %v3268_v8, %v2831_v9 }
0x1c4e   : > { %v2845_v13 = vadd.f32 %v3269_v11, %v2838_v12 }
0x1c50   : > { %v2851_v30 = vpack.c.bf16 %v2845_v13, %v2845_v13 }
0x1c52   : > { %3596 = vmatmul.mubr.msk.bf16.vlgmr.msra.gmra.mxu1 %vm872_vm0, %v2851_v30 }
0x1c53   : > { %3615 = vmatprep.mubr.msk.bf16.mxu1 %vm3825_vm1, %v3824_v10  ;;  %3612 = vmatpush3.bf16.msra.mxu1 %v3017_v58 }
0x1c54   : > { %3613 = vmatprep.subr.bf16.mxu1 %v3824_v10  ;;  %v3288_v10 = vld [vmem:[%s4739_s0] ss:$0 sm:$0xff]  ;;  %s3755_s0 = scalar_lea.vmem %s4587_s7, 128 }
0x1c55   : > { %p3756_p6 = scmp.ne.s32.totalorder %s4587_s7, %s3755_s0  ;;  %p3763_p12 = scmp.lt.s32.totalorder %s3761_s5, %s3755_s0 }
0x1c57   : > { %3614 = vmatpush3.bf16.msra.mxu1 %v3016_v61  ;;  %p3757_p9 = pnand %p3756_p6, %p4011_p5  ;;  %p3764_p13 = por %p3763_p12, %p3762_p11 }
0x1c59   : > { %p3758_p10 = pneg %p3757_p9 }
0x1c5b   : > { %p3765_p0 = pnand %p3764_p13, %p3758_p10 }
0x1d12   : > { %v2899_v26 = vpop.f32.mrf.mxu1 }
0x1d13   : > { %v2900_v27 = vadd.f32 %v3271_v25, %v2899_v26 }
0x1d14   : > { %v3597_v41 = vpop.f32.mrf.mxu1 }
0x1d15   : > { %v2906_v28 = vmul.f32 0.044715, %v2900_v27  ;;  %v2905_v38 = vmul.f32 0.5, %v2900_v27 }
0x1d16   : > { %v2902_v29 = vpop.f32.mrf.mxu1 }
0x1d17   : > { %v2907_v31 = vmul.f32 %v2906_v28, %v2900_v27 }
0x1d18   : > { %v3598_v32 = vpop.f32.mrf.mxu1 }
0x1d19   : > { %v2908_v34 = vmul.f32 %v2907_v31, %v2900_v27 }
0x1d1b   : > { %v2909_v35 = vadd.f32 %v2908_v34, %v2900_v27 }
0x1d1d   : > { %v2910_v36 = vmul.f32 0.7978846, %v2909_v35 }
0x1d1f   : > { %3725 = vtanh.f32 %v2910_v36 }
0x1d2c   : > { %v3726_v37 = vpop.eup %3725 }
0x1d2d   : > { %v2912_v39 = vadd.f32 1.0, %v3726_v37 }
0x1d2f   : > { %v2913_v40 = vmul.f32 %v2912_v39, %v2905_v38 }
0x1d31   : > { %v2923_v42 = vpack.c.bf16 %v2913_v40, %v2913_v40 }
0x1d33   : > { %3608 = vmatmul.mubr.msk.bf16.vlgmr.msra.gmra.mxu0 %vm1879_vm6, %v2923_v42 }
0x1df3   : > { %v2973_v44 = vpop.f32.mrf.mxu0 }
0x1df4   : > { %v2974_v45 = vadd.f32 %v3282_v43, %v2973_v44 }
0x1df5   : > { %v3609_v46 = vpop.f32.mrf.mxu0 }
0x1df6   : > { %v2979_v47 = vadd.f32 %v2974_v45, %v2845_v13 }
0x1df7   : > { %v2976_v7 = vpop.f32.mrf.mxu0 }
0x1df8   : > { %v2984_v48 = vsel %vm872_vm0, %v2979_v47, 0.0 }
0x1df9   : > { %2985 = vadd.xlane.f32.xlu0 %v2984_v48  ;;  %v3610_v49 = vpop.f32.mrf.mxu0 }
0x1e82   : > { %v2986_v22 = vpop.xlane.xlu0 %2985 }
0x1e83   : > { %v2987_v50 = vmul.f32 0.03125, %v2986_v22 }
0x1e85   : > { %v2988_v52 = vsub.f32 %v2979_v47, %v2987_v50 }
0x1e87   : > { %v2989_v53 = vmul.f32 %v2988_v52, %v2988_v52 }
0x1e89   : > { %v2990_v54 = vsel %vm872_vm0, %v2989_v53, 0.0 }
0x1e8a   : > { %2991 = vadd.xlane.f32.xlu1 %v2990_v54 }
0x1f13   : > { %v2992_v62 = vpop.xlane.xlu1 %2991 }
0x1f14   : > { %v2993_v63 = vmul.f32 0.03125, %v2992_v62 }
0x1f16   : > { %v2994_v0 = vadd.f32 1e-05, %v2993_v63 }
0x1f18   : > { %3727 = vrsqrt.f32 %v2994_v0 }
0x1f25   : > { %v3728_v1 = vpop.eup %3727 }
0x1f26   : > { %v2996_v3 = vmul.f32 %v3728_v1, %v2988_v52 }
0x1f28   : > { %v3003_v4 = vmul.f32 %v3286_v2, %v2996_v3 }
0x1f2a   : > { %v3010_v5 = vadd.f32 %v3287_v33, %v3003_v4 }
0x1f2c   : > { %v3015_v6 = vpack.c.bf16 %v3010_v5, %v3010_v5 }
0x1f2e   : > { %3616 = vmatmul.mubr.msk.bf16.vlgmr.msra.gmra.mxu1 %vm872_vm0, %v3015_v6 }
0x1fee   : > { %v3062_v8 = vpop.f32.mrf.mxu1 }
0x1fef   : > { %v3063_v9 = vadd.f32 %v3288_v10, %v3062_v8 }
0x1ff0   : > { %v3617_v11 = vpop.f32.mrf.mxu1 }
0x1ff1   : > { %3068 = vst [vmem:[%s848_s11] sm:$0xff] %v3063_v9 }
0x1ff2   : > { %v3065_v12 = vpop.f32.mrf.mxu1 }
0x1ff3   : > { %3768 = shalt.err (!%p3765_p0)
}
0x1ff4   : > { %s3769_s1 = scalar_lea.hbm %s4585_s10, 128  ;;  %s3773_s4 = scalar_lea.hbm %s4740_s2, 256 }
0x1ff5   : > { %p3770_p1 = scmp.ne.s32.totalorder %s4585_s10, %s3769_s1  ;;  %p3774_p4 = scmp.lt.s32.totalorder %s4585_s10, %s4740_s2 }
0x1ff6   : > { %p3775_p7 = scmp.lt.s32.totalorder %s3773_s4, %s3769_s1 }
0x1ff7   : > { %p3771_p2 = pnand %p3770_p1, %p4011_p5 }
0x1ff8   : > { %p3776_p8 = por %p3775_p7, %p3774_p4 }
0x1ff9   : > { %p3772_p3 = pneg %p3771_p2 }
0x1ffb   : > { %p3777_p6 = pnand %p3776_p8, %p3772_p3 }
0x1ffd   : > { %3780 = shalt.err (!%p3777_p6)
}
0x1ffe   : > { %3623 = dma.vmem_to_hbm [thread:$0]  (%p4011_p5), %s4587_s7, 128, %s4585_s10, %s3070_s9   ;;  %v3618_v13 = vpop.f32.mrf.mxu1 }
0x1fff PF: > { %s4741_s0 = sld [smem:[#allocation11_spill]] }
0x2000   : > { %s4742_s3 = sld [smem:[#allocation8_spill]] }
0x2001   : > { %s4743_s27 = sld [smem:[#allocation16_spill]] }
0x2005   : > { %p3635_p9 = scmp.ge.s32.totalorder %s4741_s0, 2 }
0x2006   : > { %s3095_s5 = sand.u32 1, %s4742_s3  }
0x2007   : > { %p4744_p10 = scmp.ne.s32.totalorder %s4743_s27, 0  ;;  %s3096_s25 = scalar_lea.sflag [#allocation4], %s3095_s5 }
0x2009   : > { %p3630_p11 = pnand %p3635_p9, %p4744_p10 }
0x200b   : > { %p3631_p12 = pneg %p3630_p11 }
0x200d   : > { %3802 = dma.done.wait (%p3631_p12), %s3096_s25, 128  }
0x200e   : > { %3804 = vsyncadd (%p3631_p12), %s3096_s25, 4294967168  ;;  %s4745_s30 = sld [smem:[#allocation13_spill]] }
0x200f   : > { %s4746_s7 = sld [smem:[#allocation9_spill]] }
0x2010   : > { %s4747_s4 = sld [smem:[#allocation10_spill]] }
0x2011   : > { %s4748_s8 = sld [smem:[#allocation14_spill]] }
0x2014   : > { %p38_p13 = scmp.ge.s32.totalorder %s4745_s30, 4  }
0x2016   :  { %40 = sbr.rel (!%p38_p13) target bundleno = 21 (0x15), region = 194 }
0x201b   :  { %3101 = vsyncpa [#allocation3], 1 }
0x201c   :  { %3103 = vsyncpa [#allocation3 + $0x1], 1 }
0x201d   :  { %3104 = vsyncpa [#allocation4], 1 }
0x201e   :  { %3106 = vsyncpa [#allocation4 + $0x1], 1 }

</bundles_post_ra>
